<compile_context>
chip_gen: v7x
topology: tpu7x:2x2x1
jax: 0.10.0
libtpu: 0.0.40
codegen_flags: <defaults>
</compile_context>

<pallas_src>
import math
import functools

import jax
import jax.numpy as jnp
from jax import lax
from jax.experimental import pallas as pl
from jax.experimental.pallas import tpu as pltpu

# --- module-level hyper-parameters (same as the PyTorch file) ---
D_MODEL = 128
DIM_FF = 256
N_HEADS = 8
NUM_LAYERS = 3
BN_EPS = 1e-5

_PAR1 = pltpu.CompilerParams(dimension_semantics=("parallel",))


# ---------------------------------------------------------------------------
# Elementwise helpers (kernel-safe)
# ---------------------------------------------------------------------------
def _erf(x):
    # Abramowitz & Stegun 7.1.26, max abs error 1.5e-7.  Uses only exp / mul /
    # add / abs / select, all of which lower on the TPU VPU/EUP.
    a1, a2, a3, a4, a5 = (0.254829592, -0.284496736, 1.421413741,
                          -1.453152027, 1.061405429)
    p = 0.3275911
    ax = jnp.abs(x)
    t = 1.0 / (1.0 + p * ax)
    poly = ((((a5 * t + a4) * t + a3) * t + a2) * t + a1) * t
    e = 1.0 - poly * jnp.exp(-ax * ax)
    return jnp.where(x < 0, -e, e)


def _gelu(x):
    # exact (erf-based) GELU, matching F.gelu default
    return 0.5 * x * (1.0 + _erf(x * (1.0 / math.sqrt(2.0))))


# ---------------------------------------------------------------------------
# Tiling heuristics
# ---------------------------------------------------------------------------
def _pick_bt(B, S, target_rows=512):
    # pack ~target_rows rows (Bt*S) per attention grid step to amortize the
    # per-step overhead and fill the MXU M dimension.
    cap = max(1, target_rows // max(S, 1))
    best = 1
    for d in range(1, B + 1):
        if B % d == 0 and d <= cap:
            best = d
    return best


def _pick_mt(M, target=512):
    # largest multiple-of-8 divisor of M <= min(target, M//2); full array if
    # M is not 8-divisible (block == full dims is always legal).
    if M % 8 != 0:
        return M
    limit = min(target, max(8, M // 2))
    best = None
    d = 8
    while d <= min(M, limit):
        if M % d == 0:
            best = d
        d += 8
    return best if best is not None else M


def _rep2(shape):
    # replicated (constant-index) 2-D block, equal to the full array
    return pl.BlockSpec(shape, lambda b: (0, 0))


# ---------------------------------------------------------------------------
# Kernels
# ---------------------------------------------------------------------------
def _mha_core(h, mask, wqkv, bqkv, wo, bo, n_heads):
    """h: (Bt,S,D) f32, mask: (Bt,1,S) additive f32 -> y = h + out_proj(MHA(h))."""
    Bt, S, D = h.shape
    dh = D // n_heads

    hm = h.reshape(Bt * S, D).astype(jnp.bfloat16)
    # QKV projection: K=128, M=Bt*S rows, bf16 inputs, f32 accumulation.
    # 1/sqrt(head_dim) is pre-folded into the query columns of wqkv/bqkv.
    qkv = jnp.dot(hm, wqkv, preferred_element_type=jnp.float32) + bqkv  # (Bt*S, 3D)

    ctx = []
    for hh in range(n_heads):
        lo = hh * dh
        qh = qkv[:, lo:lo + dh].reshape(Bt, S, dh).astype(jnp.bfloat16)
        kh = qkv[:, D + lo:D + lo + dh].reshape(Bt, S, dh).astype(jnp.bfloat16)
        vh = qkv[:, 2 * D + lo:2 * D + lo + dh].reshape(Bt, S, dh).astype(jnp.bfloat16)

        s = jnp.einsum('bqd,bkd->bqk', qh, kh,
                       preferred_element_type=jnp.float32)          # (Bt,S,S)
        s = s + mask                                                 # key padding
        s = s - jnp.max(s, axis=-1, keepdims=True)
        p = jnp.exp(s)
        p = p * pl.reciprocal(jnp.sum(p, axis=-1, keepdims=True), approx=True)
        ctx.append(jnp.einsum('bqk,bkd->bqd', p.astype(jnp.bfloat16), vh,
                              preferred_element_type=jnp.float32))   # (Bt,S,dh)

    # keep contexts in vregs; lane-dense concat -> single K=128 out-projection
    ctx = jnp.concatenate(ctx, axis=-1)                               # (Bt,S,D)
    proj = jnp.dot(ctx.reshape(Bt * S, D).astype(jnp.bfloat16), wo,
                   preferred_element_type=jnp.float32) + bo
    return h + proj.reshape(Bt, S, D)                                 # residual


def _attn_first_kernel(x_ref, m_ref, win_ref, binpe_ref, wqkv_ref, bqkv_ref,
                       wo_ref, bo_ref, y_ref, *, n_heads):
    # layer 0: fused  (input projection * sqrt(d) + bias + pos-enc) -> MHA ->
    #                 out-proj -> residual
    Bt, S, F = x_ref.shape
    D = win_ref.shape[1]
    x = x_ref[...].reshape(Bt * S, F).astype(jnp.bfloat16)
    h = jnp.dot(x, win_ref[...], preferred_element_type=jnp.float32)
    h = h.reshape(Bt, S, D) + binpe_ref[...]          # (S,D) bias+pe, bcast over Bt
    y = _mha_core(h, m_ref[...], wqkv_ref[...], bqkv_ref[...],
                  wo_ref[...], bo_ref[...], n_heads)
    y_ref[...] = y.astype(y_ref.dtype)


def _attn_mid_kernel(z_ref, m_ref, sc_ref, sh_ref, wqkv_ref, bqkv_ref,
                     wo_ref, bo_ref, y_ref, *, n_heads):
    # layers >= 1: fused  (previous layer's BN2 affine) -> MHA -> out-proj ->
    #                      residual
    h = z_ref[...].astype(jnp.float32) * sc_ref[...] + sh_ref[...]
    y = _mha_core(h, m_ref[...], wqkv_ref[...], bqkv_ref[...],
                  wo_ref[...], bo_ref[...], n_heads)
    y_ref[...] = y.astype(y_ref.dtype)


def _ffn_kernel(y_ref, sc1_ref, sh1_ref, w1_ref, b1_ref, w2_ref, b2_ref, z_ref):
    # per M-tile: BN1 affine (stats precomputed) -> linear1 -> GELU -> linear2
    #             -> residual.  Tiles are independent -> "parallel" grid axis.
    h1 = y_ref[...].astype(jnp.float32) * sc1_ref[...] + sh1_ref[...]
    a = jnp.dot(h1.astype(jnp.bfloat16), w1_ref[...],
                preferred_element_type=jnp.float32) + b1_ref[...]
    a = _gelu(a)
    f = jnp.dot(a.astype(jnp.bfloat16), w2_ref[...],
                preferred_element_type=jnp.float32) + b2_ref[...]
    z_ref[...] = (h1 + f).astype(z_ref.dtype)


def _out_kernel(z_ref, sc2_ref, sh2_ref, wout_ref, bout_ref, o_ref):
    # last layer's BN2 affine -> GELU -> output linear (128-padded columns so
    # every HBM store is a full-width vst; sliced back to feat_dim in XLA).
    h = z_ref[...].astype(jnp.float32) * sc2_ref[...] + sh2_ref[...]
    g = _gelu(h).astype(jnp.bfloat16)
    o_ref[...] = jnp.dot(g, wout_ref[...],
                         preferred_element_type=jnp.float32) + bout_ref[...]


# ---------------------------------------------------------------------------
# pallas_call wrappers
# ---------------------------------------------------------------------------
def attention_block_first(X, mask_add, W_in, pe_bias, W_qkv, b_qkv, W_o, b_o):
    B, S, F = X.shape
    D = W_in.shape[1]
    Bt = _pick_bt(B, S)
    kern = functools.partial(_attn_first_kernel, n_heads=N_HEADS)
    return pl.pallas_call(
        kern,
        out_shape=jax.ShapeDtypeStruct((B, S, D), jnp.bfloat16),
        grid=(B // Bt,),
        in_specs=[
            pl.BlockSpec((Bt, S, F), lambda b: (b, 0, 0)),
            pl.BlockSpec((Bt, 1, S), lambda b: (b, 0, 0)),
            _rep2((F, D)), _rep2((S, D)),
            _rep2((D, 3 * D)), _rep2((1, 3 * D)),
            _rep2((D, D)), _rep2((1, D)),
        ],
        out_specs=pl.BlockSpec((Bt, S, D), lambda b: (b, 0, 0)),
        compiler_params=_PAR1,
    )(X, mask_add, W_in, pe_bias, W_qkv, b_qkv.reshape(1, 3 * D),
      W_o, b_o.reshape(1, D))


def attention_block(z, mask_add, scale, shift, W_qkv, b_qkv, W_o, b_o):
    B, S, D = z.shape
    Bt = _pick_bt(B, S)
    kern = functools.partial(_attn_mid_kernel, n_heads=N_HEADS)
    return pl.pallas_call(
        kern,
        out_shape=jax.ShapeDtypeStruct((B, S, D), jnp.bfloat16),
        grid=(B // Bt,),
        in_specs=[
            pl.BlockSpec((Bt, S, D), lambda b: (b, 0, 0)),
            pl.BlockSpec((Bt, 1, S), lambda b: (b, 0, 0)),
            _rep2((1, D)), _rep2((1, D)),
            _rep2((D, 3 * D)), _rep2((1, 3 * D)),
            _rep2((D, D)), _rep2((1, D)),
        ],
        out_specs=pl.BlockSpec((Bt, S, D), lambda b: (b, 0, 0)),
        compiler_params=_PAR1,
    )(z, mask_add, scale, shift, W_qkv, b_qkv.reshape(1, 3 * D),
      W_o, b_o.reshape(1, D))


def ffn_block(y2, scale1, shift1, W1, b1, W2, b2):
    M, D = y2.shape
    FF = W1.shape[1]
    Mt = _pick_mt(M)
    return pl.pallas_call(
        _ffn_kernel,
        out_shape=jax.ShapeDtypeStruct((M, D), jnp.bfloat16),
        grid=(M // Mt,),
        in_specs=[
            pl.BlockSpec((Mt, D), lambda m: (m, 0)),
            _rep2((1, D)), _rep2((1, D)),
            _rep2((D, FF)), _rep2((1, FF)),
            _rep2((FF, D)), _rep2((1, D)),
        ],
        out_specs=pl.BlockSpec((Mt, D), lambda m: (m, 0)),
        compiler_params=_PAR1,
    )(y2, scale1, shift1, W1, b1.reshape(1, FF), W2, b2.reshape(1, D))


def output_block(z2, scale2, shift2, W_out_pad, b_out_pad):
    M, D = z2.shape
    Fp = W_out_pad.shape[1]
    Mt = _pick_mt(M)
    return pl.pallas_call(
        _out_kernel,
        out_shape=jax.ShapeDtypeStruct((M, Fp), jnp.float32),
        grid=(M // Mt,),
        in_specs=[
            pl.BlockSpec((Mt, D), lambda m: (m, 0)),
            _rep2((1, D)), _rep2((1, D)),
            _rep2((D, Fp)), _rep2((1, Fp)),
        ],
        out_specs=pl.BlockSpec((Mt, Fp), lambda m: (m, 0)),
        compiler_params=_PAR1,
    )(z2, scale2, shift2, W_out_pad, b_out_pad.reshape(1, Fp))


# ---------------------------------------------------------------------------
# BatchNorm batch statistics (tiny fused XLA reductions; result fed to the
# consuming kernel as a pre-folded per-feature affine).
# ---------------------------------------------------------------------------
def _bn_affine(x2, gamma, beta, eps=BN_EPS):
    xf = x2.astype(jnp.float32)
    mean = jnp.mean(xf, axis=0)
    var = jnp.mean(jnp.square(xf - mean[None, :]), axis=0)       # biased var
    scale = gamma * lax.rsqrt(var + eps)
    shift = beta - mean * scale
    return scale.reshape(1, -1), shift.reshape(1, -1)


# ---------------------------------------------------------------------------
# Parameters (deterministic synthetic init; scales folded, weights in bf16)
# ---------------------------------------------------------------------------
def init_params(key, feat_dim, max_len):
    keys = jax.random.split(key, 5 + NUM_LAYERS)

    def rnd(k, shape, s=0.05):
        return (s * jax.random.normal(k, shape)).astype(jnp.float32)

    sqrt_d = math.sqrt(D_MODEL)
    dh = D_MODEL // N_HEADS
    q_scale = 1.0 / math.sqrt(dh)
    f_pad = ((feat_dim + 127) // 128) * 128

    # fold * sqrt(d_model) into the input projection
    W_in = rnd(keys[0], (feat_dim, D_MODEL)) * sqrt_d
    b_in = rnd(keys[1], (D_MODEL,)) * sqrt_d

    # lane-dense (128-padded) output projection; sliced back to feat_dim in XLA
    W_out = rnd(keys[3], (D_MODEL, feat_dim))
    b_out = rnd(keys[4], (feat_dim,))
    W_out_pad = jnp.zeros((D_MODEL, f_pad), jnp.float32).at[:, :feat_dim].set(W_out)
    b_out_pad = jnp.zeros((f_pad,), jnp.float32).at[:feat_dim].set(b_out)

    params = {
        "W_in": W_in.astype(jnp.bfloat16),
        "b_in": b_in,
        "pe": jax.random.uniform(keys[2], (max_len, 1, D_MODEL),
                                 minval=-0.02, maxval=0.02).astype(jnp.float32),
        "W_out_pad": W_out_pad.astype(jnp.bfloat16),
        "b_out_pad": b_out_pad,
        "layers": [],
    }
    for i in range(NUM_LAYERS):
        lk = jax.random.split(keys[5 + i], 8)
        W_qkv = rnd(lk[0], (D_MODEL, 3 * D_MODEL))
        b_qkv = rnd(lk[1], (3 * D_MODEL,))
        # fold 1/sqrt(head_dim) into the query projection
        W_qkv = W_qkv.at[:, :D_MODEL].multiply(q_scale)
        b_qkv = b_qkv.at[:D_MODEL].multiply(q_scale)
        params["layers"].append({
            "W_qkv": W_qkv.astype(jnp.bfloat16),
            "b_qkv": b_qkv,
            "W_o":   rnd(lk[2], (D_MODEL, D_MODEL)).astype(jnp.bfloat16),
            "b_o":   rnd(lk[3], (D_MODEL,)),
            "g1": jnp.ones((D_MODEL,), jnp.float32),
            "be1": jnp.zeros((D_MODEL,), jnp.float32),
            "W1":   rnd(lk[4], (D_MODEL, DIM_FF)).astype(jnp.bfloat16),
            "b1":   rnd(lk[5], (DIM_FF,)),
            "W2":   rnd(lk[6], (DIM_FF, D_MODEL)).astype(jnp.bfloat16),
            "b2":   rnd(lk[7], (D_MODEL,)),
            "g2": jnp.ones((D_MODEL,), jnp.float32),
            "be2": jnp.zeros((D_MODEL,), jnp.float32),
        })
    return params


# ---------------------------------------------------------------------------
# Forward pass — batch-major (B, S, D) everywhere, bf16 inter-kernel stream.
# ---------------------------------------------------------------------------
def ts_transformer_encoder_forward(X, padding_masks, params):
    B, S, F = X.shape
    D = D_MODEL
    X = X.astype(jnp.float32)

    # key-padding mask (padding_masks True = keep; src_key_padding_mask = ~mask)
    mask_add = jnp.where(padding_masks, 0.0, -1e30).astype(jnp.float32).reshape(B, 1, S)
    # bias*sqrt(d_model) + learnable positional encoding, fused into layer 0
    pe_bias = (params["pe"][:S, 0, :] + params["b_in"][None, :]).astype(jnp.float32)

    z2 = None
    sc = sh = None
    for li, lp in enumerate(params["layers"]):
        if li == 0:
            # fused: input proj + pe -> MHA -> out-proj -> residual
            y = attention_block_first(X, mask_add, params["W_in"], pe_bias,
                                      lp["W_qkv"], lp["b_qkv"], lp["W_o"], lp["b_o"])
        else:
            # fused: previous layer's BN2 affine -> MHA -> out-proj -> residual
            y = attention_block(z2.reshape(B, S, D), mask_add, sc, sh,
                                lp["W_qkv"], lp["b_qkv"], lp["W_o"], lp["b_o"])
        y2 = y.reshape(B * S, D)
        # BN1 batch statistics (biased var, eps=1e-5) — tiny XLA reduction
        sc1, sh1 = _bn_affine(y2, lp["g1"], lp["be1"])
        # fused per M-tile: BN1 affine -> linear1 -> GELU -> linear2 -> residual
        z2 = ffn_block(y2, sc1, sh1, lp["W1"], lp["b1"], lp["W2"], lp["b2"])
        # BN2 batch statistics, folded into the next consumer
        sc, sh = _bn_affine(z2, lp["g2"], lp["be2"])

    # last layer's BN2 affine -> GELU -> output linear (lane-padded), then slice
    out_pad = output_block(z2, sc, sh, params["W_out_pad"], params["b_out_pad"])
    return out_pad.reshape(B, S, -1)[:, :, :F]


# ---------------------------------------------------------------------------
if __name__ == "__main__":
    B, S, FEAT, MAX_LEN = 2, 8, 4, 16

    key = jax.random.PRNGKey(0)
    kx, kp = jax.random.split(key)

    X = jax.random.normal(kx, (B, S, FEAT), dtype=jnp.float32)
    padding_masks = jnp.ones((B, S), dtype=jnp.bool_).at[1, 6:].set(False)

    params = init_params(kp, FEAT, MAX_LEN)

    forward = jax.jit(ts_transformer_encoder_forward)
    out = jax.block_until_ready(forward(X, padding_masks, params))

    assert out.shape == (B, S, FEAT), out.shape
    assert bool(jnp.all(jnp.isfinite(out)))
    print("KERNEL_OK")
</pallas_src>

<mosaic_0001>
module attributes {stable_mosaic.version = 11 : i64} {
  func.func @_attn_first_kernel(%arg0: i32, %arg1: memref<2x8x4xf32, #tpu.memory_space<vmem>>, %arg2: memref<2x1x8xf32, #tpu.memory_space<vmem>>, %arg3: memref<4x128xbf16, #tpu.memory_space<vmem>>, %arg4: memref<8x128xf32, #tpu.memory_space<vmem>>, %arg5: memref<128x384xbf16, #tpu.memory_space<vmem>>, %arg6: memref<1x384xf32, #tpu.memory_space<vmem>>, %arg7: memref<128x128xbf16, #tpu.memory_space<vmem>>, %arg8: memref<1x128xf32, #tpu.memory_space<vmem>>, %arg9: memref<2x8x128xbf16, #tpu.memory_space<vmem>>) attributes {dimension_semantics = [#tpu.dimension_semantics<parallel>], iteration_bounds = array<i64: 1>, scalar_prefetch = 0 : i64, scratch_operands = 0 : i64, tpu.core_type = #tpu.core_type<tc>, window_params = [{transform_indices = @transform_0, window_bounds = array<i64: 2, 8, 4>}, {transform_indices = @transform_1, window_bounds = array<i64: 2, 1, 8>}, {pipeline_mode = #tpu.pipeline_mode<synchronous>, transform_indices = @transform_2, window_bounds = array<i64: 4, 128>}, {pipeline_mode = #tpu.pipeline_mode<synchronous>, transform_indices = @transform_3, window_bounds = array<i64: 8, 128>}, {pipeline_mode = #tpu.pipeline_mode<synchronous>, transform_indices = @transform_4, window_bounds = array<i64: 128, 384>}, {pipeline_mode = #tpu.pipeline_mode<synchronous>, transform_indices = @transform_5, window_bounds = array<i64: 1, 384>}, {pipeline_mode = #tpu.pipeline_mode<synchronous>, transform_indices = @transform_6, window_bounds = array<i64: 128, 128>}, {pipeline_mode = #tpu.pipeline_mode<synchronous>, transform_indices = @transform_7, window_bounds = array<i64: 1, 128>}, {transform_indices = @transform_8, window_bounds = array<i64: 2, 8, 128>}]} {
    %c0 = arith.constant 0 : index
    %c0_0 = arith.constant 0 : index
    %c0_1 = arith.constant 0 : index
    %0 = vector.load %arg1[%c0, %c0_0, %c0_1] : memref<2x8x4xf32, #tpu.memory_space<vmem>>, vector<2x8x4xf32>
    %1 = vector.shape_cast %0 : vector<2x8x4xf32> to vector<16x4xf32>
    %2 = arith.truncf %1 : vector<16x4xf32> to vector<16x4xbf16>
    %c0_2 = arith.constant 0 : index
    %c0_3 = arith.constant 0 : index
    %3 = vector.load %arg3[%c0_2, %c0_3] : memref<4x128xbf16, #tpu.memory_space<vmem>>, vector<4x128xbf16>
    %cst = arith.constant dense<0.000000e+00> : vector<16x128xf32>
    %4 = tpu.matmul %2, %3, %cst {dimension_numbers = #tpu.dot_dimension_numbers<[1], [0], [0], [1], [0, 0, 1, 1], [], []>} : vector<16x4xbf16>, vector<4x128xbf16>, vector<16x128xf32> -> vector<16x128xf32>
    %5 = vector.shape_cast %4 : vector<16x128xf32> to vector<2x8x128xf32>
    %c0_4 = arith.constant 0 : index
    %c0_5 = arith.constant 0 : index
    %6 = vector.load %arg4[%c0_4, %c0_5] : memref<8x128xf32, #tpu.memory_space<vmem>>, vector<8x128xf32>
    %7 = vector.shape_cast %6 : vector<8x128xf32> to vector<1x8x128xf32>
    %8 = vector.broadcast %7 : vector<1x8x128xf32> to vector<2x8x128xf32>
    %9 = arith.addf %5, %8 : vector<2x8x128xf32>
    %c0_6 = arith.constant 0 : index
    %c0_7 = arith.constant 0 : index
    %c0_8 = arith.constant 0 : index
    %10 = vector.load %arg2[%c0_6, %c0_7, %c0_8] : memref<2x1x8xf32, #tpu.memory_space<vmem>>, vector<2x1x8xf32>
    %c0_9 = arith.constant 0 : index
    %c0_10 = arith.constant 0 : index
    %11 = vector.load %arg5[%c0_9, %c0_10] : memref<128x384xbf16, #tpu.memory_space<vmem>>, vector<128x384xbf16>
    %c0_11 = arith.constant 0 : index
    %c0_12 = arith.constant 0 : index
    %12 = vector.load %arg6[%c0_11, %c0_12] : memref<1x384xf32, #tpu.memory_space<vmem>>, vector<1x384xf32>
    %c0_13 = arith.constant 0 : index
    %c0_14 = arith.constant 0 : index
    %13 = vector.load %arg7[%c0_13, %c0_14] : memref<128x128xbf16, #tpu.memory_space<vmem>>, vector<128x128xbf16>
    %c0_15 = arith.constant 0 : index
    %c0_16 = arith.constant 0 : index
    %14 = vector.load %arg8[%c0_15, %c0_16] : memref<1x128xf32, #tpu.memory_space<vmem>>, vector<1x128xf32>
    %15 = vector.shape_cast %9 : vector<2x8x128xf32> to vector<16x128xf32>
    %16 = arith.truncf %15 : vector<16x128xf32> to vector<16x128xbf16>
    %cst_17 = arith.constant dense<0.000000e+00> : vector<16x384xf32>
    %17 = tpu.matmul %16, %11, %cst_17 {dimension_numbers = #tpu.dot_dimension_numbers<[1], [0], [0], [1], [0, 0, 1, 1], [], []>} : vector<16x128xbf16>, vector<128x384xbf16>, vector<16x384xf32> -> vector<16x384xf32>
    %18 = vector.broadcast %12 : vector<1x384xf32> to vector<16x384xf32>
    %19 = arith.addf %17, %18 : vector<16x384xf32>
    %20 = vector.extract_strided_slice %19 {offsets = [0, 0], sizes = [16, 16], strides = [1, 1]} : vector<16x384xf32> to vector<16x16xf32>
    %21 = vector.shape_cast %20 : vector<16x16xf32> to vector<2x8x16xf32>
    %22 = arith.truncf %21 : vector<2x8x16xf32> to vector<2x8x16xbf16>
    %23 = vector.extract_strided_slice %19 {offsets = [0, 128], sizes = [16, 16], strides = [1, 1]} : vector<16x384xf32> to vector<16x16xf32>
    %24 = vector.shape_cast %23 : vector<16x16xf32> to vector<2x8x16xf32>
    %25 = arith.truncf %24 : vector<2x8x16xf32> to vector<2x8x16xbf16>
    %26 = vector.extract_strided_slice %19 {offsets = [0, 256], sizes = [16, 16], strides = [1, 1]} : vector<16x384xf32> to vector<16x16xf32>
    %27 = vector.shape_cast %26 : vector<16x16xf32> to vector<2x8x16xf32>
    %28 = arith.truncf %27 : vector<2x8x16xf32> to vector<2x8x16xbf16>
    "tpu.trace_start"() <{level = 10 : i32, message = "bqd,bkd->bqk"}> : () -> ()
    %cst_18 = arith.constant dense<0.000000e+00> : vector<2x8x8xf32>
    %29 = tpu.matmul %22, %25, %cst_18 {dimension_numbers = #tpu.dot_dimension_numbers<[2], [2], [1], [1], [0, 0, 0, 1, 1, 1], [0], [0]>} : vector<2x8x16xbf16>, vector<2x8x16xbf16>, vector<2x8x8xf32> -> vector<2x8x8xf32>
    "tpu.trace_stop"() : () -> ()
    %30 = vector.broadcast %10 : vector<2x1x8xf32> to vector<2x8x8xf32>
    %31 = arith.addf %29, %30 : vector<2x8x8xf32>
    %cst_19 = arith.constant dense<0xFF800000> : vector<2x8xf32>
    %32 = vector.multi_reduction <maximumf>, %31, %cst_19 [2] : vector<2x8x8xf32> to vector<2x8xf32>
    %33 = vector.shape_cast %32 : vector<2x8xf32> to vector<2x8x1xf32>
    %34 = vector.broadcast %33 : vector<2x8x1xf32> to vector<2x8x8xf32>
    %35 = arith.subf %31, %34 : vector<2x8x8xf32>
    %36 = math.exp %35 : vector<2x8x8xf32>
    %cst_20 = arith.constant dense<0.000000e+00> : vector<2x8xf32>
    %37 = vector.multi_reduction <add>, %36, %cst_20 [2] : vector<2x8x8xf32> to vector<2x8xf32>
    %38 = vector.shape_cast %37 : vector<2x8xf32> to vector<2x8x1xf32>
    %39 = tpu.reciprocal %38 {approx = true} : vector<2x8x1xf32> -> vector<2x8x1xf32>
    %40 = vector.broadcast %39 : vector<2x8x1xf32> to vector<2x8x8xf32>
    %41 = arith.mulf %36, %40 : vector<2x8x8xf32>
    %42 = arith.truncf %41 : vector<2x8x8xf32> to vector<2x8x8xbf16>
    "tpu.trace_start"() <{level = 10 : i32, message = "bqk,bkd->bqd"}> : () -> ()
    %cst_21 = arith.constant dense<0.000000e+00> : vector<2x8x16xf32>
    %43 = tpu.matmul %42, %28, %cst_21 {dimension_numbers = #tpu.dot_dimension_numbers<[2], [1], [1], [2], [0, 0, 0, 1, 1, 2], [0], [0]>} : vector<2x8x8xbf16>, vector<2x8x16xbf16>, vector<2x8x16xf32> -> vector<2x8x16xf32>
    "tpu.trace_stop"() : () -> ()
    %44 = vector.extract_strided_slice %19 {offsets = [0, 16], sizes = [16, 16], strides = [1, 1]} : vector<16x384xf32> to vector<16x16xf32>
    %45 = vector.shape_cast %44 : vector<16x16xf32> to vector<2x8x16xf32>
    %46 = arith.truncf %45 : vector<2x8x16xf32> to vector<2x8x16xbf16>
    %47 = vector.extract_strided_slice %19 {offsets = [0, 144], sizes = [16, 16], strides = [1, 1]} : vector<16x384xf32> to vector<16x16xf32>
    %48 = vector.shape_cast %47 : vector<16x16xf32> to vector<2x8x16xf32>
    %49 = arith.truncf %48 : vector<2x8x16xf32> to vector<2x8x16xbf16>
    %50 = vector.extract_strided_slice %19 {offsets = [0, 272], sizes = [16, 16], strides = [1, 1]} : vector<16x384xf32> to vector<16x16xf32>
    %51 = vector.shape_cast %50 : vector<16x16xf32> to vector<2x8x16xf32>
    %52 = arith.truncf %51 : vector<2x8x16xf32> to vector<2x8x16xbf16>
    "tpu.trace_start"() <{level = 10 : i32, message = "bqd,bkd->bqk"}> : () -> ()
    %cst_22 = arith.constant dense<0.000000e+00> : vector<2x8x8xf32>
    %53 = tpu.matmul %46, %49, %cst_22 {dimension_numbers = #tpu.dot_dimension_numbers<[2], [2], [1], [1], [0, 0, 0, 1, 1, 1], [0], [0]>} : vector<2x8x16xbf16>, vector<2x8x16xbf16>, vector<2x8x8xf32> -> vector<2x8x8xf32>
    "tpu.trace_stop"() : () -> ()
    %54 = vector.broadcast %10 : vector<2x1x8xf32> to vector<2x8x8xf32>
    %55 = arith.addf %53, %54 : vector<2x8x8xf32>
    %cst_23 = arith.constant dense<0xFF800000> : vector<2x8xf32>
    %56 = vector.multi_reduction <maximumf>, %55, %cst_23 [2] : vector<2x8x8xf32> to vector<2x8xf32>
    %57 = vector.shape_cast %56 : vector<2x8xf32> to vector<2x8x1xf32>
    %58 = vector.broadcast %57 : vector<2x8x1xf32> to vector<2x8x8xf32>
    %59 = arith.subf %55, %58 : vector<2x8x8xf32>
    %60 = math.exp %59 : vector<2x8x8xf32>
    %cst_24 = arith.constant dense<0.000000e+00> : vector<2x8xf32>
    %61 = vector.multi_reduction <add>, %60, %cst_24 [2] : vector<2x8x8xf32> to vector<2x8xf32>
    %62 = vector.shape_cast %61 : vector<2x8xf32> to vector<2x8x1xf32>
    %63 = tpu.reciprocal %62 {approx = true} : vector<2x8x1xf32> -> vector<2x8x1xf32>
    %64 = vector.broadcast %63 : vector<2x8x1xf32> to vector<2x8x8xf32>
    %65 = arith.mulf %60, %64 : vector<2x8x8xf32>
    %66 = arith.truncf %65 : vector<2x8x8xf32> to vector<2x8x8xbf16>
    "tpu.trace_start"() <{level = 10 : i32, message = "bqk,bkd->bqd"}> : () -> ()
    %cst_25 = arith.constant dense<0.000000e+00> : vector<2x8x16xf32>
    %67 = tpu.matmul %66, %52, %cst_25 {dimension_numbers = #tpu.dot_dimension_numbers<[2], [1], [1], [2], [0, 0, 0, 1, 1, 2], [0], [0]>} : vector<2x8x8xbf16>, vector<2x8x16xbf16>, vector<2x8x16xf32> -> vector<2x8x16xf32>
    "tpu.trace_stop"() : () -> ()
    %68 = vector.extract_strided_slice %19 {offsets = [0, 32], sizes = [16, 16], strides = [1, 1]} : vector<16x384xf32> to vector<16x16xf32>
    %69 = vector.shape_cast %68 : vector<16x16xf32> to vector<2x8x16xf32>
    %70 = arith.truncf %69 : vector<2x8x16xf32> to vector<2x8x16xbf16>
    %71 = vector.extract_strided_slice %19 {offsets = [0, 160], sizes = [16, 16], strides = [1, 1]} : vector<16x384xf32> to vector<16x16xf32>
    %72 = vector.shape_cast %71 : vector<16x16xf32> to vector<2x8x16xf32>
    %73 = arith.truncf %72 : vector<2x8x16xf32> to vector<2x8x16xbf16>
    %74 = vector.extract_strided_slice %19 {offsets = [0, 288], sizes = [16, 16], strides = [1, 1]} : vector<16x384xf32> to vector<16x16xf32>
    %75 = vector.shape_cast %74 : vector<16x16xf32> to vector<2x8x16xf32>
    %76 = arith.truncf %75 : vector<2x8x16xf32> to vector<2x8x16xbf16>
    "tpu.trace_start"() <{level = 10 : i32, message = "bqd,bkd->bqk"}> : () -> ()
    %cst_26 = arith.constant dense<0.000000e+00> : vector<2x8x8xf32>
    %77 = tpu.matmul %70, %73, %cst_26 {dimension_numbers = #tpu.dot_dimension_numbers<[2], [2], [1], [1], [0, 0, 0, 1, 1, 1], [0], [0]>} : vector<2x8x16xbf16>, vector<2x8x16xbf16>, vector<2x8x8xf32> -> vector<2x8x8xf32>
    "tpu.trace_stop"() : () -> ()
    %78 = vector.broadcast %10 : vector<2x1x8xf32> to vector<2x8x8xf32>
    %79 = arith.addf %77, %78 : vector<2x8x8xf32>
    %cst_27 = arith.constant dense<0xFF800000> : vector<2x8xf32>
    %80 = vector.multi_reduction <maximumf>, %79, %cst_27 [2] : vector<2x8x8xf32> to vector<2x8xf32>
    %81 = vector.shape_cast %80 : vector<2x8xf32> to vector<2x8x1xf32>
    %82 = vector.broadcast %81 : vector<2x8x1xf32> to vector<2x8x8xf32>
    %83 = arith.subf %79, %82 : vector<2x8x8xf32>
    %84 = math.exp %83 : vector<2x8x8xf32>
    %cst_28 = arith.constant dense<0.000000e+00> : vector<2x8xf32>
    %85 = vector.multi_reduction <add>, %84, %cst_28 [2] : vector<2x8x8xf32> to vector<2x8xf32>
    %86 = vector.shape_cast %85 : vector<2x8xf32> to vector<2x8x1xf32>
    %87 = tpu.reciprocal %86 {approx = true} : vector<2x8x1xf32> -> vector<2x8x1xf32>
    %88 = vector.broadcast %87 : vector<2x8x1xf32> to vector<2x8x8xf32>
    %89 = arith.mulf %84, %88 : vector<2x8x8xf32>
    %90 = arith.truncf %89 : vector<2x8x8xf32> to vector<2x8x8xbf16>
    "tpu.trace_start"() <{level = 10 : i32, message = "bqk,bkd->bqd"}> : () -> ()
    %cst_29 = arith.constant dense<0.000000e+00> : vector<2x8x16xf32>
    %91 = tpu.matmul %90, %76, %cst_29 {dimension_numbers = #tpu.dot_dimension_numbers<[2], [1], [1], [2], [0, 0, 0, 1, 1, 2], [0], [0]>} : vector<2x8x8xbf16>, vector<2x8x16xbf16>, vector<2x8x16xf32> -> vector<2x8x16xf32>
    "tpu.trace_stop"() : () -> ()
    %92 = vector.extract_strided_slice %19 {offsets = [0, 48], sizes = [16, 16], strides = [1, 1]} : vector<16x384xf32> to vector<16x16xf32>
    %93 = vector.shape_cast %92 : vector<16x16xf32> to vector<2x8x16xf32>
    %94 = arith.truncf %93 : vector<2x8x16xf32> to vector<2x8x16xbf16>
    %95 = vector.extract_strided_slice %19 {offsets = [0, 176], sizes = [16, 16], strides = [1, 1]} : vector<16x384xf32> to vector<16x16xf32>
    %96 = vector.shape_cast %95 : vector<16x16xf32> to vector<2x8x16xf32>
    %97 = arith.truncf %96 : vector<2x8x16xf32> to vector<2x8x16xbf16>
    %98 = vector.extract_strided_slice %19 {offsets = [0, 304], sizes = [16, 16], strides = [1, 1]} : vector<16x384xf32> to vector<16x16xf32>
    %99 = vector.shape_cast %98 : vector<16x16xf32> to vector<2x8x16xf32>
    %100 = arith.truncf %99 : vector<2x8x16xf32> to vector<2x8x16xbf16>
    "tpu.trace_start"() <{level = 10 : i32, message = "bqd,bkd->bqk"}> : () -> ()
    %cst_30 = arith.constant dense<0.000000e+00> : vector<2x8x8xf32>
    %101 = tpu.matmul %94, %97, %cst_30 {dimension_numbers = #tpu.dot_dimension_numbers<[2], [2], [1], [1], [0, 0, 0, 1, 1, 1], [0], [0]>} : vector<2x8x16xbf16>, vector<2x8x16xbf16>, vector<2x8x8xf32> -> vector<2x8x8xf32>
    "tpu.trace_stop"() : () -> ()
    %102 = vector.broadcast %10 : vector<2x1x8xf32> to vector<2x8x8xf32>
    %103 = arith.addf %101, %102 : vector<2x8x8xf32>
    %cst_31 = arith.constant dense<0xFF800000> : vector<2x8xf32>
    %104 = vector.multi_reduction <maximumf>, %103, %cst_31 [2] : vector<2x8x8xf32> to vector<2x8xf32>
    %105 = vector.shape_cast %104 : vector<2x8xf32> to vector<2x8x1xf32>
    %106 = vector.broadcast %105 : vector<2x8x1xf32> to vector<2x8x8xf32>
    %107 = arith.subf %103, %106 : vector<2x8x8xf32>
    %108 = math.exp %107 : vector<2x8x8xf32>
    %cst_32 = arith.constant dense<0.000000e+00> : vector<2x8xf32>
    %109 = vector.multi_reduction <add>, %108, %cst_32 [2] : vector<2x8x8xf32> to vector<2x8xf32>
    %110 = vector.shape_cast %109 : vector<2x8xf32> to vector<2x8x1xf32>
    %111 = tpu.reciprocal %110 {approx = true} : vector<2x8x1xf32> -> vector<2x8x1xf32>
    %112 = vector.broadcast %111 : vector<2x8x1xf32> to vector<2x8x8xf32>
    %113 = arith.mulf %108, %112 : vector<2x8x8xf32>
    %114 = arith.truncf %113 : vector<2x8x8xf32> to vector<2x8x8xbf16>
    "tpu.trace_start"() <{level = 10 : i32, message = "bqk,bkd->bqd"}> : () -> ()
    %cst_33 = arith.constant dense<0.000000e+00> : vector<2x8x16xf32>
    %115 = tpu.matmul %114, %100, %cst_33 {dimension_numbers = #tpu.dot_dimension_numbers<[2], [1], [1], [2], [0, 0, 0, 1, 1, 2], [0], [0]>} : vector<2x8x8xbf16>, vector<2x8x16xbf16>, vector<2x8x16xf32> -> vector<2x8x16xf32>
    "tpu.trace_stop"() : () -> ()
    %116 = vector.extract_strided_slice %19 {offsets = [0, 64], sizes = [16, 16], strides = [1, 1]} : vector<16x384xf32> to vector<16x16xf32>
    %117 = vector.shape_cast %116 : vector<16x16xf32> to vector<2x8x16xf32>
    %118 = arith.truncf %117 : vector<2x8x16xf32> to vector<2x8x16xbf16>
    %119 = vector.extract_strided_slice %19 {offsets = [0, 192], sizes = [16, 16], strides = [1, 1]} : vector<16x384xf32> to vector<16x16xf32>
    %120 = vector.shape_cast %119 : vector<16x16xf32> to vector<2x8x16xf32>
    %121 = arith.truncf %120 : vector<2x8x16xf32> to vector<2x8x16xbf16>
    %122 = vector.extract_strided_slice %19 {offsets = [0, 320], sizes = [16, 16], strides = [1, 1]} : vector<16x384xf32> to vector<16x16xf32>
    %123 = vector.shape_cast %122 : vector<16x16xf32> to vector<2x8x16xf32>
    %124 = arith.truncf %123 : vector<2x8x16xf32> to vector<2x8x16xbf16>
    "tpu.trace_start"() <{level = 10 : i32, message = "bqd,bkd->bqk"}> : () -> ()
    %cst_34 = arith.constant dense<0.000000e+00> : vector<2x8x8xf32>
    %125 = tpu.matmul %118, %121, %cst_34 {dimension_numbers = #tpu.dot_dimension_numbers<[2], [2], [1], [1], [0, 0, 0, 1, 1, 1], [0], [0]>} : vector<2x8x16xbf16>, vector<2x8x16xbf16>, vector<2x8x8xf32> -> vector<2x8x8xf32>
    "tpu.trace_stop"() : () -> ()
    %126 = vector.broadcast %10 : vector<2x1x8xf32> to vector<2x8x8xf32>
    %127 = arith.addf %125, %126 : vector<2x8x8xf32>
    %cst_35 = arith.constant dense<0xFF800000> : vector<2x8xf32>
    %128 = vector.multi_reduction <maximumf>, %127, %cst_35 [2] : vector<2x8x8xf32> to vector<2x8xf32>
    %129 = vector.shape_cast %128 : vector<2x8xf32> to vector<2x8x1xf32>
    %130 = vector.broadcast %129 : vector<2x8x1xf32> to vector<2x8x8xf32>
    %131 = arith.subf %127, %130 : vector<2x8x8xf32>
    %132 = math.exp %131 : vector<2x8x8xf32>
    %cst_36 = arith.constant dense<0.000000e+00> : vector<2x8xf32>
    %133 = vector.multi_reduction <add>, %132, %cst_36 [2] : vector<2x8x8xf32> to vector<2x8xf32>
    %134 = vector.shape_cast %133 : vector<2x8xf32> to vector<2x8x1xf32>
    %135 = tpu.reciprocal %134 {approx = true} : vector<2x8x1xf32> -> vector<2x8x1xf32>
    %136 = vector.broadcast %135 : vector<2x8x1xf32> to vector<2x8x8xf32>
    %137 = arith.mulf %132, %136 : vector<2x8x8xf32>
    %138 = arith.truncf %137 : vector<2x8x8xf32> to vector<2x8x8xbf16>
    "tpu.trace_start"() <{level = 10 : i32, message = "bqk,bkd->bqd"}> : () -> ()
    %cst_37 = arith.constant dense<0.000000e+00> : vector<2x8x16xf32>
    %139 = tpu.matmul %138, %124, %cst_37 {dimension_numbers = #tpu.dot_dimension_numbers<[2], [1], [1], [2], [0, 0, 0, 1, 1, 2], [0], [0]>} : vector<2x8x8xbf16>, vector<2x8x16xbf16>, vector<2x8x16xf32> -> vector<2x8x16xf32>
    "tpu.trace_stop"() : () -> ()
    %140 = vector.extract_strided_slice %19 {offsets = [0, 80], sizes = [16, 16], strides = [1, 1]} : vector<16x384xf32> to vector<16x16xf32>
    %141 = vector.shape_cast %140 : vector<16x16xf32> to vector<2x8x16xf32>
    %142 = arith.truncf %141 : vector<2x8x16xf32> to vector<2x8x16xbf16>
    %143 = vector.extract_strided_slice %19 {offsets = [0, 208], sizes = [16, 16], strides = [1, 1]} : vector<16x384xf32> to vector<16x16xf32>
    %144 = vector.shape_cast %143 : vector<16x16xf32> to vector<2x8x16xf32>
    %145 = arith.truncf %144 : vector<2x8x16xf32> to vector<2x8x16xbf16>
    %146 = vector.extract_strided_slice %19 {offsets = [0, 336], sizes = [16, 16], strides = [1, 1]} : vector<16x384xf32> to vector<16x16xf32>
    %147 = vector.shape_cast %146 : vector<16x16xf32> to vector<2x8x16xf32>
    %148 = arith.truncf %147 : vector<2x8x16xf32> to vector<2x8x16xbf16>
    "tpu.trace_start"() <{level = 10 : i32, message = "bqd,bkd->bqk"}> : () -> ()
    %cst_38 = arith.constant dense<0.000000e+00> : vector<2x8x8xf32>
    %149 = tpu.matmul %142, %145, %cst_38 {dimension_numbers = #tpu.dot_dimension_numbers<[2], [2], [1], [1], [0, 0, 0, 1, 1, 1], [0], [0]>} : vector<2x8x16xbf16>, vector<2x8x16xbf16>, vector<2x8x8xf32> -> vector<2x8x8xf32>
    "tpu.trace_stop"() : () -> ()
    %150 = vector.broadcast %10 : vector<2x1x8xf32> to vector<2x8x8xf32>
    %151 = arith.addf %149, %150 : vector<2x8x8xf32>
    %cst_39 = arith.constant dense<0xFF800000> : vector<2x8xf32>
    %152 = vector.multi_reduction <maximumf>, %151, %cst_39 [2] : vector<2x8x8xf32> to vector<2x8xf32>
    %153 = vector.shape_cast %152 : vector<2x8xf32> to vector<2x8x1xf32>
    %154 = vector.broadcast %153 : vector<2x8x1xf32> to vector<2x8x8xf32>
    %155 = arith.subf %151, %154 : vector<2x8x8xf32>
    %156 = math.exp %155 : vector<2x8x8xf32>
    %cst_40 = arith.constant dense<0.000000e+00> : vector<2x8xf32>
    %157 = vector.multi_reduction <add>, %156, %cst_40 [2] : vector<2x8x8xf32> to vector<2x8xf32>
    %158 = vector.shape_cast %157 : vector<2x8xf32> to vector<2x8x1xf32>
    %159 = tpu.reciprocal %158 {approx = true} : vector<2x8x1xf32> -> vector<2x8x1xf32>
    %160 = vector.broadcast %159 : vector<2x8x1xf32> to vector<2x8x8xf32>
    %161 = arith.mulf %156, %160 : vector<2x8x8xf32>
    %162 = arith.truncf %161 : vector<2x8x8xf32> to vector<2x8x8xbf16>
    "tpu.trace_start"() <{level = 10 : i32, message = "bqk,bkd->bqd"}> : () -> ()
    %cst_41 = arith.constant dense<0.000000e+00> : vector<2x8x16xf32>
    %163 = tpu.matmul %162, %148, %cst_41 {dimension_numbers = #tpu.dot_dimension_numbers<[2], [1], [1], [2], [0, 0, 0, 1, 1, 2], [0], [0]>} : vector<2x8x8xbf16>, vector<2x8x16xbf16>, vector<2x8x16xf32> -> vector<2x8x16xf32>
    "tpu.trace_stop"() : () -> ()
    %164 = vector.extract_strided_slice %19 {offsets = [0, 96], sizes = [16, 16], strides = [1, 1]} : vector<16x384xf32> to vector<16x16xf32>
    %165 = vector.shape_cast %164 : vector<16x16xf32> to vector<2x8x16xf32>
    %166 = arith.truncf %165 : vector<2x8x16xf32> to vector<2x8x16xbf16>
    %167 = vector.extract_strided_slice %19 {offsets = [0, 224], sizes = [16, 16], strides = [1, 1]} : vector<16x384xf32> to vector<16x16xf32>
    %168 = vector.shape_cast %167 : vector<16x16xf32> to vector<2x8x16xf32>
    %169 = arith.truncf %168 : vector<2x8x16xf32> to vector<2x8x16xbf16>
    %170 = vector.extract_strided_slice %19 {offsets = [0, 352], sizes = [16, 16], strides = [1, 1]} : vector<16x384xf32> to vector<16x16xf32>
    %171 = vector.shape_cast %170 : vector<16x16xf32> to vector<2x8x16xf32>
    %172 = arith.truncf %171 : vector<2x8x16xf32> to vector<2x8x16xbf16>
    "tpu.trace_start"() <{level = 10 : i32, message = "bqd,bkd->bqk"}> : () -> ()
    %cst_42 = arith.constant dense<0.000000e+00> : vector<2x8x8xf32>
    %173 = tpu.matmul %166, %169, %cst_42 {dimension_numbers = #tpu.dot_dimension_numbers<[2], [2], [1], [1], [0, 0, 0, 1, 1, 1], [0], [0]>} : vector<2x8x16xbf16>, vector<2x8x16xbf16>, vector<2x8x8xf32> -> vector<2x8x8xf32>
    "tpu.trace_stop"() : () -> ()
    %174 = vector.broadcast %10 : vector<2x1x8xf32> to vector<2x8x8xf32>
    %175 = arith.addf %173, %174 : vector<2x8x8xf32>
    %cst_43 = arith.constant dense<0xFF800000> : vector<2x8xf32>
    %176 = vector.multi_reduction <maximumf>, %175, %cst_43 [2] : vector<2x8x8xf32> to vector<2x8xf32>
    %177 = vector.shape_cast %176 : vector<2x8xf32> to vector<2x8x1xf32>
    %178 = vector.broadcast %177 : vector<2x8x1xf32> to vector<2x8x8xf32>
    %179 = arith.subf %175, %178 : vector<2x8x8xf32>
    %180 = math.exp %179 : vector<2x8x8xf32>
    %cst_44 = arith.constant dense<0.000000e+00> : vector<2x8xf32>
    %181 = vector.multi_reduction <add>, %180, %cst_44 [2] : vector<2x8x8xf32> to vector<2x8xf32>
    %182 = vector.shape_cast %181 : vector<2x8xf32> to vector<2x8x1xf32>
    %183 = tpu.reciprocal %182 {approx = true} : vector<2x8x1xf32> -> vector<2x8x1xf32>
    %184 = vector.broadcast %183 : vector<2x8x1xf32> to vector<2x8x8xf32>
    %185 = arith.mulf %180, %184 : vector<2x8x8xf32>
    %186 = arith.truncf %185 : vector<2x8x8xf32> to vector<2x8x8xbf16>
    "tpu.trace_start"() <{level = 10 : i32, message = "bqk,bkd->bqd"}> : () -> ()
    %cst_45 = arith.constant dense<0.000000e+00> : vector<2x8x16xf32>
    %187 = tpu.matmul %186, %172, %cst_45 {dimension_numbers = #tpu.dot_dimension_numbers<[2], [1], [1], [2], [0, 0, 0, 1, 1, 2], [0], [0]>} : vector<2x8x8xbf16>, vector<2x8x16xbf16>, vector<2x8x16xf32> -> vector<2x8x16xf32>
    "tpu.trace_stop"() : () -> ()
    %188 = vector.extract_strided_slice %19 {offsets = [0, 112], sizes = [16, 16], strides = [1, 1]} : vector<16x384xf32> to vector<16x16xf32>
    %189 = vector.shape_cast %188 : vector<16x16xf32> to vector<2x8x16xf32>
    %190 = arith.truncf %189 : vector<2x8x16xf32> to vector<2x8x16xbf16>
    %191 = vector.extract_strided_slice %19 {offsets = [0, 240], sizes = [16, 16], strides = [1, 1]} : vector<16x384xf32> to vector<16x16xf32>
    %192 = vector.shape_cast %191 : vector<16x16xf32> to vector<2x8x16xf32>
    %193 = arith.truncf %192 : vector<2x8x16xf32> to vector<2x8x16xbf16>
    %194 = vector.extract_strided_slice %19 {offsets = [0, 368], sizes = [16, 16], strides = [1, 1]} : vector<16x384xf32> to vector<16x16xf32>
    %195 = vector.shape_cast %194 : vector<16x16xf32> to vector<2x8x16xf32>
    %196 = arith.truncf %195 : vector<2x8x16xf32> to vector<2x8x16xbf16>
    "tpu.trace_start"() <{level = 10 : i32, message = "bqd,bkd->bqk"}> : () -> ()
    %cst_46 = arith.constant dense<0.000000e+00> : vector<2x8x8xf32>
    %197 = tpu.matmul %190, %193, %cst_46 {dimension_numbers = #tpu.dot_dimension_numbers<[2], [2], [1], [1], [0, 0, 0, 1, 1, 1], [0], [0]>} : vector<2x8x16xbf16>, vector<2x8x16xbf16>, vector<2x8x8xf32> -> vector<2x8x8xf32>
    "tpu.trace_stop"() : () -> ()
    %198 = vector.broadcast %10 : vector<2x1x8xf32> to vector<2x8x8xf32>
    %199 = arith.addf %197, %198 : vector<2x8x8xf32>
    %cst_47 = arith.constant dense<0xFF800000> : vector<2x8xf32>
    %200 = vector.multi_reduction <maximumf>, %199, %cst_47 [2] : vector<2x8x8xf32> to vector<2x8xf32>
    %201 = vector.shape_cast %200 : vector<2x8xf32> to vector<2x8x1xf32>
    %202 = vector.broadcast %201 : vector<2x8x1xf32> to vector<2x8x8xf32>
    %203 = arith.subf %199, %202 : vector<2x8x8xf32>
    %204 = math.exp %203 : vector<2x8x8xf32>
    %cst_48 = arith.constant dense<0.000000e+00> : vector<2x8xf32>
    %205 = vector.multi_reduction <add>, %204, %cst_48 [2] : vector<2x8x8xf32> to vector<2x8xf32>
    %206 = vector.shape_cast %205 : vector<2x8xf32> to vector<2x8x1xf32>
    %207 = tpu.reciprocal %206 {approx = true} : vector<2x8x1xf32> -> vector<2x8x1xf32>
    %208 = vector.broadcast %207 : vector<2x8x1xf32> to vector<2x8x8xf32>
    %209 = arith.mulf %204, %208 : vector<2x8x8xf32>
    %210 = arith.truncf %209 : vector<2x8x8xf32> to vector<2x8x8xbf16>
    "tpu.trace_start"() <{level = 10 : i32, message = "bqk,bkd->bqd"}> : () -> ()
    %cst_49 = arith.constant dense<0.000000e+00> : vector<2x8x16xf32>
    %211 = tpu.matmul %210, %196, %cst_49 {dimension_numbers = #tpu.dot_dimension_numbers<[2], [1], [1], [2], [0, 0, 0, 1, 1, 2], [0], [0]>} : vector<2x8x8xbf16>, vector<2x8x16xbf16>, vector<2x8x16xf32> -> vector<2x8x16xf32>
    "tpu.trace_stop"() : () -> ()
    %212 = tpu.concatenate %43, %67, %91, %115, %139, %163, %187, %211 in 2 : vector<2x8x16xf32>, vector<2x8x16xf32>, vector<2x8x16xf32>, vector<2x8x16xf32>, vector<2x8x16xf32>, vector<2x8x16xf32>, vector<2x8x16xf32>, vector<2x8x16xf32> -> vector<2x8x128xf32>
    %213 = vector.shape_cast %212 : vector<2x8x128xf32> to vector<16x128xf32>
    %214 = arith.truncf %213 : vector<16x128xf32> to vector<16x128xbf16>
    %cst_50 = arith.constant dense<0.000000e+00> : vector<16x128xf32>
    %215 = tpu.matmul %214, %13, %cst_50 {dimension_numbers = #tpu.dot_dimension_numbers<[1], [0], [0], [1], [0, 0, 1, 1], [], []>} : vector<16x128xbf16>, vector<128x128xbf16>, vector<16x128xf32> -> vector<16x128xf32>
    %216 = vector.broadcast %14 : vector<1x128xf32> to vector<16x128xf32>
    %217 = arith.addf %215, %216 : vector<16x128xf32>
    %218 = vector.shape_cast %217 : vector<16x128xf32> to vector<2x8x128xf32>
    %219 = arith.addf %9, %218 : vector<2x8x128xf32>
    %220 = arith.truncf %219 : vector<2x8x128xf32> to vector<2x8x128xbf16>
    %c0_51 = arith.constant 0 : index
    %c0_52 = arith.constant 0 : index
    %c0_53 = arith.constant 0 : index
    %221 = vector.load %arg9[%c0_51, %c0_52, %c0_53] : memref<2x8x128xbf16, #tpu.memory_space<vmem>>, vector<2x8x128xbf16>
    tpu.vector_store %arg9[%c0_51, %c0_52, %c0_53], %220 {strides = array<i32>} : memref<2x8x128xbf16, #tpu.memory_space<vmem>>, vector<2x8x128xbf16>,
    return
  }
  func.func @transform_0(%arg0: i32) -> (i32, i32, i32) {
    %c0_i32 = arith.constant 0 : i32
    %c0_i32_0 = arith.constant 0 : i32
    %c0_i32_1 = arith.constant 0 : i32
    return %arg0, %c0_i32, %c0_i32_0 : i32, i32, i32
  }
  func.func @transform_1(%arg0: i32) -> (i32, i32, i32) {
    %c0_i32 = arith.constant 0 : i32
    %c0_i32_0 = arith.constant 0 : i32
    %c0_i32_1 = arith.constant 0 : i32
    return %arg0, %c0_i32, %c0_i32_0 : i32, i32, i32
  }
  func.func @transform_2(%arg0: i32) -> (i32, i32) {
    %c0_i32 = arith.constant 0 : i32
    %c0_i32_0 = arith.constant 0 : i32
    %c0_i32_1 = arith.constant 0 : i32
    return %c0_i32, %c0_i32_0 : i32, i32
  }
  func.func @transform_3(%arg0: i32) -> (i32, i32) {
    %c0_i32 = arith.constant 0 : i32
    %c0_i32_0 = arith.constant 0 : i32
    %c0_i32_1 = arith.constant 0 : i32
    return %c0_i32, %c0_i32_0 : i32, i32
  }
  func.func @transform_4(%arg0: i32) -> (i32, i32) {
    %c0_i32 = arith.constant 0 : i32
    %c0_i32_0 = arith.constant 0 : i32
    %c0_i32_1 = arith.constant 0 : i32
    return %c0_i32, %c0_i32_0 : i32, i32
  }
  func.func @transform_5(%arg0: i32) -> (i32, i32) {
    %c0_i32 = arith.constant 0 : i32
    %c0_i32_0 = arith.constant 0 : i32
    %c0_i32_1 = arith.constant 0 : i32
    return %c0_i32, %c0_i32_0 : i32, i32
  }
  func.func @transform_6(%arg0: i32) -> (i32, i32) {
    %c0_i32 = arith.constant 0 : i32
    %c0_i32_0 = arith.constant 0 : i32
    %c0_i32_1 = arith.constant 0 : i32
    return %c0_i32, %c0_i32_0 : i32, i32
  }
  func.func @transform_7(%arg0: i32) -> (i32, i32) {
    %c0_i32 = arith.constant 0 : i32
    %c0_i32_0 = arith.constant 0 : i32
    %c0_i32_1 = arith.constant 0 : i32
    return %c0_i32, %c0_i32_0 : i32, i32
  }
  func.func @transform_8(%arg0: i32) -> (i32, i32, i32) {
    %c0_i32 = arith.constant 0 : i32
    %c0_i32_0 = arith.constant 0 : i32
    %c0_i32_1 = arith.constant 0 : i32
    return %arg0, %c0_i32, %c0_i32_0 : i32, i32, i32
  }
}

module attributes {stable_mosaic.version = 11 : i64} {
  func.func @_ffn_kernel(%arg0: i32, %arg1: memref<8x128xbf16, #tpu.memory_space<vmem>>, %arg2: memref<1x128xf32, #tpu.memory_space<vmem>>, %arg3: memref<1x128xf32, #tpu.memory_space<vmem>>, %arg4: memref<128x256xbf16, #tpu.memory_space<vmem>>, %arg5: memref<1x256xf32, #tpu.memory_space<vmem>>, %arg6: memref<256x128xbf16, #tpu.memory_space<vmem>>, %arg7: memref<1x128xf32, #tpu.memory_space<vmem>>, %arg8: memref<8x128xbf16, #tpu.memory_space<vmem>>) attributes {dimension_semantics = [#tpu.dimension_semantics<parallel>], iteration_bounds = array<i64: 2>, scalar_prefetch = 0 : i64, scratch_operands = 0 : i64, tpu.core_type = #tpu.core_type<tc>, window_params = [{transform_indices = @transform_0, window_bounds = array<i64: 8, 128>}, {pipeline_mode = #tpu.pipeline_mode<synchronous>, transform_indices = @transform_1, window_bounds = array<i64: 1, 128>}, {pipeline_mode = #tpu.pipeline_mode<synchronous>, transform_indices = @transform_2, window_bounds = array<i64: 1, 128>}, {pipeline_mode = #tpu.pipeline_mode<synchronous>, transform_indices = @transform_3, window_bounds = array<i64: 128, 256>}, {pipeline_mode = #tpu.pipeline_mode<synchronous>, transform_indices = @transform_4, window_bounds = array<i64: 1, 256>}, {pipeline_mode = #tpu.pipeline_mode<synchronous>, transform_indices = @transform_5, window_bounds = array<i64: 256, 128>}, {pipeline_mode = #tpu.pipeline_mode<synchronous>, transform_indices = @transform_6, window_bounds = array<i64: 1, 128>}, {transform_indices = @transform_7, window_bounds = array<i64: 8, 128>}]} {
    %c0 = arith.constant 0 : index
    %c0_0 = arith.constant 0 : index
    %0 = vector.load %arg1[%c0, %c0_0] : memref<8x128xbf16, #tpu.memory_space<vmem>>, vector<8x128xbf16>
    %1 = arith.extf %0 : vector<8x128xbf16> to vector<8x128xf32>
    %c0_1 = arith.constant 0 : index
    %c0_2 = arith.constant 0 : index
    %2 = vector.load %arg2[%c0_1, %c0_2] : memref<1x128xf32, #tpu.memory_space<vmem>>, vector<1x128xf32>
    %3 = vector.broadcast %2 : vector<1x128xf32> to vector<8x128xf32>
    %4 = arith.mulf %1, %3 : vector<8x128xf32>
    %c0_3 = arith.constant 0 : index
    %c0_4 = arith.constant 0 : index
    %5 = vector.load %arg3[%c0_3, %c0_4] : memref<1x128xf32, #tpu.memory_space<vmem>>, vector<1x128xf32>
    %6 = vector.broadcast %5 : vector<1x128xf32> to vector<8x128xf32>
    %7 = arith.addf %4, %6 : vector<8x128xf32>
    %8 = arith.truncf %7 : vector<8x128xf32> to vector<8x128xbf16>
    %c0_5 = arith.constant 0 : index
    %c0_6 = arith.constant 0 : index
    %9 = vector.load %arg4[%c0_5, %c0_6] : memref<128x256xbf16, #tpu.memory_space<vmem>>, vector<128x256xbf16>
    %cst = arith.constant dense<0.000000e+00> : vector<8x256xf32>
    %10 = tpu.matmul %8, %9, %cst {dimension_numbers = #tpu.dot_dimension_numbers<[1], [0], [0], [1], [0, 0, 1, 1], [], []>} : vector<8x128xbf16>, vector<128x256xbf16>, vector<8x256xf32> -> vector<8x256xf32>
    %c0_7 = arith.constant 0 : index
    %c0_8 = arith.constant 0 : index
    %11 = vector.load %arg5[%c0_7, %c0_8] : memref<1x256xf32, #tpu.memory_space<vmem>>, vector<1x256xf32>
    %12 = vector.broadcast %11 : vector<1x256xf32> to vector<8x256xf32>
    %13 = arith.addf %10, %12 : vector<8x256xf32>
    %cst_9 = arith.constant 5.000000e-01 : f32
    %14 = vector.broadcast %cst_9 : f32 to vector<8x256xf32>
    %15 = arith.mulf %14, %13 : vector<8x256xf32>
    %cst_10 = arith.constant 0.707106769 : f32
    %16 = vector.broadcast %cst_10 : f32 to vector<8x256xf32>
    %17 = arith.mulf %13, %16 : vector<8x256xf32>
    %18 = math.absf %17 : vector<8x256xf32>
    %cst_11 = arith.constant 0.327591091 : f32
    %19 = vector.broadcast %cst_11 : f32 to vector<8x256xf32>
    %20 = arith.mulf %19, %18 : vector<8x256xf32>
    %cst_12 = arith.constant 1.000000e+00 : f32
    %21 = vector.broadcast %cst_12 : f32 to vector<8x256xf32>
    %22 = arith.addf %21, %20 : vector<8x256xf32>
    %cst_13 = arith.constant 1.000000e+00 : f32
    %23 = vector.broadcast %cst_13 : f32 to vector<8x256xf32>
    %24 = arith.divf %23, %22 : vector<8x256xf32>
    %cst_14 = arith.constant 1.06140542 : f32
    %25 = vector.broadcast %cst_14 : f32 to vector<8x256xf32>
    %26 = arith.mulf %25, %24 : vector<8x256xf32>
    %cst_15 = arith.constant -1.45315206 : f32
    %27 = vector.broadcast %cst_15 : f32 to vector<8x256xf32>
    %28 = arith.addf %26, %27 : vector<8x256xf32>
    %29 = arith.mulf %28, %24 : vector<8x256xf32>
    %cst_16 = arith.constant 1.42141378 : f32
    %30 = vector.broadcast %cst_16 : f32 to vector<8x256xf32>
    %31 = arith.addf %29, %30 : vector<8x256xf32>
    %32 = arith.mulf %31, %24 : vector<8x256xf32>
    %cst_17 = arith.constant -0.284496725 : f32
    %33 = vector.broadcast %cst_17 : f32 to vector<8x256xf32>
    %34 = arith.addf %32, %33 : vector<8x256xf32>
    %35 = arith.mulf %34, %24 : vector<8x256xf32>
    %cst_18 = arith.constant 0.254829586 : f32
    %36 = vector.broadcast %cst_18 : f32 to vector<8x256xf32>
    %37 = arith.addf %35, %36 : vector<8x256xf32>
    %38 = arith.mulf %37, %24 : vector<8x256xf32>
    %cst_19 = arith.constant 0.000000e+00 : f32
    %39 = vector.broadcast %cst_19 : f32 to vector<8x256xf32>
    %40 = arith.subf %39, %18 : vector<8x256xf32>
    %41 = arith.mulf %40, %18 : vector<8x256xf32>
    %42 = math.exp %41 : vector<8x256xf32>
    %43 = arith.mulf %38, %42 : vector<8x256xf32>
    %cst_20 = arith.constant 1.000000e+00 : f32
    %44 = vector.broadcast %cst_20 : f32 to vector<8x256xf32>
    %45 = arith.subf %44, %43 : vector<8x256xf32>
    %cst_21 = arith.constant 0.000000e+00 : f32
    %46 = vector.broadcast %cst_21 : f32 to vector<8x256xf32>
    %47 = arith.cmpf olt, %17, %46 : vector<8x256xf32>
    %cst_22 = arith.constant 0.000000e+00 : f32
    %48 = vector.broadcast %cst_22 : f32 to vector<8x256xf32>
    %49 = arith.subf %48, %45 : vector<8x256xf32>
    %50 = arith.select %47, %49, %45 : vector<8x256xi1>, vector<8x256xf32>
    %cst_23 = arith.constant 1.000000e+00 : f32
    %51 = vector.broadcast %cst_23 : f32 to vector<8x256xf32>
    %52 = arith.addf %51, %50 : vector<8x256xf32>
    %53 = arith.mulf %15, %52 : vector<8x256xf32>
    %54 = arith.truncf %53 : vector<8x256xf32> to vector<8x256xbf16>
    %c0_24 = arith.constant 0 : index
    %c0_25 = arith.constant 0 : index
    %55 = vector.load %arg6[%c0_24, %c0_25] : memref<256x128xbf16, #tpu.memory_space<vmem>>, vector<256x128xbf16>
    %cst_26 = arith.constant dense<0.000000e+00> : vector<8x128xf32>
    %56 = tpu.matmul %54, %55, %cst_26 {dimension_numbers = #tpu.dot_dimension_numbers<[1], [0], [0], [1], [0, 0, 1, 1], [], []>} : vector<8x256xbf16>, vector<256x128xbf16>, vector<8x128xf32> -> vector<8x128xf32>
    %c0_27 = arith.constant 0 : index
    %c0_28 = arith.constant 0 : index
    %57 = vector.load %arg7[%c0_27, %c0_28] : memref<1x128xf32, #tpu.memory_space<vmem>>, vector<1x128xf32>
    %58 = vector.broadcast %57 : vector<1x128xf32> to vector<8x128xf32>
    %59 = arith.addf %56, %58 : vector<8x128xf32>
    %60 = arith.addf %7, %59 : vector<8x128xf32>
    %61 = arith.truncf %60 : vector<8x128xf32> to vector<8x128xbf16>
    %c0_29 = arith.constant 0 : index
    %c0_30 = arith.constant 0 : index
    %62 = vector.load %arg8[%c0_29, %c0_30] : memref<8x128xbf16, #tpu.memory_space<vmem>>, vector<8x128xbf16>
    tpu.vector_store %arg8[%c0_29, %c0_30], %61 {strides = array<i32>} : memref<8x128xbf16, #tpu.memory_space<vmem>>, vector<8x128xbf16>,
    return
  }
  func.func @transform_0(%arg0: i32) -> (i32, i32) {
    %c0_i32 = arith.constant 0 : i32
    %c0_i32_0 = arith.constant 0 : i32
    return %arg0, %c0_i32 : i32, i32
  }
  func.func @transform_1(%arg0: i32) -> (i32, i32) {
    %c0_i32 = arith.constant 0 : i32
    %c0_i32_0 = arith.constant 0 : i32
    %c0_i32_1 = arith.constant 0 : i32
    return %c0_i32, %c0_i32_0 : i32, i32
  }
  func.func @transform_2(%arg0: i32) -> (i32, i32) {
    %c0_i32 = arith.constant 0 : i32
    %c0_i32_0 = arith.constant 0 : i32
    %c0_i32_1 = arith.constant 0 : i32
    return %c0_i32, %c0_i32_0 : i32, i32
  }
  func.func @transform_3(%arg0: i32) -> (i32, i32) {
    %c0_i32 = arith.constant 0 : i32
    %c0_i32_0 = arith.constant 0 : i32
    %c0_i32_1 = arith.constant 0 : i32
    return %c0_i32, %c0_i32_0 : i32, i32
  }
  func.func @transform_4(%arg0: i32) -> (i32, i32) {
    %c0_i32 = arith.constant 0 : i32
    %c0_i32_0 = arith.constant 0 : i32
    %c0_i32_1 = arith.constant 0 : i32
    return %c0_i32, %c0_i32_0 : i32, i32
  }
  func.func @transform_5(%arg0: i32) -> (i32, i32) {
    %c0_i32 = arith.constant 0 : i32
    %c0_i32_0 = arith.constant 0 : i32
    %c0_i32_1 = arith.constant 0 : i32
    return %c0_i32, %c0_i32_0 : i32, i32
  }
  func.func @transform_6(%arg0: i32) -> (i32, i32) {
    %c0_i32 = arith.constant 0 : i32
    %c0_i32_0 = arith.constant 0 : i32
    %c0_i32_1 = arith.constant 0 : i32
    return %c0_i32, %c0_i32_0 : i32, i32
  }
  func.func @transform_7(%arg0: i32) -> (i32, i32) {
    %c0_i32 = arith.constant 0 : i32
    %c0_i32_0 = arith.constant 0 : i32
    return %arg0, %c0_i32 : i32, i32
  }
}

module attributes {stable_mosaic.version = 11 : i64} {
  func.func @_out_kernel(%arg0: i32, %arg1: memref<8x128xbf16, #tpu.memory_space<vmem>>, %arg2: memref<1x128xf32, #tpu.memory_space<vmem>>, %arg3: memref<1x128xf32, #tpu.memory_space<vmem>>, %arg4: memref<128x128xbf16, #tpu.memory_space<vmem>>, %arg5: memref<1x128xf32, #tpu.memory_space<vmem>>, %arg6: memref<8x128xf32, #tpu.memory_space<vmem>>) attributes {dimension_semantics = [#tpu.dimension_semantics<parallel>], iteration_bounds = array<i64: 2>, scalar_prefetch = 0 : i64, scratch_operands = 0 : i64, tpu.core_type = #tpu.core_type<tc>, window_params = [{transform_indices = @transform_0, window_bounds = array<i64: 8, 128>}, {pipeline_mode = #tpu.pipeline_mode<synchronous>, transform_indices = @transform_1, window_bounds = array<i64: 1, 128>}, {pipeline_mode = #tpu.pipeline_mode<synchronous>, transform_indices = @transform_2, window_bounds = array<i64: 1, 128>}, {pipeline_mode = #tpu.pipeline_mode<synchronous>, transform_indices = @transform_3, window_bounds = array<i64: 128, 128>}, {pipeline_mode = #tpu.pipeline_mode<synchronous>, transform_indices = @transform_4, window_bounds = array<i64: 1, 128>}, {transform_indices = @transform_5, window_bounds = array<i64: 8, 128>}]} {
    %c0 = arith.constant 0 : index
    %c0_0 = arith.constant 0 : index
    %0 = vector.load %arg1[%c0, %c0_0] : memref<8x128xbf16, #tpu.memory_space<vmem>>, vector<8x128xbf16>
    %1 = arith.extf %0 : vector<8x128xbf16> to vector<8x128xf32>
    %c0_1 = arith.constant 0 : index
    %c0_2 = arith.constant 0 : index
    %2 = vector.load %arg2[%c0_1, %c0_2] : memref<1x128xf32, #tpu.memory_space<vmem>>, vector<1x128xf32>
    %3 = vector.broadcast %2 : vector<1x128xf32> to vector<8x128xf32>
    %4 = arith.mulf %1, %3 : vector<8x128xf32>
    %c0_3 = arith.constant 0 : index
    %c0_4 = arith.constant 0 : index
    %5 = vector.load %arg3[%c0_3, %c0_4] : memref<1x128xf32, #tpu.memory_space<vmem>>, vector<1x128xf32>
    %6 = vector.broadcast %5 : vector<1x128xf32> to vector<8x128xf32>
    %7 = arith.addf %4, %6 : vector<8x128xf32>
    %cst = arith.constant 5.000000e-01 : f32
    %8 = vector.broadcast %cst : f32 to vector<8x128xf32>
    %9 = arith.mulf %8, %7 : vector<8x128xf32>
    %cst_5 = arith.constant 0.707106769 : f32
    %10 = vector.broadcast %cst_5 : f32 to vector<8x128xf32>
    %11 = arith.mulf %7, %10 : vector<8x128xf32>
    %12 = math.absf %11 : vector<8x128xf32>
    %cst_6 = arith.constant 0.327591091 : f32
    %13 = vector.broadcast %cst_6 : f32 to vector<8x128xf32>
    %14 = arith.mulf %13, %12 : vector<8x128xf32>
    %cst_7 = arith.constant 1.000000e+00 : f32
    %15 = vector.broadcast %cst_7 : f32 to vector<8x128xf32>
    %16 = arith.addf %15, %14 : vector<8x128xf32>
    %cst_8 = arith.constant 1.000000e+00 : f32
    %17 = vector.broadcast %cst_8 : f32 to vector<8x128xf32>
    %18 = arith.divf %17, %16 : vector<8x128xf32>
    %cst_9 = arith.constant 1.06140542 : f32
    %19 = vector.broadcast %cst_9 : f32 to vector<8x128xf32>
    %20 = arith.mulf %19, %18 : vector<8x128xf32>
    %cst_10 = arith.constant -1.45315206 : f32
    %21 = vector.broadcast %cst_10 : f32 to vector<8x128xf32>
    %22 = arith.addf %20, %21 : vector<8x128xf32>
    %23 = arith.mulf %22, %18 : vector<8x128xf32>
    %cst_11 = arith.constant 1.42141378 : f32
    %24 = vector.broadcast %cst_11 : f32 to vector<8x128xf32>
    %25 = arith.addf %23, %24 : vector<8x128xf32>
    %26 = arith.mulf %25, %18 : vector<8x128xf32>
    %cst_12 = arith.constant -0.284496725 : f32
    %27 = vector.broadcast %cst_12 : f32 to vector<8x128xf32>
    %28 = arith.addf %26, %27 : vector<8x128xf32>
    %29 = arith.mulf %28, %18 : vector<8x128xf32>
    %cst_13 = arith.constant 0.254829586 : f32
    %30 = vector.broadcast %cst_13 : f32 to vector<8x128xf32>
    %31 = arith.addf %29, %30 : vector<8x128xf32>
    %32 = arith.mulf %31, %18 : vector<8x128xf32>
    %cst_14 = arith.constant 0.000000e+00 : f32
    %33 = vector.broadcast %cst_14 : f32 to vector<8x128xf32>
    %34 = arith.subf %33, %12 : vector<8x128xf32>
    %35 = arith.mulf %34, %12 : vector<8x128xf32>
    %36 = math.exp %35 : vector<8x128xf32>
    %37 = arith.mulf %32, %36 : vector<8x128xf32>
    %cst_15 = arith.constant 1.000000e+00 : f32
    %38 = vector.broadcast %cst_15 : f32 to vector<8x128xf32>
    %39 = arith.subf %38, %37 : vector<8x128xf32>
    %cst_16 = arith.constant 0.000000e+00 : f32
    %40 = vector.broadcast %cst_16 : f32 to vector<8x128xf32>
    %41 = arith.cmpf olt, %11, %40 : vector<8x128xf32>
    %cst_17 = arith.constant 0.000000e+00 : f32
    %42 = vector.broadcast %cst_17 : f32 to vector<8x128xf32>
    %43 = arith.subf %42, %39 : vector<8x128xf32>
    %44 = arith.select %41, %43, %39 : vector<8x128xi1>, vector<8x128xf32>
    %cst_18 = arith.constant 1.000000e+00 : f32
    %45 = vector.broadcast %cst_18 : f32 to vector<8x128xf32>
    %46 = arith.addf %45, %44 : vector<8x128xf32>
    %47 = arith.mulf %9, %46 : vector<8x128xf32>
    %48 = arith.truncf %47 : vector<8x128xf32> to vector<8x128xbf16>
    %c0_19 = arith.constant 0 : index
    %c0_20 = arith.constant 0 : index
    %49 = vector.load %arg4[%c0_19, %c0_20] : memref<128x128xbf16, #tpu.memory_space<vmem>>, vector<128x128xbf16>
    %cst_21 = arith.constant dense<0.000000e+00> : vector<8x128xf32>
    %50 = tpu.matmul %48, %49, %cst_21 {dimension_numbers = #tpu.dot_dimension_numbers<[1], [0], [0], [1], [0, 0, 1, 1], [], []>} : vector<8x128xbf16>, vector<128x128xbf16>, vector<8x128xf32> -> vector<8x128xf32>
    %c0_22 = arith.constant 0 : index
    %c0_23 = arith.constant 0 : index
    %51 = vector.load %arg5[%c0_22, %c0_23] : memref<1x128xf32, #tpu.memory_space<vmem>>, vector<1x128xf32>
    %52 = vector.broadcast %51 : vector<1x128xf32> to vector<8x128xf32>
    %53 = arith.addf %50, %52 : vector<8x128xf32>
    %c0_24 = arith.constant 0 : index
    %c0_25 = arith.constant 0 : index
    %54 = vector.load %arg6[%c0_24, %c0_25] : memref<8x128xf32, #tpu.memory_space<vmem>>, vector<8x128xf32>
    tpu.vector_store %arg6[%c0_24, %c0_25], %53 {strides = array<i32>} : memref<8x128xf32, #tpu.memory_space<vmem>>, vector<8x128xf32>,
    return
  }
  func.func @transform_0(%arg0: i32) -> (i32, i32) {
    %c0_i32 = arith.constant 0 : i32
    %c0_i32_0 = arith.constant 0 : i32
    return %arg0, %c0_i32 : i32, i32
  }
  func.func @transform_1(%arg0: i32) -> (i32, i32) {
    %c0_i32 = arith.constant 0 : i32
    %c0_i32_0 = arith.constant 0 : i32
    %c0_i32_1 = arith.constant 0 : i32
    return %c0_i32, %c0_i32_0 : i32, i32
  }
  func.func @transform_2(%arg0: i32) -> (i32, i32) {
    %c0_i32 = arith.constant 0 : i32
    %c0_i32_0 = arith.constant 0 : i32
    %c0_i32_1 = arith.constant 0 : i32
    return %c0_i32, %c0_i32_0 : i32, i32
  }
  func.func @transform_3(%arg0: i32) -> (i32, i32) {
    %c0_i32 = arith.constant 0 : i32
    %c0_i32_0 = arith.constant 0 : i32
    %c0_i32_1 = arith.constant 0 : i32
    return %c0_i32, %c0_i32_0 : i32, i32
  }
  func.func @transform_4(%arg0: i32) -> (i32, i32) {
    %c0_i32 = arith.constant 0 : i32
    %c0_i32_0 = arith.constant 0 : i32
    %c0_i32_1 = arith.constant 0 : i32
    return %c0_i32, %c0_i32_0 : i32, i32
  }
  func.func @transform_5(%arg0: i32) -> (i32, i32) {
    %c0_i32 = arith.constant 0 : i32
    %c0_i32_0 = arith.constant 0 : i32
    return %arg0, %c0_i32 : i32, i32
  }
}

module attributes {stable_mosaic.version = 11 : i64} {
  func.func @_attn_mid_kernel(%arg0: i32, %arg1: memref<2x8x128xbf16, #tpu.memory_space<vmem>>, %arg2: memref<2x1x8xf32, #tpu.memory_space<vmem>>, %arg3: memref<1x128xf32, #tpu.memory_space<vmem>>, %arg4: memref<1x128xf32, #tpu.memory_space<vmem>>, %arg5: memref<128x384xbf16, #tpu.memory_space<vmem>>, %arg6: memref<1x384xf32, #tpu.memory_space<vmem>>, %arg7: memref<128x128xbf16, #tpu.memory_space<vmem>>, %arg8: memref<1x128xf32, #tpu.memory_space<vmem>>, %arg9: memref<2x8x128xbf16, #tpu.memory_space<vmem>>) attributes {dimension_semantics = [#tpu.dimension_semantics<parallel>], iteration_bounds = array<i64: 1>, scalar_prefetch = 0 : i64, scratch_operands = 0 : i64, tpu.core_type = #tpu.core_type<tc>, window_params = [{transform_indices = @transform_0, window_bounds = array<i64: 2, 8, 128>}, {transform_indices = @transform_1, window_bounds = array<i64: 2, 1, 8>}, {pipeline_mode = #tpu.pipeline_mode<synchronous>, transform_indices = @transform_2, window_bounds = array<i64: 1, 128>}, {pipeline_mode = #tpu.pipeline_mode<synchronous>, transform_indices = @transform_3, window_bounds = array<i64: 1, 128>}, {pipeline_mode = #tpu.pipeline_mode<synchronous>, transform_indices = @transform_4, window_bounds = array<i64: 128, 384>}, {pipeline_mode = #tpu.pipeline_mode<synchronous>, transform_indices = @transform_5, window_bounds = array<i64: 1, 384>}, {pipeline_mode = #tpu.pipeline_mode<synchronous>, transform_indices = @transform_6, window_bounds = array<i64: 128, 128>}, {pipeline_mode = #tpu.pipeline_mode<synchronous>, transform_indices = @transform_7, window_bounds = array<i64: 1, 128>}, {transform_indices = @transform_8, window_bounds = array<i64: 2, 8, 128>}]} {
    %c0 = arith.constant 0 : index
    %c0_0 = arith.constant 0 : index
    %c0_1 = arith.constant 0 : index
    %0 = vector.load %arg1[%c0, %c0_0, %c0_1] : memref<2x8x128xbf16, #tpu.memory_space<vmem>>, vector<2x8x128xbf16>
    %1 = arith.extf %0 : vector<2x8x128xbf16> to vector<2x8x128xf32>
    %c0_2 = arith.constant 0 : index
    %c0_3 = arith.constant 0 : index
    %2 = vector.load %arg3[%c0_2, %c0_3] : memref<1x128xf32, #tpu.memory_space<vmem>>, vector<1x128xf32>
    %3 = vector.shape_cast %2 : vector<1x128xf32> to vector<1x1x128xf32>
    %4 = vector.broadcast %3 : vector<1x1x128xf32> to vector<2x8x128xf32>
    %5 = arith.mulf %1, %4 : vector<2x8x128xf32>
    %c0_4 = arith.constant 0 : index
    %c0_5 = arith.constant 0 : index
    %6 = vector.load %arg4[%c0_4, %c0_5] : memref<1x128xf32, #tpu.memory_space<vmem>>, vector<1x128xf32>
    %7 = vector.shape_cast %6 : vector<1x128xf32> to vector<1x1x128xf32>
    %8 = vector.broadcast %7 : vector<1x1x128xf32> to vector<2x8x128xf32>
    %9 = arith.addf %5, %8 : vector<2x8x128xf32>
    %c0_6 = arith.constant 0 : index
    %c0_7 = arith.constant 0 : index
    %c0_8 = arith.constant 0 : index
    %10 = vector.load %arg2[%c0_6, %c0_7, %c0_8] : memref<2x1x8xf32, #tpu.memory_space<vmem>>, vector<2x1x8xf32>
    %c0_9 = arith.constant 0 : index
    %c0_10 = arith.constant 0 : index
    %11 = vector.load %arg5[%c0_9, %c0_10] : memref<128x384xbf16, #tpu.memory_space<vmem>>, vector<128x384xbf16>
    %c0_11 = arith.constant 0 : index
    %c0_12 = arith.constant 0 : index
    %12 = vector.load %arg6[%c0_11, %c0_12] : memref<1x384xf32, #tpu.memory_space<vmem>>, vector<1x384xf32>
    %c0_13 = arith.constant 0 : index
    %c0_14 = arith.constant 0 : index
    %13 = vector.load %arg7[%c0_13, %c0_14] : memref<128x128xbf16, #tpu.memory_space<vmem>>, vector<128x128xbf16>
    %c0_15 = arith.constant 0 : index
    %c0_16 = arith.constant 0 : index
    %14 = vector.load %arg8[%c0_15, %c0_16] : memref<1x128xf32, #tpu.memory_space<vmem>>, vector<1x128xf32>
    %15 = vector.shape_cast %9 : vector<2x8x128xf32> to vector<16x128xf32>
    %16 = arith.truncf %15 : vector<16x128xf32> to vector<16x128xbf16>
    %cst = arith.constant dense<0.000000e+00> : vector<16x384xf32>
    %17 = tpu.matmul %16, %11, %cst {dimension_numbers = #tpu.dot_dimension_numbers<[1], [0], [0], [1], [0, 0, 1, 1], [], []>} : vector<16x128xbf16>, vector<128x384xbf16>, vector<16x384xf32> -> vector<16x384xf32>
    %18 = vector.broadcast %12 : vector<1x384xf32> to vector<16x384xf32>
    %19 = arith.addf %17, %18 : vector<16x384xf32>
    %20 = vector.extract_strided_slice %19 {offsets = [0, 0], sizes = [16, 16], strides = [1, 1]} : vector<16x384xf32> to vector<16x16xf32>
    %21 = vector.shape_cast %20 : vector<16x16xf32> to vector<2x8x16xf32>
    %22 = arith.truncf %21 : vector<2x8x16xf32> to vector<2x8x16xbf16>
    %23 = vector.extract_strided_slice %19 {offsets = [0, 128], sizes = [16, 16], strides = [1, 1]} : vector<16x384xf32> to vector<16x16xf32>
    %24 = vector.shape_cast %23 : vector<16x16xf32> to vector<2x8x16xf32>
    %25 = arith.truncf %24 : vector<2x8x16xf32> to vector<2x8x16xbf16>
    %26 = vector.extract_strided_slice %19 {offsets = [0, 256], sizes = [16, 16], strides = [1, 1]} : vector<16x384xf32> to vector<16x16xf32>
    %27 = vector.shape_cast %26 : vector<16x16xf32> to vector<2x8x16xf32>
    %28 = arith.truncf %27 : vector<2x8x16xf32> to vector<2x8x16xbf16>
    "tpu.trace_start"() <{level = 10 : i32, message = "bqd,bkd->bqk"}> : () -> ()
    %cst_17 = arith.constant dense<0.000000e+00> : vector<2x8x8xf32>
    %29 = tpu.matmul %22, %25, %cst_17 {dimension_numbers = #tpu.dot_dimension_numbers<[2], [2], [1], [1], [0, 0, 0, 1, 1, 1], [0], [0]>} : vector<2x8x16xbf16>, vector<2x8x16xbf16>, vector<2x8x8xf32> -> vector<2x8x8xf32>
    "tpu.trace_stop"() : () -> ()
    %30 = vector.broadcast %10 : vector<2x1x8xf32> to vector<2x8x8xf32>
    %31 = arith.addf %29, %30 : vector<2x8x8xf32>
    %cst_18 = arith.constant dense<0xFF800000> : vector<2x8xf32>
    %32 = vector.multi_reduction <maximumf>, %31, %cst_18 [2] : vector<2x8x8xf32> to vector<2x8xf32>
    %33 = vector.shape_cast %32 : vector<2x8xf32> to vector<2x8x1xf32>
    %34 = vector.broadcast %33 : vector<2x8x1xf32> to vector<2x8x8xf32>
    %35 = arith.subf %31, %34 : vector<2x8x8xf32>
    %36 = math.exp %35 : vector<2x8x8xf32>
    %cst_19 = arith.constant dense<0.000000e+00> : vector<2x8xf32>
    %37 = vector.multi_reduction <add>, %36, %cst_19 [2] : vector<2x8x8xf32> to vector<2x8xf32>
    %38 = vector.shape_cast %37 : vector<2x8xf32> to vector<2x8x1xf32>
    %39 = tpu.reciprocal %38 {approx = true} : vector<2x8x1xf32> -> vector<2x8x1xf32>
    %40 = vector.broadcast %39 : vector<2x8x1xf32> to vector<2x8x8xf32>
    %41 = arith.mulf %36, %40 : vector<2x8x8xf32>
    %42 = arith.truncf %41 : vector<2x8x8xf32> to vector<2x8x8xbf16>
    "tpu.trace_start"() <{level = 10 : i32, message = "bqk,bkd->bqd"}> : () -> ()
    %cst_20 = arith.constant dense<0.000000e+00> : vector<2x8x16xf32>
    %43 = tpu.matmul %42, %28, %cst_20 {dimension_numbers = #tpu.dot_dimension_numbers<[2], [1], [1], [2], [0, 0, 0, 1, 1, 2], [0], [0]>} : vector<2x8x8xbf16>, vector<2x8x16xbf16>, vector<2x8x16xf32> -> vector<2x8x16xf32>
    "tpu.trace_stop"() : () -> ()
    %44 = vector.extract_strided_slice %19 {offsets = [0, 16], sizes = [16, 16], strides = [1, 1]} : vector<16x384xf32> to vector<16x16xf32>
    %45 = vector.shape_cast %44 : vector<16x16xf32> to vector<2x8x16xf32>
    %46 = arith.truncf %45 : vector<2x8x16xf32> to vector<2x8x16xbf16>
    %47 = vector.extract_strided_slice %19 {offsets = [0, 144], sizes = [16, 16], strides = [1, 1]} : vector<16x384xf32> to vector<16x16xf32>
    %48 = vector.shape_cast %47 : vector<16x16xf32> to vector<2x8x16xf32>
    %49 = arith.truncf %48 : vector<2x8x16xf32> to vector<2x8x16xbf16>
    %50 = vector.extract_strided_slice %19 {offsets = [0, 272], sizes = [16, 16], strides = [1, 1]} : vector<16x384xf32> to vector<16x16xf32>
    %51 = vector.shape_cast %50 : vector<16x16xf32> to vector<2x8x16xf32>
    %52 = arith.truncf %51 : vector<2x8x16xf32> to vector<2x8x16xbf16>
    "tpu.trace_start"() <{level = 10 : i32, message = "bqd,bkd->bqk"}> : () -> ()
    %cst_21 = arith.constant dense<0.000000e+00> : vector<2x8x8xf32>
    %53 = tpu.matmul %46, %49, %cst_21 {dimension_numbers = #tpu.dot_dimension_numbers<[2], [2], [1], [1], [0, 0, 0, 1, 1, 1], [0], [0]>} : vector<2x8x16xbf16>, vector<2x8x16xbf16>, vector<2x8x8xf32> -> vector<2x8x8xf32>
    "tpu.trace_stop"() : () -> ()
    %54 = vector.broadcast %10 : vector<2x1x8xf32> to vector<2x8x8xf32>
    %55 = arith.addf %53, %54 : vector<2x8x8xf32>
    %cst_22 = arith.constant dense<0xFF800000> : vector<2x8xf32>
    %56 = vector.multi_reduction <maximumf>, %55, %cst_22 [2] : vector<2x8x8xf32> to vector<2x8xf32>
    %57 = vector.shape_cast %56 : vector<2x8xf32> to vector<2x8x1xf32>
    %58 = vector.broadcast %57 : vector<2x8x1xf32> to vector<2x8x8xf32>
    %59 = arith.subf %55, %58 : vector<2x8x8xf32>
    %60 = math.exp %59 : vector<2x8x8xf32>
    %cst_23 = arith.constant dense<0.000000e+00> : vector<2x8xf32>
    %61 = vector.multi_reduction <add>, %60, %cst_23 [2] : vector<2x8x8xf32> to vector<2x8xf32>
    %62 = vector.shape_cast %61 : vector<2x8xf32> to vector<2x8x1xf32>
    %63 = tpu.reciprocal %62 {approx = true} : vector<2x8x1xf32> -> vector<2x8x1xf32>
    %64 = vector.broadcast %63 : vector<2x8x1xf32> to vector<2x8x8xf32>
    %65 = arith.mulf %60, %64 : vector<2x8x8xf32>
    %66 = arith.truncf %65 : vector<2x8x8xf32> to vector<2x8x8xbf16>
    "tpu.trace_start"() <{level = 10 : i32, message = "bqk,bkd->bqd"}> : () -> ()
    %cst_24 = arith.constant dense<0.000000e+00> : vector<2x8x16xf32>
    %67 = tpu.matmul %66, %52, %cst_24 {dimension_numbers = #tpu.dot_dimension_numbers<[2], [1], [1], [2], [0, 0, 0, 1, 1, 2], [0], [0]>} : vector<2x8x8xbf16>, vector<2x8x16xbf16>, vector<2x8x16xf32> -> vector<2x8x16xf32>
    "tpu.trace_stop"() : () -> ()
    %68 = vector.extract_strided_slice %19 {offsets = [0, 32], sizes = [16, 16], strides = [1, 1]} : vector<16x384xf32> to vector<16x16xf32>
    %69 = vector.shape_cast %68 : vector<16x16xf32> to vector<2x8x16xf32>
    %70 = arith.truncf %69 : vector<2x8x16xf32> to vector<2x8x16xbf16>
    %71 = vector.extract_strided_slice %19 {offsets = [0, 160], sizes = [16, 16], strides = [1, 1]} : vector<16x384xf32> to vector<16x16xf32>
    %72 = vector.shape_cast %71 : vector<16x16xf32> to vector<2x8x16xf32>
    %73 = arith.truncf %72 : vector<2x8x16xf32> to vector<2x8x16xbf16>
    %74 = vector.extract_strided_slice %19 {offsets = [0, 288], sizes = [16, 16], strides = [1, 1]} : vector<16x384xf32> to vector<16x16xf32>
    %75 = vector.shape_cast %74 : vector<16x16xf32> to vector<2x8x16xf32>
    %76 = arith.truncf %75 : vector<2x8x16xf32> to vector<2x8x16xbf16>
    "tpu.trace_start"() <{level = 10 : i32, message = "bqd,bkd->bqk"}> : () -> ()
    %cst_25 = arith.constant dense<0.000000e+00> : vector<2x8x8xf32>
    %77 = tpu.matmul %70, %73, %cst_25 {dimension_numbers = #tpu.dot_dimension_numbers<[2], [2], [1], [1], [0, 0, 0, 1, 1, 1], [0], [0]>} : vector<2x8x16xbf16>, vector<2x8x16xbf16>, vector<2x8x8xf32> -> vector<2x8x8xf32>
    "tpu.trace_stop"() : () -> ()
    %78 = vector.broadcast %10 : vector<2x1x8xf32> to vector<2x8x8xf32>
    %79 = arith.addf %77, %78 : vector<2x8x8xf32>
    %cst_26 = arith.constant dense<0xFF800000> : vector<2x8xf32>
    %80 = vector.multi_reduction <maximumf>, %79, %cst_26 [2] : vector<2x8x8xf32> to vector<2x8xf32>
    %81 = vector.shape_cast %80 : vector<2x8xf32> to vector<2x8x1xf32>
    %82 = vector.broadcast %81 : vector<2x8x1xf32> to vector<2x8x8xf32>
    %83 = arith.subf %79, %82 : vector<2x8x8xf32>
    %84 = math.exp %83 : vector<2x8x8xf32>
    %cst_27 = arith.constant dense<0.000000e+00> : vector<2x8xf32>
    %85 = vector.multi_reduction <add>, %84, %cst_27 [2] : vector<2x8x8xf32> to vector<2x8xf32>
    %86 = vector.shape_cast %85 : vector<2x8xf32> to vector<2x8x1xf32>
    %87 = tpu.reciprocal %86 {approx = true} : vector<2x8x1xf32> -> vector<2x8x1xf32>
    %88 = vector.broadcast %87 : vector<2x8x1xf32> to vector<2x8x8xf32>
    %89 = arith.mulf %84, %88 : vector<2x8x8xf32>
    %90 = arith.truncf %89 : vector<2x8x8xf32> to vector<2x8x8xbf16>
    "tpu.trace_start"() <{level = 10 : i32, message = "bqk,bkd->bqd"}> : () -> ()
    %cst_28 = arith.constant dense<0.000000e+00> : vector<2x8x16xf32>
    %91 = tpu.matmul %90, %76, %cst_28 {dimension_numbers = #tpu.dot_dimension_numbers<[2], [1], [1], [2], [0, 0, 0, 1, 1, 2], [0], [0]>} : vector<2x8x8xbf16>, vector<2x8x16xbf16>, vector<2x8x16xf32> -> vector<2x8x16xf32>
    "tpu.trace_stop"() : () -> ()
    %92 = vector.extract_strided_slice %19 {offsets = [0, 48], sizes = [16, 16], strides = [1, 1]} : vector<16x384xf32> to vector<16x16xf32>
    %93 = vector.shape_cast %92 : vector<16x16xf32> to vector<2x8x16xf32>
    %94 = arith.truncf %93 : vector<2x8x16xf32> to vector<2x8x16xbf16>
    %95 = vector.extract_strided_slice %19 {offsets = [0, 176], sizes = [16, 16], strides = [1, 1]} : vector<16x384xf32> to vector<16x16xf32>
    %96 = vector.shape_cast %95 : vector<16x16xf32> to vector<2x8x16xf32>
    %97 = arith.truncf %96 : vector<2x8x16xf32> to vector<2x8x16xbf16>
    %98 = vector.extract_strided_slice %19 {offsets = [0, 304], sizes = [16, 16], strides = [1, 1]} : vector<16x384xf32> to vector<16x16xf32>
    %99 = vector.shape_cast %98 : vector<16x16xf32> to vector<2x8x16xf32>
    %100 = arith.truncf %99 : vector<2x8x16xf32> to vector<2x8x16xbf16>
    "tpu.trace_start"() <{level = 10 : i32, message = "bqd,bkd->bqk"}> : () -> ()
    %cst_29 = arith.constant dense<0.000000e+00> : vector<2x8x8xf32>
    %101 = tpu.matmul %94, %97, %cst_29 {dimension_numbers = #tpu.dot_dimension_numbers<[2], [2], [1], [1], [0, 0, 0, 1, 1, 1], [0], [0]>} : vector<2x8x16xbf16>, vector<2x8x16xbf16>, vector<2x8x8xf32> -> vector<2x8x8xf32>
    "tpu.trace_stop"() : () -> ()
    %102 = vector.broadcast %10 : vector<2x1x8xf32> to vector<2x8x8xf32>
    %103 = arith.addf %101, %102 : vector<2x8x8xf32>
    %cst_30 = arith.constant dense<0xFF800000> : vector<2x8xf32>
    %104 = vector.multi_reduction <maximumf>, %103, %cst_30 [2] : vector<2x8x8xf32> to vector<2x8xf32>
    %105 = vector.shape_cast %104 : vector<2x8xf32> to vector<2x8x1xf32>
    %106 = vector.broadcast %105 : vector<2x8x1xf32> to vector<2x8x8xf32>
    %107 = arith.subf %103, %106 : vector<2x8x8xf32>
    %108 = math.exp %107 : vector<2x8x8xf32>
    %cst_31 = arith.constant dense<0.000000e+00> : vector<2x8xf32>
    %109 = vector.multi_reduction <add>, %108, %cst_31 [2] : vector<2x8x8xf32> to vector<2x8xf32>
    %110 = vector.shape_cast %109 : vector<2x8xf32> to vector<2x8x1xf32>
    %111 = tpu.reciprocal %110 {approx = true} : vector<2x8x1xf32> -> vector<2x8x1xf32>
    %112 = vector.broadcast %111 : vector<2x8x1xf32> to vector<2x8x8xf32>
    %113 = arith.mulf %108, %112 : vector<2x8x8xf32>
    %114 = arith.truncf %113 : vector<2x8x8xf32> to vector<2x8x8xbf16>
    "tpu.trace_start"() <{level = 10 : i32, message = "bqk,bkd->bqd"}> : () -> ()
    %cst_32 = arith.constant dense<0.000000e+00> : vector<2x8x16xf32>
    %115 = tpu.matmul %114, %100, %cst_32 {dimension_numbers = #tpu.dot_dimension_numbers<[2], [1], [1], [2], [0, 0, 0, 1, 1, 2], [0], [0]>} : vector<2x8x8xbf16>, vector<2x8x16xbf16>, vector<2x8x16xf32> -> vector<2x8x16xf32>
    "tpu.trace_stop"() : () -> ()
    %116 = vector.extract_strided_slice %19 {offsets = [0, 64], sizes = [16, 16], strides = [1, 1]} : vector<16x384xf32> to vector<16x16xf32>
    %117 = vector.shape_cast %116 : vector<16x16xf32> to vector<2x8x16xf32>
    %118 = arith.truncf %117 : vector<2x8x16xf32> to vector<2x8x16xbf16>
    %119 = vector.extract_strided_slice %19 {offsets = [0, 192], sizes = [16, 16], strides = [1, 1]} : vector<16x384xf32> to vector<16x16xf32>
    %120 = vector.shape_cast %119 : vector<16x16xf32> to vector<2x8x16xf32>
    %121 = arith.truncf %120 : vector<2x8x16xf32> to vector<2x8x16xbf16>
    %122 = vector.extract_strided_slice %19 {offsets = [0, 320], sizes = [16, 16], strides = [1, 1]} : vector<16x384xf32> to vector<16x16xf32>
    %123 = vector.shape_cast %122 : vector<16x16xf32> to vector<2x8x16xf32>
    %124 = arith.truncf %123 : vector<2x8x16xf32> to vector<2x8x16xbf16>
    "tpu.trace_start"() <{level = 10 : i32, message = "bqd,bkd->bqk"}> : () -> ()
    %cst_33 = arith.constant dense<0.000000e+00> : vector<2x8x8xf32>
    %125 = tpu.matmul %118, %121, %cst_33 {dimension_numbers = #tpu.dot_dimension_numbers<[2], [2], [1], [1], [0, 0, 0, 1, 1, 1], [0], [0]>} : vector<2x8x16xbf16>, vector<2x8x16xbf16>, vector<2x8x8xf32> -> vector<2x8x8xf32>
    "tpu.trace_stop"() : () -> ()
    %126 = vector.broadcast %10 : vector<2x1x8xf32> to vector<2x8x8xf32>
    %127 = arith.addf %125, %126 : vector<2x8x8xf32>
    %cst_34 = arith.constant dense<0xFF800000> : vector<2x8xf32>
    %128 = vector.multi_reduction <maximumf>, %127, %cst_34 [2] : vector<2x8x8xf32> to vector<2x8xf32>
    %129 = vector.shape_cast %128 : vector<2x8xf32> to vector<2x8x1xf32>
    %130 = vector.broadcast %129 : vector<2x8x1xf32> to vector<2x8x8xf32>
    %131 = arith.subf %127, %130 : vector<2x8x8xf32>
    %132 = math.exp %131 : vector<2x8x8xf32>
    %cst_35 = arith.constant dense<0.000000e+00> : vector<2x8xf32>
    %133 = vector.multi_reduction <add>, %132, %cst_35 [2] : vector<2x8x8xf32> to vector<2x8xf32>
    %134 = vector.shape_cast %133 : vector<2x8xf32> to vector<2x8x1xf32>
    %135 = tpu.reciprocal %134 {approx = true} : vector<2x8x1xf32> -> vector<2x8x1xf32>
    %136 = vector.broadcast %135 : vector<2x8x1xf32> to vector<2x8x8xf32>
    %137 = arith.mulf %132, %136 : vector<2x8x8xf32>
    %138 = arith.truncf %137 : vector<2x8x8xf32> to vector<2x8x8xbf16>
    "tpu.trace_start"() <{level = 10 : i32, message = "bqk,bkd->bqd"}> : () -> ()
    %cst_36 = arith.constant dense<0.000000e+00> : vector<2x8x16xf32>
    %139 = tpu.matmul %138, %124, %cst_36 {dimension_numbers = #tpu.dot_dimension_numbers<[2], [1], [1], [2], [0, 0, 0, 1, 1, 2], [0], [0]>} : vector<2x8x8xbf16>, vector<2x8x16xbf16>, vector<2x8x16xf32> -> vector<2x8x16xf32>
    "tpu.trace_stop"() : () -> ()
    %140 = vector.extract_strided_slice %19 {offsets = [0, 80], sizes = [16, 16], strides = [1, 1]} : vector<16x384xf32> to vector<16x16xf32>
    %141 = vector.shape_cast %140 : vector<16x16xf32> to vector<2x8x16xf32>
    %142 = arith.truncf %141 : vector<2x8x16xf32> to vector<2x8x16xbf16>
    %143 = vector.extract_strided_slice %19 {offsets = [0, 208], sizes = [16, 16], strides = [1, 1]} : vector<16x384xf32> to vector<16x16xf32>
    %144 = vector.shape_cast %143 : vector<16x16xf32> to vector<2x8x16xf32>
    %145 = arith.truncf %144 : vector<2x8x16xf32> to vector<2x8x16xbf16>
    %146 = vector.extract_strided_slice %19 {offsets = [0, 336], sizes = [16, 16], strides = [1, 1]} : vector<16x384xf32> to vector<16x16xf32>
    %147 = vector.shape_cast %146 : vector<16x16xf32> to vector<2x8x16xf32>
    %148 = arith.truncf %147 : vector<2x8x16xf32> to vector<2x8x16xbf16>
    "tpu.trace_start"() <{level = 10 : i32, message = "bqd,bkd->bqk"}> : () -> ()
    %cst_37 = arith.constant dense<0.000000e+00> : vector<2x8x8xf32>
    %149 = tpu.matmul %142, %145, %cst_37 {dimension_numbers = #tpu.dot_dimension_numbers<[2], [2], [1], [1], [0, 0, 0, 1, 1, 1], [0], [0]>} : vector<2x8x16xbf16>, vector<2x8x16xbf16>, vector<2x8x8xf32> -> vector<2x8x8xf32>
    "tpu.trace_stop"() : () -> ()
    %150 = vector.broadcast %10 : vector<2x1x8xf32> to vector<2x8x8xf32>
    %151 = arith.addf %149, %150 : vector<2x8x8xf32>
    %cst_38 = arith.constant dense<0xFF800000> : vector<2x8xf32>
    %152 = vector.multi_reduction <maximumf>, %151, %cst_38 [2] : vector<2x8x8xf32> to vector<2x8xf32>
    %153 = vector.shape_cast %152 : vector<2x8xf32> to vector<2x8x1xf32>
    %154 = vector.broadcast %153 : vector<2x8x1xf32> to vector<2x8x8xf32>
    %155 = arith.subf %151, %154 : vector<2x8x8xf32>
    %156 = math.exp %155 : vector<2x8x8xf32>
    %cst_39 = arith.constant dense<0.000000e+00> : vector<2x8xf32>
    %157 = vector.multi_reduction <add>, %156, %cst_39 [2] : vector<2x8x8xf32> to vector<2x8xf32>
    %158 = vector.shape_cast %157 : vector<2x8xf32> to vector<2x8x1xf32>
    %159 = tpu.reciprocal %158 {approx = true} : vector<2x8x1xf32> -> vector<2x8x1xf32>
    %160 = vector.broadcast %159 : vector<2x8x1xf32> to vector<2x8x8xf32>
    %161 = arith.mulf %156, %160 : vector<2x8x8xf32>
    %162 = arith.truncf %161 : vector<2x8x8xf32> to vector<2x8x8xbf16>
    "tpu.trace_start"() <{level = 10 : i32, message = "bqk,bkd->bqd"}> : () -> ()
    %cst_40 = arith.constant dense<0.000000e+00> : vector<2x8x16xf32>
    %163 = tpu.matmul %162, %148, %cst_40 {dimension_numbers = #tpu.dot_dimension_numbers<[2], [1], [1], [2], [0, 0, 0, 1, 1, 2], [0], [0]>} : vector<2x8x8xbf16>, vector<2x8x16xbf16>, vector<2x8x16xf32> -> vector<2x8x16xf32>
    "tpu.trace_stop"() : () -> ()
    %164 = vector.extract_strided_slice %19 {offsets = [0, 96], sizes = [16, 16], strides = [1, 1]} : vector<16x384xf32> to vector<16x16xf32>
    %165 = vector.shape_cast %164 : vector<16x16xf32> to vector<2x8x16xf32>
    %166 = arith.truncf %165 : vector<2x8x16xf32> to vector<2x8x16xbf16>
    %167 = vector.extract_strided_slice %19 {offsets = [0, 224], sizes = [16, 16], strides = [1, 1]} : vector<16x384xf32> to vector<16x16xf32>
    %168 = vector.shape_cast %167 : vector<16x16xf32> to vector<2x8x16xf32>
    %169 = arith.truncf %168 : vector<2x8x16xf32> to vector<2x8x16xbf16>
    %170 = vector.extract_strided_slice %19 {offsets = [0, 352], sizes = [16, 16], strides = [1, 1]} : vector<16x384xf32> to vector<16x16xf32>
    %171 = vector.shape_cast %170 : vector<16x16xf32> to vector<2x8x16xf32>
    %172 = arith.truncf %171 : vector<2x8x16xf32> to vector<2x8x16xbf16>
    "tpu.trace_start"() <{level = 10 : i32, message = "bqd,bkd->bqk"}> : () -> ()
    %cst_41 = arith.constant dense<0.000000e+00> : vector<2x8x8xf32>
    %173 = tpu.matmul %166, %169, %cst_41 {dimension_numbers = #tpu.dot_dimension_numbers<[2], [2], [1], [1], [0, 0, 0, 1, 1, 1], [0], [0]>} : vector<2x8x16xbf16>, vector<2x8x16xbf16>, vector<2x8x8xf32> -> vector<2x8x8xf32>
    "tpu.trace_stop"() : () -> ()
    %174 = vector.broadcast %10 : vector<2x1x8xf32> to vector<2x8x8xf32>
    %175 = arith.addf %173, %174 : vector<2x8x8xf32>
    %cst_42 = arith.constant dense<0xFF800000> : vector<2x8xf32>
    %176 = vector.multi_reduction <maximumf>, %175, %cst_42 [2] : vector<2x8x8xf32> to vector<2x8xf32>
    %177 = vector.shape_cast %176 : vector<2x8xf32> to vector<2x8x1xf32>
    %178 = vector.broadcast %177 : vector<2x8x1xf32> to vector<2x8x8xf32>
    %179 = arith.subf %175, %178 : vector<2x8x8xf32>
    %180 = math.exp %179 : vector<2x8x8xf32>
    %cst_43 = arith.constant dense<0.000000e+00> : vector<2x8xf32>
    %181 = vector.multi_reduction <add>, %180, %cst_43 [2] : vector<2x8x8xf32> to vector<2x8xf32>
    %182 = vector.shape_cast %181 : vector<2x8xf32> to vector<2x8x1xf32>
    %183 = tpu.reciprocal %182 {approx = true} : vector<2x8x1xf32> -> vector<2x8x1xf32>
    %184 = vector.broadcast %183 : vector<2x8x1xf32> to vector<2x8x8xf32>
    %185 = arith.mulf %180, %184 : vector<2x8x8xf32>
    %186 = arith.truncf %185 : vector<2x8x8xf32> to vector<2x8x8xbf16>
    "tpu.trace_start"() <{level = 10 : i32, message = "bqk,bkd->bqd"}> : () -> ()
    %cst_44 = arith.constant dense<0.000000e+00> : vector<2x8x16xf32>
    %187 = tpu.matmul %186, %172, %cst_44 {dimension_numbers = #tpu.dot_dimension_numbers<[2], [1], [1], [2], [0, 0, 0, 1, 1, 2], [0], [0]>} : vector<2x8x8xbf16>, vector<2x8x16xbf16>, vector<2x8x16xf32> -> vector<2x8x16xf32>
    "tpu.trace_stop"() : () -> ()
    %188 = vector.extract_strided_slice %19 {offsets = [0, 112], sizes = [16, 16], strides = [1, 1]} : vector<16x384xf32> to vector<16x16xf32>
    %189 = vector.shape_cast %188 : vector<16x16xf32> to vector<2x8x16xf32>
    %190 = arith.truncf %189 : vector<2x8x16xf32> to vector<2x8x16xbf16>
    %191 = vector.extract_strided_slice %19 {offsets = [0, 240], sizes = [16, 16], strides = [1, 1]} : vector<16x384xf32> to vector<16x16xf32>
    %192 = vector.shape_cast %191 : vector<16x16xf32> to vector<2x8x16xf32>
    %193 = arith.truncf %192 : vector<2x8x16xf32> to vector<2x8x16xbf16>
    %194 = vector.extract_strided_slice %19 {offsets = [0, 368], sizes = [16, 16], strides = [1, 1]} : vector<16x384xf32> to vector<16x16xf32>
    %195 = vector.shape_cast %194 : vector<16x16xf32> to vector<2x8x16xf32>
    %196 = arith.truncf %195 : vector<2x8x16xf32> to vector<2x8x16xbf16>
    "tpu.trace_start"() <{level = 10 : i32, message = "bqd,bkd->bqk"}> : () -> ()
    %cst_45 = arith.constant dense<0.000000e+00> : vector<2x8x8xf32>
    %197 = tpu.matmul %190, %193, %cst_45 {dimension_numbers = #tpu.dot_dimension_numbers<[2], [2], [1], [1], [0, 0, 0, 1, 1, 1], [0], [0]>} : vector<2x8x16xbf16>, vector<2x8x16xbf16>, vector<2x8x8xf32> -> vector<2x8x8xf32>
    "tpu.trace_stop"() : () -> ()
    %198 = vector.broadcast %10 : vector<2x1x8xf32> to vector<2x8x8xf32>
    %199 = arith.addf %197, %198 : vector<2x8x8xf32>
    %cst_46 = arith.constant dense<0xFF800000> : vector<2x8xf32>
    %200 = vector.multi_reduction <maximumf>, %199, %cst_46 [2] : vector<2x8x8xf32> to vector<2x8xf32>
    %201 = vector.shape_cast %200 : vector<2x8xf32> to vector<2x8x1xf32>
    %202 = vector.broadcast %201 : vector<2x8x1xf32> to vector<2x8x8xf32>
    %203 = arith.subf %199, %202 : vector<2x8x8xf32>
    %204 = math.exp %203 : vector<2x8x8xf32>
    %cst_47 = arith.constant dense<0.000000e+00> : vector<2x8xf32>
    %205 = vector.multi_reduction <add>, %204, %cst_47 [2] : vector<2x8x8xf32> to vector<2x8xf32>
    %206 = vector.shape_cast %205 : vector<2x8xf32> to vector<2x8x1xf32>
    %207 = tpu.reciprocal %206 {approx = true} : vector<2x8x1xf32> -> vector<2x8x1xf32>
    %208 = vector.broadcast %207 : vector<2x8x1xf32> to vector<2x8x8xf32>
    %209 = arith.mulf %204, %208 : vector<2x8x8xf32>
    %210 = arith.truncf %209 : vector<2x8x8xf32> to vector<2x8x8xbf16>
    "tpu.trace_start"() <{level = 10 : i32, message = "bqk,bkd->bqd"}> : () -> ()
    %cst_48 = arith.constant dense<0.000000e+00> : vector<2x8x16xf32>
    %211 = tpu.matmul %210, %196, %cst_48 {dimension_numbers = #tpu.dot_dimension_numbers<[2], [1], [1], [2], [0, 0, 0, 1, 1, 2], [0], [0]>} : vector<2x8x8xbf16>, vector<2x8x16xbf16>, vector<2x8x16xf32> -> vector<2x8x16xf32>
    "tpu.trace_stop"() : () -> ()
    %212 = tpu.concatenate %43, %67, %91, %115, %139, %163, %187, %211 in 2 : vector<2x8x16xf32>, vector<2x8x16xf32>, vector<2x8x16xf32>, vector<2x8x16xf32>, vector<2x8x16xf32>, vector<2x8x16xf32>, vector<2x8x16xf32>, vector<2x8x16xf32> -> vector<2x8x128xf32>
    %213 = vector.shape_cast %212 : vector<2x8x128xf32> to vector<16x128xf32>
    %214 = arith.truncf %213 : vector<16x128xf32> to vector<16x128xbf16>
    %cst_49 = arith.constant dense<0.000000e+00> : vector<16x128xf32>
    %215 = tpu.matmul %214, %13, %cst_49 {dimension_numbers = #tpu.dot_dimension_numbers<[1], [0], [0], [1], [0, 0, 1, 1], [], []>} : vector<16x128xbf16>, vector<128x128xbf16>, vector<16x128xf32> -> vector<16x128xf32>
    %216 = vector.broadcast %14 : vector<1x128xf32> to vector<16x128xf32>
    %217 = arith.addf %215, %216 : vector<16x128xf32>
    %218 = vector.shape_cast %217 : vector<16x128xf32> to vector<2x8x128xf32>
    %219 = arith.addf %9, %218 : vector<2x8x128xf32>
    %220 = arith.truncf %219 : vector<2x8x128xf32> to vector<2x8x128xbf16>
    %c0_50 = arith.constant 0 : index
    %c0_51 = arith.constant 0 : index
    %c0_52 = arith.constant 0 : index
    %221 = vector.load %arg9[%c0_50, %c0_51, %c0_52] : memref<2x8x128xbf16, #tpu.memory_space<vmem>>, vector<2x8x128xbf16>
    tpu.vector_store %arg9[%c0_50, %c0_51, %c0_52], %220 {strides = array<i32>} : memref<2x8x128xbf16, #tpu.memory_space<vmem>>, vector<2x8x128xbf16>,
    return
  }
  func.func @transform_0(%arg0: i32) -> (i32, i32, i32) {
    %c0_i32 = arith.constant 0 : i32
    %c0_i32_0 = arith.constant 0 : i32
    %c0_i32_1 = arith.constant 0 : i32
    return %arg0, %c0_i32, %c0_i32_0 : i32, i32, i32
  }
  func.func @transform_1(%arg0: i32) -> (i32, i32, i32) {
    %c0_i32 = arith.constant 0 : i32
    %c0_i32_0 = arith.constant 0 : i32
    %c0_i32_1 = arith.constant 0 : i32
    return %arg0, %c0_i32, %c0_i32_0 : i32, i32, i32
  }
  func.func @transform_2(%arg0: i32) -> (i32, i32) {
    %c0_i32 = arith.constant 0 : i32
    %c0_i32_0 = arith.constant 0 : i32
    %c0_i32_1 = arith.constant 0 : i32
    return %c0_i32, %c0_i32_0 : i32, i32
  }
  func.func @transform_3(%arg0: i32) -> (i32, i32) {
    %c0_i32 = arith.constant 0 : i32
    %c0_i32_0 = arith.constant 0 : i32
    %c0_i32_1 = arith.constant 0 : i32
    return %c0_i32, %c0_i32_0 : i32, i32
  }
  func.func @transform_4(%arg0: i32) -> (i32, i32) {
    %c0_i32 = arith.constant 0 : i32
    %c0_i32_0 = arith.constant 0 : i32
    %c0_i32_1 = arith.constant 0 : i32
    return %c0_i32, %c0_i32_0 : i32, i32
  }
  func.func @transform_5(%arg0: i32) -> (i32, i32) {
    %c0_i32 = arith.constant 0 : i32
    %c0_i32_0 = arith.constant 0 : i32
    %c0_i32_1 = arith.constant 0 : i32
    return %c0_i32, %c0_i32_0 : i32, i32
  }
  func.func @transform_6(%arg0: i32) -> (i32, i32) {
    %c0_i32 = arith.constant 0 : i32
    %c0_i32_0 = arith.constant 0 : i32
    %c0_i32_1 = arith.constant 0 : i32
    return %c0_i32, %c0_i32_0 : i32, i32
  }
  func.func @transform_7(%arg0: i32) -> (i32, i32) {
    %c0_i32 = arith.constant 0 : i32
    %c0_i32_0 = arith.constant 0 : i32
    %c0_i32_1 = arith.constant 0 : i32
    return %c0_i32, %c0_i32_0 : i32, i32
  }
  func.func @transform_8(%arg0: i32) -> (i32, i32, i32) {
    %c0_i32 = arith.constant 0 : i32
    %c0_i32_0 = arith.constant 0 : i32
    %c0_i32_1 = arith.constant 0 : i32
    return %arg0, %c0_i32, %c0_i32_0 : i32, i32, i32
  }
}

</mosaic_0001>

<bundles_post_ra>
// kernel: ts_transformer_encoder_forward.13
= control target key start
LH: loop header
LB: loop body
LE: loop exit
PB: predicated region body
PF: predicated region fallthrough
CT: control target
= control target key end

     0   :  { %s543_s18 = smov 0   ;;  %s597_s0 = inlined_call_operand.vmem [shape: bf16[16,128], index: 0, kind: input, shape index: {}]   ;;  %s598_s1 = inlined_call_operand.vmem [shape: f32[1,128], index: 1, kind: input, shape index: {}]   ;;  %s599_s2 = inlined_call_operand.vmem [shape: f32[1,128], index: 2, kind: input, shape index: {}]   ;;  %s600_s3 = inlined_call_operand.vmem [shape: bf16[128,128], index: 3, kind: input, shape index: {}]   ;;  %s601_s4 = inlined_call_operand.vmem [shape: f32[1,128], index: 4, kind: input, shape index: {}]   ;;  %s602_s5 = inlined_call_operand.vmem [shape: f32[16,128], index: 5, kind: output, shape index: {}]  }
   0x1 LB: > { %s432_s19 = sadd.s32 4294967295, %s509_s18   ;;  %p436_p0 = scmp.ge.s32.totalorder %s509_s18, 1  ;;  %s509_s18 = sphi %s543_s18, %s15_s18  }
   0x2   : > { %p186_p1 = scmp.lt.s32.totalorder %s509_s18, 3 }
   0x4   : > { %p187_p2 = pnand %p436_p0, %p186_p1 }
   0x5   : > { %v491_v0 = vld [vmem:[%s600_s3] sm:$0xff] (!%p187_p2)   ;;  %v511_v1 = vmov (!%p187_p2), 0.0   ;;  %v492_v2 = vld [vmem:[%s600_s3 + $0x8] sm:$0xff] (!%p187_p2)   ;;  %vm512_vm0 = vmmov (!%p187_p2), 0   ;;  %p212_p3 = scmp.lt.s32.totalorder (!%p187_p2), %s432_s19, 1  ;;  %v493_v3 = vld [vmem:[%s600_s3 + $0x10] sm:$0xff] (!%p187_p2)  }
   0x6   : > { %190 = sbr.rel (%p187_p2) target bundleno = 288 (0x120), region = 40  ;;  %461 = vmatprep.subr.bf16.mxu0 (!%p187_p2), %v511_v1  ;;  %477 = vmatprep.mubr.msk.bf16.mxu0 (!%p187_p2), %vm512_vm0, %v511_v1  ;;  %v439_v5 = vld [vmem:[%s598_s1] ss:$0 sm:$0xff] (!%p187_p2)  ;;  %v494_v7 = vld [vmem:[%s600_s3 + $0x18] sm:$0xff] (!%p187_p2)   ;;  %v496_v14 = vld [vmem:[%s600_s3 + $0x28] sm:$0xff] (!%p187_p2)  }
   0x7   : > { %462 = vmatpush3.bf16.msra.mxu0 (!%p187_p2), %v491_v0  ;;  %v440_v8 = vld [vmem:[%s599_s2] ss:$0 sm:$0xff] (!%p187_p2)  ;;  %v497_v17 = vld [vmem:[%s600_s3 + $0x30] sm:$0xff] (!%p187_p2)   ;;  %v498_v18 = vld [vmem:[%s600_s3 + $0x38] sm:$0xff] (!%p187_p2)  }
   0x8   : > { %463 = vmatprep.subr.bf16.mxu0 (!%p187_p2), %v511_v1  ;;  %v495_v11 = vld [vmem:[%s600_s3 + $0x20] sm:$0xff] (!%p187_p2)  }
   0x9   : > { %v441_v41 = vld [vmem:[%s601_s4] ss:$0 sm:$0xff] (!%p187_p2) }
   0xb   : > { %464 = vmatpush3.bf16.msra.mxu0 (!%p187_p2), %v492_v2 }
   0xc   : > { %465 = vmatprep.subr.bf16.mxu0 (!%p187_p2), %v511_v1 }
   0xd   : > { %s604_s19 = smov (!%p212_p3, %s432_s19), 1 }
   0xe   : > { %s437_s26 = sshll.u32 %s604_s19, 2  ;;  %s438_s21 = sshll.u32 %s604_s19, 3 }
   0xf   : > { %s215_s29 = scalar_lea.vmem %s597_s0, %s437_s26  ;;  %466 = vmatpush3.bf16.msra.mxu0 %v493_v3  ;;  %s219_s26 = scalar_lea.vmem %s602_s5, %s438_s21 }
  0x10   : > { %v221_v4 = vld [vmem:[%s215_s29] sm:$0xf]  ;;  %467 = vmatprep.subr.bf16.mxu0 %v511_v1 }
  0x11   : > { %v222_v6 = vunpack.c.l.bf16 %v221_v4 }
  0x13   : > { %v230_v9 = vmul.f32 %v439_v5, %v222_v6  ;;  %468 = vmatpush3.bf16.msra.mxu0 %v494_v7 }
  0x14   : > { %469 = vmatprep.subr.bf16.mxu0 %v511_v1 }
  0x15   : > { %v238_v10 = vadd.f32 %v440_v8, %v230_v9 }
  0x17   : > { %v240_v12 = vmul.f32 0.70710677, %v238_v10  ;;  %470 = vmatpush3.bf16.msra.mxu0 %v495_v11  ;;  %v239_v36 = vmul.f32 0.5, %v238_v10 }
  0x18   : > { %471 = vmatprep.subr.bf16.mxu0 %v511_v1 }
  0x19   : > { %v241_v13 = vand.u32 2147483647, %v240_v12  ;;  %vm261_vm1 = vcmp.lt.f32.partialorder %v240_v12, 0.0 }
  0x1b   : > { %v242_v15 = vmul.f32 0.3275911, %v241_v13  ;;  %472 = vmatpush3.bf16.msra.mxu0 %v496_v14  ;;  %v255_v19 = vsub.f32 0.0, %v241_v13 }
  0x1c   : > { %473 = vmatprep.subr.bf16.mxu0 %v511_v1 }
  0x1d   : > { %v243_v16 = vadd.f32 1.0, %v242_v15  ;;  %v256_v20 = vmul.f32 %v255_v19, %v241_v13 }
  0x1f   : > { %499 = vrcp.f32 %v243_v16  ;;  %474 = vmatpush3.bf16.msra.mxu0 %v497_v17  ;;  %v257_v23 = vmul.f32 1.442695, %v256_v20 }
  0x20   : > { %475 = vmatprep.subr.bf16.mxu0 %v511_v1 }
  0x21   : > { %501 = vpow2.f32 %v257_v23 }
  0x23   : > { %476 = vmatpush3.bf16.msra.mxu0 %v498_v18 }
  0x29   : > { %v500_v21 = vpop.eup %499 }
  0x2a   : > { %v246_v22 = vmul.f32 1.0614054, %v500_v21 }
  0x2b   : > { %v502_v31 = vpop.eup %501 }
  0x2c   : > { %v247_v24 = vadd.f32 -1.4531521, %v246_v22 }
  0x2e   : > { %v248_v25 = vmul.f32 %v500_v21, %v247_v24 }
  0x30   : > { %v249_v26 = vadd.f32 1.4214138, %v248_v25 }
  0x32   : > { %v250_v27 = vmul.f32 %v500_v21, %v249_v26 }
  0x34   : > { %v251_v28 = vadd.f32 -0.28449672, %v250_v27 }
  0x36   : > { %v252_v29 = vmul.f32 %v500_v21, %v251_v28 }
  0x38   : > { %v253_v30 = vadd.f32 0.2548296, %v252_v29 }
  0x3a   : > { %v254_v32 = vmul.f32 %v500_v21, %v253_v30 }
  0x3c   : > { %v259_v33 = vmul.f32 %v502_v31, %v254_v32 }
  0x3e   : > { %v260_v34 = vsub.f32 1.0, %v259_v33 }
  0x40   : > { %v262_v35 = vsub.f32 0.0, %v260_v34 }
  0x42   : > { %v263_v37 = vsel %vm261_vm1, %v262_v35, %v260_v34 }
  0x43   : > { %v264_v38 = vadd.f32 1.0, %v263_v37 }
  0x45   : > { %v265_v39 = vmul.f32 %v264_v38, %v239_v36 }
  0x47   : > { %v266_v40 = vpack.c.bf16 %v265_v39, %v265_v39 }
  0x49   : > { %478 = vmatmul.mubr.bf16.vlgmr.msra.gmra.mrb[0].mxu0 %v266_v40 }
 0x11c   : > { %v372_v42 = vpop.f32.mrb[0].mxu0 }
 0x11d   : > { %v373_v43 = vadd.f32 %v441_v41, %v372_v42  ;;  %v479_v44 = vpop.f32.mrb[1].mxu0 }
 0x11e   : > { %v375_v45 = vpop.f32.mrb[2].mxu0 }
 0x11f   : > { %378 = vst [vmem:[%s219_s26] sm:$0xff] %v373_v43  ;;  %v480_v46 = vpop.f32.mrb[3].mxu0 }
 0x120 PF: > { %s15_s18 = sadd.s32 1, %s509_s18  }
 0x121   : > { %p12_p4 = scmp.ge.s32.totalorder %s15_s18, 4  }
 0x123   :  { %14 = sbr.rel (!%p12_p4) target bundleno = 1 (0x1), region = 70 }

// kernel: ts_transformer_encoder_forward.8
= control target key start
LH: loop header
LB: loop body
LE: loop exit
PB: predicated region body
PF: predicated region fallthrough
CT: control target
= control target key end

     0   :  { %s902_s24 = smov 0   ;;  %s1039_s0 = inlined_call_operand.vmem [shape: bf16[16,128], index: 0, kind: input, shape index: {}]   ;;  %s1040_s1 = inlined_call_operand.vmem [shape: f32[1,128], index: 1, kind: input, shape index: {}]   ;;  %s1041_s2 = inlined_call_operand.vmem [shape: f32[1,128], index: 2, kind: input, shape index: {}]   ;;  %s1042_s3 = inlined_call_operand.vmem [shape: bf16[128,256], index: 3, kind: input, shape index: {}]   ;;  %s1043_s4 = inlined_call_operand.vmem [shape: f32[1,256], index: 4, kind: input, shape index: {}]   ;;  %s1044_s5 = inlined_call_operand.vmem [shape: bf16[256,128], index: 5, kind: input, shape index: {}]   ;;  %s1045_s6 = inlined_call_operand.vmem [shape: f32[1,128], index: 6, kind: input, shape index: {}]   ;;  %s1046_s7 = inlined_call_operand.vmem [shape: bf16[16,128], index: 7, kind: output, shape index: {}]  }
   0x1 LB: > { %s730_s25 = sadd.s32 4294967295, %s859_s24   ;;  %p734_p0 = scmp.ge.s32.totalorder %s859_s24, 1  ;;  %s859_s24 = sphi %s902_s24, %s17_s24  }
   0x2   : > { %p236_p1 = scmp.lt.s32.totalorder %s859_s24, 3 }
   0x4   : > { %p237_p2 = pnand %p734_p0, %p236_p1 }
   0x5   : > { %v805_v0 = vld [vmem:[%s1042_s3 + $0x4] ss:$8 sps:$4 sm:$0xff] (!%p237_p2)   ;;  %p266_p3 = scmp.lt.s32.totalorder (!%p237_p2), %s730_s25, 1  ;;  %v807_v1 = vld [vmem:[%s1042_s3] ss:$8 sps:$4 sm:$0xff] (!%p237_p2)   ;;  %v861_v2 = vmov (!%p237_p2), 0   ;;  %v312_v40 = vlaneseq (!%p237_p2) }
   0x6   : > { %240 = sbr.rel (%p237_p2) target bundleno = 526 (0x20e), region = 48  ;;  %434 = vmatprep.mubr.bf16.mxu0 (!%p237_p2), %v861_v2  ;;  %402 = vmatprep.subr.bf16.mxu0 (!%p237_p2), %v805_v0  ;;  %v808_v3 = vld [vmem:[%s1042_s3 + $0x14] ss:$8 sps:$4 sm:$0xff] (!%p237_p2)   ;;  %v810_v4 = vld [vmem:[%s1042_s3 + $0x10] ss:$8 sps:$4 sm:$0xff] (!%p237_p2)   ;;  %v829_v24 = vld [vmem:[%s1044_s5 + $0x40] sm:$0xff] (!%p237_p2)  }
   0x7   : > { %403 = vmatpush1.bf16.msra.mxu0 (!%p237_p2), %v807_v1  ;;  %v811_v5 = vld [vmem:[%s1042_s3 + $0x24] ss:$8 sps:$4 sm:$0xff] (!%p237_p2)   ;;  %v813_v6 = vld [vmem:[%s1042_s3 + $0x20] ss:$8 sps:$4 sm:$0xff] (!%p237_p2)   ;;  %v814_v7 = vld [vmem:[%s1042_s3 + $0x34] ss:$8 sps:$4 sm:$0xff] (!%p237_p2)   ;;  %774 = vmatprep.subr.bf16.mxu1 (!%p237_p2), %v829_v24 }
   0x8   : > { %404 = vmatprep.subr.bf16.mxu0 (!%p237_p2), %v808_v3  ;;  %v816_v8 = vld [vmem:[%s1042_s3 + $0x30] ss:$8 sps:$4 sm:$0xff] (!%p237_p2)   ;;  %v817_v9 = vld [vmem:[%s1042_s3 + $0x44] ss:$8 sps:$4 sm:$0xff] (!%p237_p2)   ;;  %v819_v10 = vld [vmem:[%s1042_s3 + $0x40] ss:$8 sps:$4 sm:$0xff] (!%p237_p2)  }
   0x9   : > { %v820_v12 = vld [vmem:[%s1042_s3 + $0x54] ss:$8 sps:$4 sm:$0xff] (!%p237_p2)   ;;  %v822_v13 = vld [vmem:[%s1042_s3 + $0x50] ss:$8 sps:$4 sm:$0xff] (!%p237_p2)   ;;  %v737_v14 = vld [vmem:[%s1040_s1] ss:$0 sm:$0xff] (!%p237_p2) }
   0xa   : > { %v823_v15 = vld [vmem:[%s1042_s3 + $0x64] ss:$8 sps:$4 sm:$0xff] (!%p237_p2)   ;;  %v825_v18 = vld [vmem:[%s1042_s3 + $0x60] ss:$8 sps:$4 sm:$0xff] (!%p237_p2)   ;;  %v826_v20 = vld [vmem:[%s1042_s3 + $0x74] ss:$8 sps:$4 sm:$0xff] (!%p237_p2)  }
   0xb   : > { %405 = vmatpush1.bf16.msra.mxu0 (!%p237_p2), %v810_v4  ;;  %v738_v19 = vld [vmem:[%s1041_s2] ss:$0 sm:$0xff] (!%p237_p2)  ;;  %v828_v22 = vld [vmem:[%s1042_s3 + $0x70] ss:$8 sps:$4 sm:$0xff] (!%p237_p2)   ;;  %v831_v26 = vld [vmem:[%s1044_s5 + $0x48] sm:$0xff] (!%p237_p2)   ;;  %v313_v41 = vshrl.u32 (!%p237_p2), %v312_v40, 7 }
   0xc   : > { %406 = vmatprep.subr.bf16.mxu0 (!%p237_p2), %v811_v5  ;;  %v830_v25 = vld [vmem:[%s1044_s5] sm:$0xff] (!%p237_p2)   ;;  %v832_v27 = vld [vmem:[%s1044_s5 + $0x8] sm:$0xff] (!%p237_p2)   ;;  %v833_v28 = vld [vmem:[%s1044_s5 + $0x50] sm:$0xff] (!%p237_p2)  }
   0xd   : > { %s1048_s25 = smov (!%p266_p3, %s730_s25), 1  ;;  %775 = vmatpush3.bf16.msra.mxu1 %v830_v25  ;;  %v834_v29 = vld [vmem:[%s1044_s5 + $0x10] sm:$0xff]   ;;  %v835_v30 = vld [vmem:[%s1044_s5 + $0x58] sm:$0xff]   ;;  %v837_v32 = vld [vmem:[%s1044_s5 + $0x60] sm:$0xff]   ;;  %v314_v42 = vsub.s32 0, %v313_v41  ;;  %v318_v44 = vsub.s32 1, %v313_v41 }
   0xe   : > { %s735_s15 = sshll.u32 %s1048_s25, 2  ;;  %776 = vmatprep.subr.bf16.mxu1 %v831_v26  ;;  %v836_v31 = vld [vmem:[%s1044_s5 + $0x18] sm:$0xff]   ;;  %v838_v33 = vld [vmem:[%s1044_s5 + $0x20] sm:$0xff]   ;;  %v839_v34 = vld [vmem:[%s1044_s5 + $0x68] sm:$0xff]  }
   0xf   : > { %s269_s20 = scalar_lea.vmem %s1039_s0, %s735_s15  ;;  %407 = vmatpush1.bf16.msra.mxu0 %v813_v6  ;;  %v840_v35 = vld [vmem:[%s1044_s5 + $0x28] sm:$0xff]   ;;  %v841_v36 = vld [vmem:[%s1044_s5 + $0x70] sm:$0xff]   ;;  %v843_v38 = vld [vmem:[%s1044_s5 + $0x78] sm:$0xff]   ;;  %s273_s21 = scalar_lea.vmem %s1046_s7, %s735_s15 }
  0x10   : > { %408 = vmatprep.subr.bf16.mxu0 %v814_v7  ;;  %v275_v11 = vld [vmem:[%s269_s20] sm:$0xf]  ;;  %v842_v37 = vld [vmem:[%s1044_s5 + $0x30] sm:$0xff]   ;;  %v844_v39 = vld [vmem:[%s1044_s5 + $0x38] sm:$0xff]  }
  0x11   : > { %v276_v16 = vunpack.c.l.bf16 %v275_v11  ;;  %777 = vmatpush3.bf16.msra.mxu1 %v832_v27  ;;  %v310_v43 = vld [vmem:[%s1043_s4] sm:$0x3] }
  0x12   : > { %778 = vmatprep.subr.bf16.mxu1 %v833_v28  ;;  %v315_v45 = vrot.slane %v310_v43, %v314_v42  ;;  %v319_v46 = vrot.slane %v310_v43, %v318_v44  ;;  %v755_v43 = vld [vmem:[%s1045_s6] ss:$0 sm:$0xff] }
  0x13   : > { %409 = vmatpush1.bf16.msra.mxu0 %v816_v8  ;;  %v284_v17 = vmul.f32 %v737_v14, %v276_v16 }
  0x14   : > { %410 = vmatprep.subr.bf16.mxu0 %v817_v9 }
  0x15   : > { %v969_v21 = vadd.f32 %v738_v19, %v284_v17  ;;  %779 = vmatpush3.bf16.msra.mxu1 %v834_v29 }
  0x16   : > { %780 = vmatprep.subr.bf16.mxu1 %v835_v30 }
  0x17   : > { %411 = vmatpush1.bf16.msra.mxu0 %v819_v10  ;;  %v293_v23 = vpack.c.bf16 %v969_v21, %v969_v21 }
  0x18   : > { %412 = vmatprep.subr.bf16.mxu0 %v820_v12 }
  0x19   : > { %781 = vmatpush3.bf16.msra.mxu1 %v836_v31 }
  0x1a   : > { %782 = vmatprep.subr.bf16.mxu1 %v837_v32 }
  0x1b   : > { %413 = vmatpush1.bf16.msra.mxu0 %v822_v13 }
  0x1c   : > { %414 = vmatprep.subr.bf16.mxu0 %v823_v15 }
  0x1d   : > { %783 = vmatpush3.bf16.msra.mxu1 %v838_v33 }
  0x1e   : > { %784 = vmatprep.subr.bf16.mxu1 %v839_v34 }
  0x1f   : > { %415 = vmatpush1.bf16.msra.mxu0 %v825_v18 }
  0x20   : > { %416 = vmatprep.subr.bf16.mxu0 %v826_v20 }
  0x21   : > { %785 = vmatpush3.bf16.msra.mxu1 %v840_v35 }
  0x22   : > { %786 = vmatprep.subr.bf16.mxu1 %v841_v36 }
  0x23   : > { %417 = vmatpush1.bf16.msra.mxu0 %v828_v22 }
  0x25   : > { %787 = vmatpush3.bf16.msra.mxu1 %v842_v37 }
  0x26   : > { %435 = vmatmul.mubr.bf16.vlgmr.msra.gmra.mrb[0].mxu0 %v293_v23  ;;  %788 = vmatprep.subr.bf16.mxu1 %v843_v38 }
  0x29   : > { %789 = vmatpush3.bf16.msra.mxu1 %v844_v39 }
  0xf9   : > { %v436_v47 = vpop.f32.mrb[0].mxu0 }
  0xfa   : > { %v437_v48 = vadd.f32 %v436_v47, %v315_v45  ;;  %v438_v49 = vpop.f32.mrb[1].mxu0 }
  0xfb   : > { %v439_v50 = vadd.f32 %v438_v49, %v319_v46  ;;  %v440_v51 = vpop.f32.mrb[2].mxu0 }
  0xfc   : > { %v445_v52 = vmul.f32 0.70710677, %v437_v48  ;;  %v441_v53 = vpop.f32.mrb[3].mxu0  ;;  %v443_v33 = vmul.f32 0.5, %v437_v48 }
  0xfd   : > { %v446_v54 = vmul.f32 0.70710677, %v439_v50  ;;  %v444_v36 = vmul.f32 0.5, %v439_v50 }
  0xfe   : > { %v447_v55 = vand.u32 2147483647, %v445_v52  ;;  %vm487_vm0 = vcmp.lt.f32.partialorder %v445_v52, 0.0 }
  0xff   : > { %v448_v56 = vand.u32 2147483647, %v446_v54  ;;  %vm488_vm1 = vcmp.lt.f32.partialorder %v446_v54, 0.0 }
 0x100   : > { %v449_v57 = vmul.f32 0.3275911, %v447_v55  ;;  %v475_v61 = vsub.f32 0.0, %v447_v55 }
 0x101   : > { %v450_v58 = vmul.f32 0.3275911, %v448_v56  ;;  %v476_v62 = vsub.f32 0.0, %v448_v56 }
 0x102   : > { %v451_v59 = vadd.f32 1.0, %v449_v57  ;;  %v477_v0 = vmul.f32 %v475_v61, %v447_v55 }
 0x103   : > { %v452_v60 = vadd.f32 1.0, %v450_v58  ;;  %v478_v2 = vmul.f32 %v476_v62, %v448_v56 }
 0x104   : > { %845 = vrcp.f32 %v451_v59  ;;  %v479_v6 = vmul.f32 1.442695, %v477_v0 }
 0x105   : > { %847 = vrcp.f32 %v452_v60  ;;  %v481_v8 = vmul.f32 1.442695, %v478_v2 }
 0x106   : > { %849 = vpow2.f32 %v479_v6 }
 0x107   : > { %851 = vpow2.f32 %v481_v8 }
 0x10e   : > { %v846_v63 = vpop.eup %845 }
 0x10f   : > { %v848_v1 = vpop.eup %847  ;;  %v457_v3 = vmul.f32 1.0614054, %v846_v63 }
 0x110   : > { %v458_v4 = vmul.f32 1.0614054, %v848_v1  ;;  %v850_v23 = vpop.eup %849 }
 0x111   : > { %v459_v5 = vadd.f32 -1.4531521, %v457_v3  ;;  %v852_v25 = vpop.eup %851 }
 0x112   : > { %v460_v7 = vadd.f32 -1.4531521, %v458_v4 }
 0x113   : > { %v461_v9 = vmul.f32 %v846_v63, %v459_v5 }
 0x114   : > { %v462_v10 = vmul.f32 %v848_v1, %v460_v7 }
 0x115   : > { %v463_v11 = vadd.f32 1.4214138, %v461_v9 }
 0x116   : > { %v464_v12 = vadd.f32 1.4214138, %v462_v10 }
 0x117   : > { %v465_v13 = vmul.f32 %v846_v63, %v463_v11 }
 0x118   : > { %v466_v14 = vmul.f32 %v848_v1, %v464_v12 }
 0x119   : > { %v467_v15 = vadd.f32 -0.28449672, %v465_v13 }
 0x11a   : > { %v468_v16 = vadd.f32 -0.28449672, %v466_v14 }
 0x11b   : > { %v469_v17 = vmul.f32 %v846_v63, %v467_v15 }
 0x11c   : > { %v470_v18 = vmul.f32 %v848_v1, %v468_v16 }
 0x11d   : > { %v471_v19 = vadd.f32 0.2548296, %v469_v17 }
 0x11e   : > { %v472_v20 = vadd.f32 0.2548296, %v470_v18 }
 0x11f   : > { %v473_v22 = vmul.f32 %v846_v63, %v471_v19 }
 0x120   : > { %v474_v24 = vmul.f32 %v848_v1, %v472_v20 }
 0x121   : > { %v483_v26 = vmul.f32 %v850_v23, %v473_v22 }
 0x122   : > { %v484_v27 = vmul.f32 %v852_v25, %v474_v24 }
 0x123   : > { %v485_v28 = vsub.f32 1.0, %v483_v26 }
 0x124   : > { %v486_v29 = vsub.f32 1.0, %v484_v27 }
 0x125   : > { %v489_v30 = vsub.f32 0.0, %v485_v28 }
 0x126   : > { %v490_v31 = vsub.f32 0.0, %v486_v29 }
 0x127   : > { %v491_v32 = vsel %vm487_vm0, %v489_v30, %v485_v28 }
 0x128   : > { %v492_v34 = vsel %vm488_vm1, %v490_v31, %v486_v29  ;;  %v493_v35 = vadd.f32 1.0, %v491_v32 }
 0x129   : > { %v494_v37 = vadd.f32 1.0, %v492_v34 }
 0x12a   : > { %v495_v38 = vmul.f32 %v493_v35, %v443_v33 }
 0x12b   : > { %v496_v39 = vmul.f32 %v494_v37, %v444_v36 }
 0x12c   : > { %v497_v41 = vpack.c.bf16 %v495_v38, %v495_v38 }
 0x12d   : > { %v498_v40 = vpack.c.bf16 %v496_v39, %v496_v39 }
 0x12f   : > { %666 = vmatprep.mubr.bf16.mxu1 %v498_v40 }
 0x130   : > { %667 = vmatmul.mubr.bf16.vlgmr.msra.gmra.mrb[0].mxu1 %v497_v41 }
 0x203   : > { %v790_v42 = vpop.f32.mrb[0].mxu1 }
 0x204   : > { %v791_v44 = vpop.f32.mrb[1].mxu1 }
 0x205   : > { %v792_v45 = vadd.f32 %v791_v44, %v790_v42  ;;  %v793_v46 = vpop.f32.mrb[2].mxu1 }
 0x206   : > { %v794_v47 = vpop.f32.mrb[3].mxu1 }
 0x207   : > { %v669_v48 = vadd.f32 %v792_v45, %v755_v43 }
 0x209   : > { %v674_v49 = vadd.f32 %v669_v48, %v969_v21 }
 0x20b   : > { %v675_v50 = vpack.c.bf16 %v674_v49, %v674_v49 }
 0x20d   : > { %676 = vst [vmem:[%s273_s21] sm:$0xf] %v675_v50 }
 0x20e PF: > { %s17_s24 = sadd.s32 1, %s859_s24  }
 0x20f   : > { %p14_p4 = scmp.ge.s32.totalorder %s17_s24, 4  }
 0x211   :  { %16 = sbr.rel (!%p14_p4) target bundleno = 1 (0x1), region = 78 }

// kernel: ts_transformer_encoder_forward.7
= control target key start
LH: loop header
LB: loop body
LE: loop exit
PB: predicated region body
PF: predicated region fallthrough
CT: control target
= control target key end

     0   :  { %13 = vsyncpa [#allocation3], 0  ;;  %s2912_s27 = smov [#allocation2]   ;;  %s3446_s0 = inlined_call_operand.vmem [shape: f32[2,8,4], index: 0, kind: input, shape index: {}]   ;;  %s3447_s1 = inlined_call_operand.vmem [shape: f32[2,1,8], index: 1, kind: input, shape index: {}]   ;;  %s3448_s2 = inlined_call_operand.vmem [shape: bf16[4,128], index: 2, kind: input, shape index: {}]   ;;  %s3449_s3 = inlined_call_operand.vmem [shape: f32[8,128], index: 3, kind: input, shape index: {}]   ;;  %s3450_s4 = inlined_call_operand.hbm [shape: bf16[128,384], index: 4, kind: input, shape index: {}]   ;;  %s3451_s5 = inlined_call_operand.vmem [shape: f32[1,384], index: 5, kind: input, shape index: {}]   ;;  %s3452_s6 = inlined_call_operand.vmem [shape: bf16[128,128], index: 6, kind: input, shape index: {}]   ;;  %s3453_s7 = inlined_call_operand.vmem [shape: f32[1,128], index: 7, kind: input, shape index: {}]   ;;  %s3454_s8 = inlined_call_operand.vmem [shape: bf16[2,8,128], index: 8, kind: output, shape index: {}]  }
   0x1   :  { %s27_s28 = sshll.u32 %s2912_s27, 4  ;;  %s2888_s9 = scalar_lea.hbm %s3450_s4, 3072  ;;  %s28_s28 = int_to_ptr.vmem [resolvable:$true] %s27_s28 }
   0x2   :  { %p2889_p0 = scmp.ne.s32.totalorder %s3450_s4, %s2888_s9  ;;  %p2892_p1 = scmp.lt.u32.totalorder %s2888_s9, %s3450_s4 }
   0x4   :  { %p2894_p2 = pnand %p2892_p1, %p2889_p0 }
   0x6   :  { %2897 = shalt.err (!%p2894_p2)
}
   0x7   :  { %s2898_s14 = scalar_lea.vmem %s28_s28, 3072  ;;  %p2903_p4 = scmp.lt.s32.totalorder %s28_s28, %s28_s28 }
   0x8   :  { %p2899_p3 = scmp.ne.s32.totalorder %s28_s28, %s2898_s14  ;;  %p2904_p5 = scmp.lt.s32.totalorder %s2898_s14, %s2898_s14 }
   0xa   :  { %p2905_p6 = por %p2904_p5, %p2903_p4 }
   0xc   :  { %p2906_p7 = pnand %p2905_p6, %p2899_p3 }
   0xe   :  { %2909 = shalt.err (!%p2906_p7)
}
   0xf   :  { %s2913_s15 = smov 192   ;;  %s2914_s16 = smov 12  }
  0x10   :  { %33 = dma.hbm_to_vmem [thread:$0]  %s3450_s4, 3072, %s28_s28, [#allocation3], %s2913_s15, %s2913_s15, %s2914_s16  }
  0x11   :  { %2910 = dma.done.wait [#allocation3], 3072  }
  0x12   :  { %2911 = vsyncadd [#allocation3], 4294964224  ;;  %v2915_v0 = vmov 0.0   ;;  %vm2916_vm0 = vmmov 0   ;;  %vm52_vm1 = vcmask 1041408   ;;  %v44_v2 = vld [vmem:[%s3446_s0] sm:$0xff]  ;;  %v154_v39 = vlaneseq }
  0x13   :  { %2496 = vmatprep.subr.bf16.mxu0 %v2915_v0  ;;  %2498 = vmatprep.mubr.msk.bf16.mxu0 %vm2916_vm0, %v2915_v0  ;;  %v47_v1 = vld [vmem:[%s3448_s2] sm:$0x3]  ;;  %v45_v3 = vld [vmem:[%s3446_s0 + $0x8] sm:$0xff]  ;;  %vm48_vm2 = vcmask 31744   ;;  %v2782_v6 = vld [vmem:[#allocation2 + $0x4] ss:$12 sps:$4 sm:$0xff]  }
  0x14   :  { %v54_v4 = vsel %vm52_vm1, %v47_v1, 0  ;;  %v46_v5 = vpack.c.bf16 %v45_v3, %v44_v2  ;;  %v2784_v7 = vld [vmem:[#allocation2] ss:$12 sps:$4 sm:$0xff]   ;;  %297 = vmatprep.subr.bf16.mxu1 %v2782_v6  ;;  %v2785_v8 = vld [vmem:[#allocation2 + $0x8] ss:$12 sps:$4 sm:$0xff]   ;;  %v2917_v30 = vmov 0  }
  0x15   :  { %2497 = vmatpush3.bf16.msra.mxu0 %v54_v4  ;;  %298 = vmatpush1.bf16.msra.mxu1 %v2784_v7  ;;  %v2786_v9 = vld [vmem:[#allocation2 + $0x1c] ss:$12 sps:$4 sm:$0xff]   ;;  %v2788_v10 = vld [vmem:[#allocation2 + $0x18] ss:$12 sps:$4 sm:$0xff]   ;;  %v2789_v11 = vld [vmem:[#allocation2 + $0x20] ss:$12 sps:$4 sm:$0xff]  }
  0x16   :  { %2502 = vmatprep.subr.bf16.mxu0 %v2915_v0  ;;  %299 = vmatprep.subr.bf16.mxu1 %v2786_v9  ;;  %v2790_v12 = vld [vmem:[#allocation2 + $0x34] ss:$12 sps:$4 sm:$0xff]   ;;  %v2792_v13 = vld [vmem:[#allocation2 + $0x30] ss:$12 sps:$4 sm:$0xff]   ;;  %v2794_v14 = vld [vmem:[#allocation2 + $0x4c] ss:$12 sps:$4 sm:$0xff]  }
  0x17   :  { %v2793_v15 = vld [vmem:[#allocation2 + $0x38] ss:$12 sps:$4 sm:$0xff]   ;;  %v2796_v16 = vld [vmem:[#allocation2 + $0x48] ss:$12 sps:$4 sm:$0xff]   ;;  %v2797_v17 = vld [vmem:[#allocation2 + $0x50] ss:$12 sps:$4 sm:$0xff]   ;;  %329 = vmatprep.mubr.bf16.mxu1 %v2917_v30 }
  0x18   :  { %2499 = vmatmul.mubr.msk.bf16.vlgmr.msra.gmra.mrb[0].mxu0 %vm48_vm2, %v46_v5  ;;  %v2798_v18 = vld [vmem:[#allocation2 + $0x64] ss:$12 sps:$4 sm:$0xff]   ;;  %v2800_v19 = vld [vmem:[#allocation2 + $0x60] ss:$12 sps:$4 sm:$0xff]   ;;  %v2802_v20 = vld [vmem:[#allocation2 + $0x7c] ss:$12 sps:$4 sm:$0xff]  }
  0x19   :  { %2503 = vmatpush3.bf16.msra.mxu0 %v2785_v8  ;;  %2518 = vmatprep.mubr.msk.bf16.mxu0 %vm2916_vm0, %v2915_v0  ;;  %v2801_v21 = vld [vmem:[#allocation2 + $0x68] ss:$12 sps:$4 sm:$0xff]   ;;  %v2804_v22 = vld [vmem:[#allocation2 + $0x78] ss:$12 sps:$4 sm:$0xff]   ;;  %v2805_v24 = vld [vmem:[#allocation2 + $0x80] ss:$12 sps:$4 sm:$0xff]  }
  0x1a   :  { %2504 = vmatprep.subr.bf16.mxu0 %v2915_v0  ;;  %300 = vmatpush1.bf16.msra.mxu1 %v2788_v10  ;;  %v2806_v23 = vld [vmem:[#allocation2 + $0x94] ss:$12 sps:$4 sm:$0xff]   ;;  %v2808_v25 = vld [vmem:[#allocation2 + $0x90] ss:$12 sps:$4 sm:$0xff]   ;;  %v2809_v26 = vld [vmem:[#allocation2 + $0x98] ss:$12 sps:$4 sm:$0xff]  }
  0x1b   :  { %301 = vmatprep.subr.bf16.mxu1 %v2790_v12  ;;  %v2810_v27 = vld [vmem:[#allocation2 + $0xac] ss:$12 sps:$4 sm:$0xff]   ;;  %v2812_v28 = vld [vmem:[#allocation2 + $0xa8] ss:$12 sps:$4 sm:$0xff]   ;;  %v2813_v29 = vld [vmem:[#allocation2 + $0xb0] ss:$12 sps:$4 sm:$0xff]  }
  0x1c   :  { %v97_v32 = vld [vmem:[%s3449_s3] sm:$0xff]  ;;  %v155_v40 = vshrl.u32 %v154_v39, 7  ;;  %vm399_vm3 = vcmask 130048   ;;  %vm520_vm4 = vcmask 1043456   ;;  %vm492_vm5 = vcmask 64512   ;;  %s2918_s28 = smov 112  }
  0x1d   :  { %2505 = vmatpush3.bf16.msra.mxu0 %v2789_v11  ;;  %v134_v42 = vld [vmem:[%s3451_s5] sm:$0x7]  ;;  %s2919_s29 = smov 96   ;;  %s2920_s30 = smov 80   ;;  %vm2214_vm6 = vcmask 261120   ;;  %vm2217_vm7 = vcmask 392192  }
  0x1e   :  { %2506 = vmatprep.subr.bf16.mxu0 %v2915_v0  ;;  %302 = vmatpush1.bf16.msra.mxu1 %v2792_v13  ;;  %v160_v41 = vsub.s32 1, %v155_v40  ;;  %v164_v43 = vsub.s32 2, %v155_v40  ;;  %v156_v45 = vsub.s32 0, %v155_v40  ;;  %v3054_v7 = vld [vmem:[%s3447_s1] ss:$0 sm:$0xff]  ;;  %s2921_s9 = smov 64  }
  0x1f   :  { %303 = vmatprep.subr.bf16.mxu1 %v2794_v14  ;;  %v3061_v14 = vld [vmem:[%s3447_s1 + $0x1] ss:$0 sm:$0xff]  ;;  %s2922_s10 = smov 48   ;;  %s2923_s11 = smov 32   ;;  %vm2220_vm8 = vcmask 523264   ;;  %vm2223_vm9 = vcmask 654336  }
  0x20   :  { %v161_v44 = vrot.slane %v134_v42, %v160_v41  ;;  %v165_v48 = vrot.slane %v134_v42, %v164_v43  ;;  %v157_v57 = vrot.slane %v134_v42, %v156_v45  ;;  %s2924_s12 = smov 16   ;;  %vm2226_vm10 = vcmask 785408  }
  0x21   :  { %2507 = vmatpush3.bf16.msra.mxu0 %v2793_v15  ;;  %vm2229_vm11 = vcmask 916480  }
  0x22   :  { %2508 = vmatprep.subr.bf16.mxu0 %v2915_v0  ;;  %304 = vmatpush1.bf16.msra.mxu1 %v2796_v16 }
  0x23   :  { %305 = vmatprep.subr.bf16.mxu1 %v2798_v18 }
  0x25   :  { %2509 = vmatpush3.bf16.msra.mxu0 %v2797_v17 }
  0x26   :  { %2510 = vmatprep.subr.bf16.mxu0 %v2915_v0  ;;  %306 = vmatpush1.bf16.msra.mxu1 %v2800_v19 }
  0x27   :  { %307 = vmatprep.subr.bf16.mxu1 %v2802_v20 }
  0x29   :  { %2511 = vmatpush3.bf16.msra.mxu0 %v2801_v21 }
  0x2a   :  { %2512 = vmatprep.subr.bf16.mxu0 %v2915_v0  ;;  %308 = vmatpush1.bf16.msra.mxu1 %v2804_v22 }
  0x2b   :  { %309 = vmatprep.subr.bf16.mxu1 %v2806_v23 }
  0x2d   :  { %2513 = vmatpush3.bf16.msra.mxu0 %v2805_v24 }
  0x2e   :  { %2514 = vmatprep.subr.bf16.mxu0 %v2915_v0  ;;  %310 = vmatpush1.bf16.msra.mxu1 %v2808_v25 }
  0x2f   :  { %311 = vmatprep.subr.bf16.mxu1 %v2810_v27 }
  0x31   :  { %2515 = vmatpush3.bf16.msra.mxu0 %v2809_v26 }
  0x32   :  { %2516 = vmatprep.subr.bf16.mxu0 %v2915_v0  ;;  %312 = vmatpush1.bf16.msra.mxu1 %v2812_v28 }
  0x33   :  { %2546 = vmatprep.subr.bf16.mxu1 %v2915_v0 }
  0x35   :  { %2517 = vmatpush3.bf16.msra.mxu0 %v2813_v29 }
  0x36   :  { %2522 = vmatprep.subr.bf16.mxu0 %v2915_v0 }
  0xeb   :  { %v90_v31 = vpop.f32.mrb[0].mxu0 }
  0xec   :  { %v2500_v33 = vpop.f32.mrb[1].mxu0  ;;  %v3009_v35 = vadd.f32 %v97_v32, %v90_v31 }
  0xed   :  { %v93_v34 = vpop.f32.mrb[2].mxu0 }
  0xee   :  { %v3011_v36 = vadd.f32 %v97_v32, %v93_v34  ;;  %v2501_v37 = vpop.f32.mrb[3].mxu0 }
  0xf0   :  { %v152_v38 = vpack.c.bf16 %v3011_v36, %v3009_v35 }
  0xf2   :  { %330 = vmatmul.mubr.bf16.vlgmr.msra.gmra.mrb[0].mxu1 %v152_v38  ;;  %2519 = vmatmul.mubr.bf16.vlgmr.msra.gmra.mrb[4].mxu0 %v152_v38 }
  0xf3   :  { %2524 = vmatprep.mubr.msk.bf16.mxu0 %vm2916_vm0, %v2915_v0  ;;  %2548 = vmatprep.mubr.msk.bf16.mxu1 %vm2916_vm0, %v2915_v0 }
 0x1c5   :  { %v331_v46 = vpop.f32.mrb[0].mxu1  ;;  %v374_v47 = vpop.f32.mrb[4].mxu0 }
 0x1c6   :  { %v333_v49 = vpop.f32.mrb[1].mxu1  ;;  %v2520_v50 = vpop.f32.mrb[5].mxu0  ;;  %v332_v61 = vadd.f32 %v331_v46, %v157_v57  ;;  %v375_v1 = vadd.f32 %v374_v47, %v165_v48 }
 0x1c7   :  { %v334_v51 = vadd.f32 %v333_v49, %v161_v44  ;;  %v335_v52 = vpop.f32.mrb[2].mxu1  ;;  %v377_v53 = vpop.f32.mrb[6].mxu0 }
 0x1c8   :  { %v3022_v54 = vadd.f32 %v377_v53, %v165_v48  ;;  %v337_v55 = vpop.f32.mrb[3].mxu1  ;;  %v2521_v56 = vpop.f32.mrb[7].mxu0  ;;  %v3031_v63 = vpack.c.bf16 %v332_v61, %v332_v61  ;;  %v336_v3 = vadd.f32 %v335_v52, %v157_v57  ;;  %v3040_v4 = vpack.c.bf16 %v375_v1, %v375_v1 }
 0x1c9   :  { %v3024_v58 = vpack.c.bf16 %v334_v51, %v334_v51  ;;  %v338_v59 = vadd.f32 %v337_v55, %v161_v44 }
 0x1ca   :  { %v3042_v5 = vpack.c.bf16 %v336_v3, %v336_v3  ;;  %v522_v6 = vsel %vm520_vm4, %v3040_v4, 0  ;;  %v3079_v37 = vpack.c.bf16 %v3022_v54, %v3022_v54 }
 0x1cb   :  { %v404_v60 = vsel %vm399_vm3, %v3024_v58, 0  ;;  %v3029_v62 = vpack.c.bf16 %v338_v59, %v338_v59 }
 0x1cc   :  { %2523 = vmatpush3.bf16.xpose.msra.mxu0 %v404_v60  ;;  %v568_v40 = vsel %vm520_vm4, %v3079_v37, 0 }
 0x1cd   :  { %2528 = vmatprep.subr.bf16.mxu0 %v2915_v0  ;;  %v450_v2 = vsel %vm399_vm3, %v3029_v62, 0 }
 0x1d3   :  { %2525 = vmatmul.mubr.msk.bf16.vlgmr.msra.gmra.mrb[8].mxu0 %vm399_vm3, %v3031_v63 }
 0x1d4   :  { %2529 = vmatpush3.bf16.xpose.msra.mxu0 %v450_v2  ;;  %2530 = vmatprep.mubr.msk.bf16.mxu0 %vm2916_vm0, %v2915_v0 }
 0x1d5   :  { %2534 = vmatprep.subr.bf16.mxu0 %v2915_v0 }
 0x1db   :  { %2531 = vmatmul.mubr.msk.bf16.vlgmr.msra.gmra.mrb[12].mxu0 %vm399_vm3, %v3042_v5 }
 0x1dc   :  { %2535 = vmatpush3.bf16.msra.mxu0 %v522_v6  ;;  %2536 = vmatprep.mubr.msk.bf16.mxu0 %vm2916_vm0, %v2915_v0 }
 0x1dd   :  { %2540 = vmatprep.subr.bf16.mxu0 %v2915_v0 }
 0x2a6   :  { %v440_v8 = vpop.f32.mrb[8].mxu0 }
 0x2a7   :  { %v441_v9 = vadd.f32 %v3054_v7, %v440_v8  ;;  %v2526_v10 = vpop.f32.mrb[9].mxu0 }
 0x2a8   :  { %v443_v11 = vpop.f32.mrb[10].mxu0 }
 0x2a9   :  { %v2527_v12 = vpop.f32.mrb[11].mxu0  ;;  %v493_v13 = vsel %vm492_vm5, %v441_v9, -inf }
 0x2aa   :  { %494 = vmax.xlane.f32.xlu0 %v493_v13 }
 0x2ae   :  { %v486_v15 = vpop.f32.mrb[12].mxu0 }
 0x2af   :  { %v487_v16 = vadd.f32 %v3061_v14, %v486_v15  ;;  %v2532_v17 = vpop.f32.mrb[13].mxu0 }
 0x2b0   :  { %v489_v18 = vpop.f32.mrb[14].mxu0 }
 0x2b1   :  { %v2533_v19 = vpop.f32.mrb[15].mxu0  ;;  %v496_v20 = vsel %vm492_vm5, %v487_v16, -inf }
 0x2b2   :  { %497 = vmax.xlane.f32.xlu0 %v496_v20 }
 0x2c8   :  { %614 = vrot.lane.b32.xlu0 %v3024_v58, %s2918_s28 }
 0x337   :  { %v495_v21 = vpop.xlane.xlu0 %494 }
 0x338   :  { %v499_v22 = vsub.f32 %v441_v9, %v495_v21 }
 0x33a   :  { %v501_v23 = vmul.f32 1.442695, %v499_v22 }
 0x33c   :  { %2822 = vpow2.f32 %v501_v23 }
 0x33f   :  { %v498_v24 = vpop.xlane.xlu0 %497 }
 0x340   :  { %v500_v29 = vsub.f32 %v487_v16, %v498_v24 }
 0x342   :  { %v503_v30 = vmul.f32 1.442695, %v500_v29 }
 0x343   :  { %v615_v25 = vpop.permute.xlu0 %614 }
 0x344   :  { %v620_v26 = vsel %vm399_vm3, %v615_v25, 0  ;;  %2824 = vpow2.f32 %v503_v30 }
 0x345   :  { %2547 = vmatpush3.bf16.xpose.msra.mxu1 %v620_v26 }
 0x346   :  { %v2823_v27 = vpop.eup %2822  ;;  %2558 = vmatprep.subr.bf16.mxu1 %v2915_v0 }
 0x347   :  { %v505_v28 = vsel %vm492_vm5, %v2823_v27, 0.0 }
 0x348   :  { %506 = vadd.xlane.f32.xlu1 %v505_v28 }
 0x34e   :  { %v2825_v31 = vpop.eup %2824 }
 0x34f   :  { %v508_v32 = vsel %vm492_vm5, %v2825_v31, 0.0 }
 0x359   :  { %666 = vrot.lane.b32.xlu1 %v3029_v62, %s2918_s28 }
 0x37d   :  { %509 = vadd.xlane.f32.xlu1 %v508_v32 }
 0x38e   :  { %611 = vrot.lane.b32.xlu1 %v3031_v63, %s2918_s28 }
 0x392   :  { %663 = vrot.lane.b32.xlu1 %v3042_v5, %s2918_s28 }
 0x3d5   :  { %v507_v33 = vpop.xlane.xlu1 %506 }
 0x3d6   :  { %2826 = vrcp.f32 %v507_v33 }
 0x3d9   :  { %v667_v41 = vpop.permute.xlu1 %666 }
 0x3da   :  { %v672_v47 = vsel %vm399_vm3, %v667_v41, 0 }
 0x3e0   :  { %v2827_v34 = vpop.eup %2826 }
 0x3e1   :  { %v513_v38 = vmul.f32 %v2827_v34, %v2823_v27 }
 0x3e3   :  { %v515_v39 = vpack.c.bf16 %v513_v38, %v513_v38 }
 0x3e5   :  { %2537 = vmatmul.mubr.msk.bf16.vlgmr.msra.gmra.mrb[16].mxu0 %vm492_vm5, %v515_v39 }
 0x3e6   :  { %2541 = vmatpush3.bf16.msra.mxu0 %v568_v40  ;;  %2542 = vmatprep.mubr.msk.bf16.mxu0 %vm2916_vm0, %v2915_v0 }
 0x3e7   :  { %2552 = vmatprep.subr.bf16.mxu0 %v2915_v0 }
 0x40a   :  { %v510_v42 = vpop.xlane.xlu1 %509 }
 0x40b   :  { %2828 = vrcp.f32 %v510_v42 }
 0x40e   :  { %v612_v43 = vpop.permute.xlu1 %611 }
 0x40f   :  { %2549 = vmatmul.mubr.msk.bf16.vlgmr.msra.gmra.mrb[4].mxu1 %vm399_vm3, %v612_v43 }
 0x410   :  { %2560 = vmatprep.mubr.msk.bf16.mxu1 %vm2916_vm0, %v2915_v0 }
 0x412   :  { %v664_v48 = vpop.permute.xlu1 %663 }
 0x415   :  { %v2829_v44 = vpop.eup %2828 }
 0x416   :  { %v514_v45 = vmul.f32 %v2829_v44, %v2825_v31 }
 0x418   :  { %v516_v46 = vpack.c.bf16 %v514_v45, %v514_v45 }
 0x41a   :  { %2543 = vmatmul.mubr.msk.bf16.vlgmr.msra.gmra.mrb[20].mxu0 %vm492_vm5, %v516_v46 }
 0x41b   :  { %2553 = vmatpush3.bf16.xpose.msra.mxu0 %v672_v47  ;;  %2554 = vmatprep.mubr.msk.bf16.mxu0 %vm2916_vm0, %v2915_v0 }
 0x41c   :  { %2564 = vmatprep.subr.bf16.mxu0 %v2915_v0 }
 0x422   :  { %2555 = vmatmul.mubr.msk.bf16.vlgmr.msra.gmra.mrb[24].mxu0 %vm399_vm3, %v664_v48 }
 0x423   :  { %2566 = vmatprep.mubr.msk.bf16.mxu0 %vm2916_vm0, %v2915_v0 }
 0x4b8   :  { %v3098_v49 = vpop.f32.mrb[16].mxu0 }
 0x4b9   :  { %v2538_v50 = vpop.f32.mrb[17].mxu0 }
 0x4ba   :  { %v561_v51 = vpop.f32.mrb[18].mxu0 }
 0x4bb   :  { %v2539_v52 = vpop.f32.mrb[19].mxu0 }
 0x4e2   :  { %v656_v53 = vpop.f32.mrb[4].mxu1 }
 0x4e3   :  { %v657_v54 = vadd.f32 %v3054_v7, %v656_v53  ;;  %v2550_v55 = vpop.f32.mrb[5].mxu1 }
 0x4e4   :  { %v659_v56 = vpop.f32.mrb[6].mxu1 }
 0x4e5   :  { %v2551_v57 = vpop.f32.mrb[7].mxu1  ;;  %v714_v59 = vsel %vm492_vm5, %v657_v54, -inf }
 0x4e6   :  { %715 = vmax.xlane.f32.xlu0 %v714_v59 }
 0x4ed   :  { %v3102_v60 = vpop.f32.mrb[20].mxu0 }
 0x4ee   :  { %v2544_v61 = vpop.f32.mrb[21].mxu0 }
 0x4ef   :  { %v607_v1 = vpop.f32.mrb[22].mxu0 }
 0x4f0   :  { %v2545_v2 = vpop.f32.mrb[23].mxu0 }
 0x4f5   :  { %v708_v3 = vpop.f32.mrb[24].mxu0 }
 0x4f6   :  { %v709_v6 = vadd.f32 %v3061_v14, %v708_v3  ;;  %v2556_v8 = vpop.f32.mrb[25].mxu0 }
 0x4f7   :  { %v711_v9 = vpop.f32.mrb[26].mxu0 }
 0x4f8   :  { %v2557_v10 = vpop.f32.mrb[27].mxu0  ;;  %v717_v11 = vsel %vm492_vm5, %v709_v6, -inf }
 0x4f9   :  { %718 = vmax.xlane.f32.xlu1 %v717_v11 }
 0x50a   :  { %788 = vrot.lane.b32.xlu1 %v3079_v37, %s2918_s28 }
 0x50e   :  { %838 = vrot.lane.b32.xlu1 %v3024_v58, %s2919_s29 }
 0x512   :  { %888 = vrot.lane.b32.xlu1 %v3029_v62, %s2919_s29 }
 0x516   :  { %886 = vrot.lane.b32.xlu1 %v3042_v5, %s2919_s29 }
 0x573   :  { %v716_v12 = vpop.xlane.xlu0 %715 }
 0x574   :  { %v720_v13 = vsub.f32 %v657_v54, %v716_v12 }
 0x576   :  { %v722_v15 = vmul.f32 1.442695, %v720_v13 }
 0x578   :  { %2830 = vpow2.f32 %v722_v15 }
 0x582   :  { %v2831_v16 = vpop.eup %2830 }
 0x583   :  { %v726_v17 = vsel %vm492_vm5, %v2831_v16, 0.0 }
 0x584   :  { %727 = vadd.xlane.f32.xlu0 %v726_v17 }
 0x586   :  { %v719_v18 = vpop.xlane.xlu1 %718 }
 0x587   :  { %v721_v19 = vsub.f32 %v709_v6, %v719_v18 }
 0x589   :  { %v724_v20 = vmul.f32 1.442695, %v721_v19 }
 0x58a   :  { %v789_v21 = vpop.permute.xlu1 %788 }
 0x58b   :  { %2832 = vpow2.f32 %v724_v20  ;;  %v794_v22 = vsel %vm520_vm4, %v789_v21, 0 }
 0x58c   :  { %2565 = vmatpush3.bf16.msra.mxu0 %v794_v22 }
 0x58d   :  { %2576 = vmatprep.subr.bf16.mxu0 %v2915_v0 }
 0x58e   :  { %v839_v31 = vpop.permute.xlu1 %838 }
 0x58f   :  { %v844_v39 = vsel %vm399_vm3, %v839_v31, 0 }
 0x592   :  { %v889_v38 = vpop.permute.xlu1 %888 }
 0x593   :  { %v894_v41 = vsel %vm399_vm3, %v889_v38, 0 }
 0x595   :  { %v2833_v23 = vpop.eup %2832 }
 0x596   :  { %v729_v24 = vsel %vm492_vm5, %v2833_v23, 0.0  ;;  %v887_v43 = vpop.permute.xlu1 %886 }
 0x597   :  { %730 = vadd.xlane.f32.xlu0 %v729_v24 }
 0x5ad   :  { %739 = vrot.lane.b32.xlu0 %v3040_v4, %s2918_s28 }
 0x5b1   :  { %836 = vrot.lane.b32.xlu0 %v3031_v63, %s2919_s29 }
 0x611   :  { %v728_v25 = vpop.xlane.xlu0 %727 }
 0x612   :  { %2834 = vrcp.f32 %v728_v25 }
 0x61c   :  { %v2835_v26 = vpop.eup %2834 }
 0x61d   :  { %v734_v28 = vmul.f32 %v2835_v26, %v2831_v16 }
 0x61f   :  { %v736_v32 = vpack.c.bf16 %v734_v28, %v734_v28 }
 0x624   :  { %v731_v27 = vpop.xlane.xlu0 %730 }
 0x625   :  { %2836 = vrcp.f32 %v731_v27 }
 0x628   :  { %v740_v29 = vpop.permute.xlu0 %739 }
 0x629   :  { %v745_v30 = vsel %vm520_vm4, %v740_v29, 0 }
 0x62a   :  { %2559 = vmatpush3.bf16.msra.mxu1 %v745_v30 }
 0x62b   :  { %2570 = vmatprep.subr.bf16.mxu1 %v2915_v0 }
 0x62c   :  { %v837_v42 = vpop.permute.xlu0 %836 }
 0x62d   :  { %2561 = vmatmul.mubr.msk.bf16.vlgmr.msra.gmra.mrb[8].mxu1 %vm492_vm5, %v736_v32 }
 0x62e   :  { %2572 = vmatprep.mubr.msk.bf16.mxu1 %vm2916_vm0, %v2915_v0 }
 0x62f   :  { %v2837_v33 = vpop.eup %2836 }
 0x630   :  { %v735_v34 = vmul.f32 %v2837_v33, %v2833_v23 }
 0x632   :  { %v737_v40 = vpack.c.bf16 %v735_v34, %v735_v34 }
 0x633   :  { %2571 = vmatpush3.bf16.xpose.msra.mxu1 %v844_v39 }
 0x634   :  { %2567 = vmatmul.mubr.msk.bf16.vlgmr.msra.gmra.mrb[28].mxu0 %vm492_vm5, %v737_v40  ;;  %2582 = vmatprep.subr.bf16.mxu1 %v2915_v0 }
 0x635   :  { %2577 = vmatpush3.bf16.xpose.msra.mxu0 %v894_v41  ;;  %2578 = vmatprep.mubr.msk.bf16.mxu0 %vm2916_vm0, %v2915_v0 }
 0x636   :  { %2588 = vmatprep.subr.bf16.mxu0 %v2915_v0 }
 0x63a   :  { %2573 = vmatmul.mubr.msk.bf16.vlgmr.msra.gmra.mrb[12].mxu1 %vm399_vm3, %v837_v42 }
 0x63b   :  { %2584 = vmatprep.mubr.msk.bf16.mxu1 %vm2916_vm0, %v2915_v0 }
 0x63c   :  { %2579 = vmatmul.mubr.msk.bf16.vlgmr.msra.gmra.mrb[32].mxu0 %vm399_vm3, %v887_v43 }
 0x63d   :  { %2590 = vmatprep.mubr.msk.bf16.mxu0 %vm2916_vm0, %v2915_v0 }
 0x700   :  { %v3140_v44 = vpop.f32.mrb[8].mxu1 }
 0x701   :  { %v2562_v45 = vpop.f32.mrb[9].mxu1 }
 0x702   :  { %v784_v46 = vpop.f32.mrb[10].mxu1 }
 0x703   :  { %v2563_v47 = vpop.f32.mrb[11].mxu1 }
 0x707   :  { %v3142_v48 = vpop.f32.mrb[28].mxu0 }
 0x708   :  { %v2747_v50 = vpack.i.bf16 %v3142_v48, %v3140_v44  ;;  %v2568_v51 = vpop.f32.mrb[29].mxu0 }
 0x709   :  { %v833_v52 = vpop.f32.mrb[30].mxu0 }
 0x70a   :  { %v2569_v53 = vpop.f32.mrb[31].mxu0 }
 0x70d   :  { %v880_v54 = vpop.f32.mrb[12].mxu1 }
 0x70e   :  { %v881_v55 = vadd.f32 %v3054_v7, %v880_v54  ;;  %v2574_v56 = vpop.f32.mrb[13].mxu1 }
 0x70f   :  { %v883_v57 = vpop.f32.mrb[14].mxu1  ;;  %v930_v59 = vpop.f32.mrb[32].mxu0 }
 0x710   :  { %v931_v61 = vadd.f32 %v3061_v14, %v930_v59  ;;  %v2575_v1 = vpop.f32.mrb[15].mxu1  ;;  %v2580_v2 = vpop.f32.mrb[33].mxu0  ;;  %v936_v3 = vsel %vm492_vm5, %v881_v55, -inf }
 0x711   :  { %937 = vmax.xlane.f32.xlu0 %v936_v3  ;;  %v933_v6 = vpop.f32.mrb[34].mxu0 }
 0x712   :  { %v2581_v8 = vpop.f32.mrb[35].mxu0  ;;  %v939_v9 = vsel %vm492_vm5, %v931_v61, -inf }
 0x713   :  { %940 = vmax.xlane.f32.xlu1 %v939_v9 }
 0x724   :  { %1008 = vrot.lane.b32.xlu1 %v3079_v37, %s2919_s29 }
 0x728   :  { %1058 = vrot.lane.b32.xlu1 %v3024_v58, %s2920_s30 }
 0x72c   :  { %1108 = vrot.lane.b32.xlu1 %v3029_v62, %s2920_s30 }
 0x730   :  { %1106 = vrot.lane.b32.xlu1 %v3042_v5, %s2920_s30 }
 0x79e   :  { %v938_v10 = vpop.xlane.xlu0 %937 }
 0x79f   :  { %v942_v11 = vsub.f32 %v881_v55, %v938_v10 }
 0x7a0   :  { %v941_v12 = vpop.xlane.xlu1 %940 }
 0x7a1   :  { %v944_v13 = vmul.f32 1.442695, %v942_v11  ;;  %v943_v15 = vsub.f32 %v931_v61, %v941_v12 }
 0x7a3   :  { %2838 = vpow2.f32 %v944_v13  ;;  %v946_v16 = vmul.f32 1.442695, %v943_v15 }
 0x7a4   :  { %v1009_v17 = vpop.permute.xlu1 %1008 }
 0x7a5   :  { %2840 = vpow2.f32 %v946_v16  ;;  %v1014_v18 = vsel %vm520_vm4, %v1009_v17, 0 }
 0x7a6   :  { %2589 = vmatpush3.bf16.msra.mxu0 %v1014_v18 }
 0x7a7   :  { %2600 = vmatprep.subr.bf16.mxu0 %v2915_v0 }
 0x7a8   :  { %v1059_v28 = vpop.permute.xlu1 %1058 }
 0x7a9   :  { %v1064_v34 = vsel %vm399_vm3, %v1059_v28, 0 }
 0x7ac   :  { %v1109_v33 = vpop.permute.xlu1 %1108 }
 0x7ad   :  { %v2839_v19 = vpop.eup %2838  ;;  %v1114_v39 = vsel %vm399_vm3, %v1109_v33, 0 }
 0x7ae   :  { %v948_v20 = vsel %vm492_vm5, %v2839_v19, 0.0 }
 0x7af   :  { %v2841_v21 = vpop.eup %2840  ;;  %949 = vadd.xlane.f32.xlu0 %v948_v20 }
 0x7b0   :  { %v951_v22 = vsel %vm492_vm5, %v2841_v21, 0.0  ;;  %v1107_v41 = vpop.permute.xlu1 %1106 }
 0x7b3   :  { %952 = vadd.xlane.f32.xlu0 %v951_v22 }
 0x7c9   :  { %960 = vrot.lane.b32.xlu0 %v3040_v4, %s2919_s29 }
 0x7cd   :  { %1056 = vrot.lane.b32.xlu0 %v3031_v63, %s2920_s30 }
 0x83c   :  { %v950_v23 = vpop.xlane.xlu0 %949 }
 0x83d   :  { %2842 = vrcp.f32 %v950_v23 }
 0x840   :  { %v953_v24 = vpop.xlane.xlu0 %952 }
 0x841   :  { %2844 = vrcp.f32 %v953_v24 }
 0x844   :  { %v961_v25 = vpop.permute.xlu0 %960 }
 0x845   :  { %v966_v26 = vsel %vm520_vm4, %v961_v25, 0 }
 0x846   :  { %2583 = vmatpush3.bf16.msra.mxu1 %v966_v26 }
 0x847   :  { %v2843_v27 = vpop.eup %2842  ;;  %2594 = vmatprep.subr.bf16.mxu1 %v2915_v0 }
 0x848   :  { %v956_v29 = vmul.f32 %v2843_v27, %v2839_v19  ;;  %v1057_v40 = vpop.permute.xlu0 %1056 }
 0x84a   :  { %v958_v30 = vpack.c.bf16 %v956_v29, %v956_v29 }
 0x84b   :  { %v2845_v31 = vpop.eup %2844 }
 0x84c   :  { %v957_v32 = vmul.f32 %v2845_v31, %v2841_v21  ;;  %2585 = vmatmul.mubr.msk.bf16.vlgmr.msra.gmra.mrb[16].mxu1 %vm492_vm5, %v958_v30 }
 0x84d   :  { %2596 = vmatprep.mubr.msk.bf16.mxu1 %vm2916_vm0, %v2915_v0 }
 0x84e   :  { %v959_v38 = vpack.c.bf16 %v957_v32, %v957_v32 }
 0x84f   :  { %2595 = vmatpush3.bf16.xpose.msra.mxu1 %v1064_v34 }
 0x850   :  { %2591 = vmatmul.mubr.msk.bf16.vlgmr.msra.gmra.mrb[36].mxu0 %vm492_vm5, %v959_v38  ;;  %2606 = vmatprep.subr.bf16.mxu1 %v2915_v0 }
 0x851   :  { %2601 = vmatpush3.bf16.xpose.msra.mxu0 %v1114_v39  ;;  %2602 = vmatprep.mubr.msk.bf16.mxu0 %vm2916_vm0, %v2915_v0 }
 0x852   :  { %2612 = vmatprep.subr.bf16.mxu0 %v2915_v0 }
 0x856   :  { %2597 = vmatmul.mubr.msk.bf16.vlgmr.msra.gmra.mrb[20].mxu1 %vm399_vm3, %v1057_v40 }
 0x857   :  { %2608 = vmatprep.mubr.msk.bf16.mxu1 %vm2916_vm0, %v2915_v0 }
 0x858   :  { %2603 = vmatmul.mubr.msk.bf16.vlgmr.msra.gmra.mrb[40].mxu0 %vm399_vm3, %v1107_v41 }
 0x859   :  { %2614 = vmatprep.mubr.msk.bf16.mxu0 %vm2916_vm0, %v2915_v0 }
 0x91f   :  { %v3184_v42 = vpop.f32.mrb[16].mxu1 }
 0x920   :  { %v2586_v43 = vpop.f32.mrb[17].mxu1 }
 0x921   :  { %v1005_v45 = vpop.f32.mrb[18].mxu1 }
 0x922   :  { %v2587_v46 = vpop.f32.mrb[19].mxu1 }
 0x923   :  { %v3186_v47 = vpop.f32.mrb[36].mxu0 }
 0x924   :  { %v2752_v51 = vpack.i.bf16 %v3186_v47, %v3184_v42  ;;  %v2592_v52 = vpop.f32.mrb[37].mxu0 }
 0x925   :  { %v1053_v53 = vpop.f32.mrb[38].mxu0 }
 0x926   :  { %v2593_v54 = vpop.f32.mrb[39].mxu0 }
 0x929   :  { %v1100_v55 = vpop.f32.mrb[20].mxu1 }
 0x92a   :  { %v1101_v56 = vadd.f32 %v3054_v7, %v1100_v55  ;;  %v2598_v57 = vpop.f32.mrb[21].mxu1 }
 0x92b   :  { %v1103_v59 = vpop.f32.mrb[22].mxu1  ;;  %v1150_v61 = vpop.f32.mrb[40].mxu0 }
 0x92c   :  { %v1151_v1 = vadd.f32 %v3061_v14, %v1150_v61  ;;  %v2599_v2 = vpop.f32.mrb[23].mxu1  ;;  %v2604_v3 = vpop.f32.mrb[41].mxu0  ;;  %v1156_v6 = vsel %vm492_vm5, %v1101_v56, -inf }
 0x92d   :  { %1157 = vmax.xlane.f32.xlu0 %v1156_v6  ;;  %v1153_v8 = vpop.f32.mrb[42].mxu0 }
 0x92e   :  { %v2605_v9 = vpop.f32.mrb[43].mxu0  ;;  %v1159_v10 = vsel %vm492_vm5, %v1151_v1, -inf }
 0x92f   :  { %1160 = vmax.xlane.f32.xlu1 %v1159_v10 }
 0x940   :  { %1228 = vrot.lane.b32.xlu1 %v3079_v37, %s2920_s30 }
 0x944   :  { %1278 = vrot.lane.b32.xlu1 %v3024_v58, %s2921_s9 }
 0x948   :  { %1328 = vrot.lane.b32.xlu1 %v3029_v62, %s2921_s9 }
 0x94c   :  { %1326 = vrot.lane.b32.xlu1 %v3042_v5, %s2921_s9 }
 0x9ba   :  { %v1158_v11 = vpop.xlane.xlu0 %1157 }
 0x9bb   :  { %v1162_v12 = vsub.f32 %v1101_v56, %v1158_v11 }
 0x9bc   :  { %v1161_v13 = vpop.xlane.xlu1 %1160 }
 0x9bd   :  { %v1164_v15 = vmul.f32 1.442695, %v1162_v12  ;;  %v1163_v16 = vsub.f32 %v1151_v1, %v1161_v13 }
 0x9bf   :  { %2846 = vpow2.f32 %v1164_v15  ;;  %v1166_v17 = vmul.f32 1.442695, %v1163_v16 }
 0x9c0   :  { %v1229_v18 = vpop.permute.xlu1 %1228 }
 0x9c1   :  { %2848 = vpow2.f32 %v1166_v17  ;;  %v1234_v19 = vsel %vm520_vm4, %v1229_v18, 0 }
 0x9c2   :  { %2613 = vmatpush3.bf16.msra.mxu0 %v1234_v19 }
 0x9c3   :  { %2624 = vmatprep.subr.bf16.mxu0 %v2915_v0 }
 0x9c4   :  { %v1279_v29 = vpop.permute.xlu1 %1278 }
 0x9c5   :  { %v1284_v38 = vsel %vm399_vm3, %v1279_v29, 0 }
 0x9c8   :  { %v1329_v34 = vpop.permute.xlu1 %1328 }
 0x9c9   :  { %v2847_v20 = vpop.eup %2846  ;;  %v1334_v40 = vsel %vm399_vm3, %v1329_v34, 0 }
 0x9ca   :  { %v1168_v21 = vsel %vm492_vm5, %v2847_v20, 0.0 }
 0x9cb   :  { %v2849_v22 = vpop.eup %2848  ;;  %1169 = vadd.xlane.f32.xlu0 %v1168_v21 }
 0x9cc   :  { %v1171_v23 = vsel %vm492_vm5, %v2849_v22, 0.0  ;;  %v1327_v43 = vpop.permute.xlu1 %1326 }
 0x9cf   :  { %1172 = vadd.xlane.f32.xlu0 %v1171_v23 }
 0x9e5   :  { %1180 = vrot.lane.b32.xlu0 %v3040_v4, %s2920_s30 }
 0x9e9   :  { %1276 = vrot.lane.b32.xlu0 %v3031_v63, %s2921_s9 }
 0xa58   :  { %v1170_v24 = vpop.xlane.xlu0 %1169 }
 0xa59   :  { %2850 = vrcp.f32 %v1170_v24 }
 0xa5c   :  { %v1173_v25 = vpop.xlane.xlu0 %1172 }
 0xa5d   :  { %2852 = vrcp.f32 %v1173_v25 }
 0xa60   :  { %v1181_v26 = vpop.permute.xlu0 %1180 }
 0xa61   :  { %v1186_v27 = vsel %vm520_vm4, %v1181_v26, 0 }
 0xa62   :  { %2607 = vmatpush3.bf16.msra.mxu1 %v1186_v27 }
 0xa63   :  { %v2851_v28 = vpop.eup %2850  ;;  %2618 = vmatprep.subr.bf16.mxu1 %v2915_v0 }
 0xa64   :  { %v1176_v30 = vmul.f32 %v2851_v28, %v2847_v20  ;;  %v1277_v41 = vpop.permute.xlu0 %1276 }
 0xa66   :  { %v1178_v31 = vpack.c.bf16 %v1176_v30, %v1176_v30 }
 0xa67   :  { %v2853_v32 = vpop.eup %2852 }
 0xa68   :  { %v1177_v33 = vmul.f32 %v2853_v32, %v2849_v22  ;;  %2609 = vmatmul.mubr.msk.bf16.vlgmr.msra.gmra.mrb[24].mxu1 %vm492_vm5, %v1178_v31 }
 0xa69   :  { %2620 = vmatprep.mubr.msk.bf16.mxu1 %vm2916_vm0, %v2915_v0 }
 0xa6a   :  { %v1179_v39 = vpack.c.bf16 %v1177_v33, %v1177_v33 }
 0xa6b   :  { %2619 = vmatpush3.bf16.xpose.msra.mxu1 %v1284_v38 }
 0xa6c   :  { %2615 = vmatmul.mubr.msk.bf16.vlgmr.msra.gmra.mrb[44].mxu0 %vm492_vm5, %v1179_v39  ;;  %2630 = vmatprep.subr.bf16.mxu1 %v2915_v0 }
 0xa6d   :  { %2625 = vmatpush3.bf16.xpose.msra.mxu0 %v1334_v40  ;;  %2626 = vmatprep.mubr.msk.bf16.mxu0 %vm2916_vm0, %v2915_v0 }
 0xa6e   :  { %2636 = vmatprep.subr.bf16.mxu0 %v2915_v0 }
 0xa72   :  { %2621 = vmatmul.mubr.msk.bf16.vlgmr.msra.gmra.mrb[28].mxu1 %vm399_vm3, %v1277_v41 }
 0xa73   :  { %2632 = vmatprep.mubr.msk.bf16.mxu1 %vm2916_vm0, %v2915_v0 }
 0xa74   :  { %2627 = vmatmul.mubr.msk.bf16.vlgmr.msra.gmra.mrb[48].mxu0 %vm399_vm3, %v1327_v43 }
 0xa75   :  { %2638 = vmatprep.mubr.msk.bf16.mxu0 %vm2916_vm0, %v2915_v0 }
 0xb3b   :  { %v3228_v45 = vpop.f32.mrb[24].mxu1 }
 0xb3c   :  { %v2610_v46 = vpop.f32.mrb[25].mxu1 }
 0xb3d   :  { %v1225_v52 = vpop.f32.mrb[26].mxu1 }
 0xb3e   :  { %v2611_v53 = vpop.f32.mrb[27].mxu1 }
 0xb3f   :  { %v3230_v54 = vpop.f32.mrb[44].mxu0 }
 0xb40   :  { %v2757_v55 = vpack.i.bf16 %v3230_v54, %v3228_v45  ;;  %v2616_v56 = vpop.f32.mrb[45].mxu0 }
 0xb41   :  { %v1273_v57 = vpop.f32.mrb[46].mxu0 }
 0xb42   :  { %v2617_v59 = vpop.f32.mrb[47].mxu0 }
 0xb45   :  { %v1320_v61 = vpop.f32.mrb[28].mxu1 }
 0xb46   :  { %v1321_v1 = vadd.f32 %v3054_v7, %v1320_v61  ;;  %v2622_v2 = vpop.f32.mrb[29].mxu1 }
 0xb47   :  { %v1323_v3 = vpop.f32.mrb[30].mxu1  ;;  %v1370_v6 = vpop.f32.mrb[48].mxu0 }
 0xb48   :  { %v1371_v8 = vadd.f32 %v3061_v14, %v1370_v6  ;;  %v2623_v9 = vpop.f32.mrb[31].mxu1  ;;  %v2628_v10 = vpop.f32.mrb[49].mxu0  ;;  %v1376_v11 = vsel %vm492_vm5, %v1321_v1, -inf }
 0xb49   :  { %1377 = vmax.xlane.f32.xlu0 %v1376_v11  ;;  %v1373_v12 = vpop.f32.mrb[50].mxu0 }
 0xb4a   :  { %v2629_v13 = vpop.f32.mrb[51].mxu0  ;;  %v1379_v15 = vsel %vm492_vm5, %v1371_v8, -inf }
 0xb4b   :  { %1380 = vmax.xlane.f32.xlu1 %v1379_v15 }
 0xb5c   :  { %1448 = vrot.lane.b32.xlu1 %v3079_v37, %s2921_s9 }
 0xb60   :  { %1498 = vrot.lane.b32.xlu1 %v3024_v58, %s2922_s10 }
 0xb64   :  { %1548 = vrot.lane.b32.xlu1 %v3029_v62, %s2922_s10 }
 0xb68   :  { %1546 = vrot.lane.b32.xlu1 %v3042_v5, %s2922_s10 }
 0xbd6   :  { %v1378_v16 = vpop.xlane.xlu0 %1377 }
 0xbd7   :  { %v1382_v17 = vsub.f32 %v1321_v1, %v1378_v16 }
 0xbd8   :  { %v1381_v18 = vpop.xlane.xlu1 %1380 }
 0xbd9   :  { %v1384_v19 = vmul.f32 1.442695, %v1382_v17  ;;  %v1383_v20 = vsub.f32 %v1371_v8, %v1381_v18 }
 0xbdb   :  { %2854 = vpow2.f32 %v1384_v19  ;;  %v1386_v21 = vmul.f32 1.442695, %v1383_v20 }
 0xbdc   :  { %v1449_v22 = vpop.permute.xlu1 %1448 }
 0xbdd   :  { %2856 = vpow2.f32 %v1386_v21  ;;  %v1454_v23 = vsel %vm520_vm4, %v1449_v22, 0 }
 0xbde   :  { %2637 = vmatpush3.bf16.msra.mxu0 %v1454_v23 }
 0xbdf   :  { %2648 = vmatprep.subr.bf16.mxu0 %v2915_v0 }
 0xbe0   :  { %v1499_v33 = vpop.permute.xlu1 %1498 }
 0xbe1   :  { %v1504_v43 = vsel %vm399_vm3, %v1499_v33, 0 }
 0xbe4   :  { %v1549_v41 = vpop.permute.xlu1 %1548 }
 0xbe5   :  { %v2855_v24 = vpop.eup %2854  ;;  %v1554_v52 = vsel %vm399_vm3, %v1549_v41, 0 }
 0xbe6   :  { %v1388_v25 = vsel %vm492_vm5, %v2855_v24, 0.0 }
 0xbe7   :  { %v2857_v26 = vpop.eup %2856  ;;  %1389 = vadd.xlane.f32.xlu0 %v1388_v25 }
 0xbe8   :  { %v1391_v27 = vsel %vm492_vm5, %v2857_v26, 0.0  ;;  %v1547_v56 = vpop.permute.xlu1 %1546 }
 0xbeb   :  { %1392 = vadd.xlane.f32.xlu0 %v1391_v27 }
 0xc01   :  { %1400 = vrot.lane.b32.xlu0 %v3040_v4, %s2921_s9 }
 0xc05   :  { %1496 = vrot.lane.b32.xlu0 %v3031_v63, %s2922_s10 }
 0xc74   :  { %v1390_v28 = vpop.xlane.xlu0 %1389 }
 0xc75   :  { %2858 = vrcp.f32 %v1390_v28 }
 0xc78   :  { %v1393_v29 = vpop.xlane.xlu0 %1392 }
 0xc79   :  { %2860 = vrcp.f32 %v1393_v29 }
 0xc7c   :  { %v1401_v30 = vpop.permute.xlu0 %1400 }
 0xc7d   :  { %v1406_v31 = vsel %vm520_vm4, %v1401_v30, 0 }
 0xc7e   :  { %2631 = vmatpush3.bf16.msra.mxu1 %v1406_v31 }
 0xc7f   :  { %v2859_v32 = vpop.eup %2858  ;;  %2642 = vmatprep.subr.bf16.mxu1 %v2915_v0 }
 0xc80   :  { %v1396_v34 = vmul.f32 %v2859_v32, %v2855_v24  ;;  %v1497_v53 = vpop.permute.xlu0 %1496 }
 0xc82   :  { %v1398_v38 = vpack.c.bf16 %v1396_v34, %v1396_v34 }
 0xc83   :  { %v2861_v39 = vpop.eup %2860 }
 0xc84   :  { %v1397_v40 = vmul.f32 %v2861_v39, %v2857_v26  ;;  %2633 = vmatmul.mubr.msk.bf16.vlgmr.msra.gmra.mrb[32].mxu1 %vm492_vm5, %v1398_v38 }
 0xc85   :  { %2644 = vmatprep.mubr.msk.bf16.mxu1 %vm2916_vm0, %v2915_v0 }
 0xc86   :  { %v1399_v46 = vpack.c.bf16 %v1397_v40, %v1397_v40 }
 0xc87   :  { %2643 = vmatpush3.bf16.xpose.msra.mxu1 %v1504_v43 }
 0xc88   :  { %2639 = vmatmul.mubr.msk.bf16.vlgmr.msra.gmra.mrb[52].mxu0 %vm492_vm5, %v1399_v46  ;;  %2654 = vmatprep.subr.bf16.mxu1 %v2915_v0 }
 0xc89   :  { %2649 = vmatpush3.bf16.xpose.msra.mxu0 %v1554_v52  ;;  %2650 = vmatprep.mubr.msk.bf16.mxu0 %vm2916_vm0, %v2915_v0 }
 0xc8a   :  { %2660 = vmatprep.subr.bf16.mxu0 %v2915_v0 }
 0xc8e   :  { %2645 = vmatmul.mubr.msk.bf16.vlgmr.msra.gmra.mrb[36].mxu1 %vm399_vm3, %v1497_v53 }
 0xc8f   :  { %2656 = vmatprep.mubr.msk.bf16.mxu1 %vm2916_vm0, %v2915_v0 }
 0xc90   :  { %2651 = vmatmul.mubr.msk.bf16.vlgmr.msra.gmra.mrb[56].mxu0 %vm399_vm3, %v1547_v56 }
 0xc91   :  { %2662 = vmatprep.mubr.msk.bf16.mxu0 %vm2916_vm0, %v2915_v0 }
 0xd57   :  { %v3272_v57 = vpop.f32.mrb[32].mxu1 }
 0xd58   :  { %v2634_v59 = vpop.f32.mrb[33].mxu1 }
 0xd59   :  { %v1445_v61 = vpop.f32.mrb[34].mxu1 }
 0xd5a   :  { %v2635_v1 = vpop.f32.mrb[35].mxu1 }
 0xd5b   :  { %v3274_v2 = vpop.f32.mrb[52].mxu0 }
 0xd5c   :  { %v2762_v3 = vpack.i.bf16 %v3274_v2, %v3272_v57  ;;  %v2640_v6 = vpop.f32.mrb[53].mxu0 }
 0xd5d   :  { %v1493_v8 = vpop.f32.mrb[54].mxu0 }
 0xd5e   :  { %v2641_v9 = vpop.f32.mrb[55].mxu0 }
 0xd61   :  { %v1540_v10 = vpop.f32.mrb[36].mxu1 }
 0xd62   :  { %v1541_v11 = vadd.f32 %v3054_v7, %v1540_v10  ;;  %v2646_v12 = vpop.f32.mrb[37].mxu1 }
 0xd63   :  { %v1543_v13 = vpop.f32.mrb[38].mxu1  ;;  %v1590_v15 = vpop.f32.mrb[56].mxu0 }
 0xd64   :  { %v1591_v16 = vadd.f32 %v3061_v14, %v1590_v15  ;;  %v2647_v17 = vpop.f32.mrb[39].mxu1  ;;  %v2652_v18 = vpop.f32.mrb[57].mxu0  ;;  %v1596_v19 = vsel %vm492_vm5, %v1541_v11, -inf }
 0xd65   :  { %1597 = vmax.xlane.f32.xlu0 %v1596_v19  ;;  %v1593_v20 = vpop.f32.mrb[58].mxu0 }
 0xd66   :  { %v2653_v21 = vpop.f32.mrb[59].mxu0  ;;  %v1599_v22 = vsel %vm492_vm5, %v1591_v16, -inf }
 0xd67   :  { %1600 = vmax.xlane.f32.xlu1 %v1599_v22 }
 0xd78   :  { %1668 = vrot.lane.b32.xlu1 %v3079_v37, %s2922_s10 }
 0xd7c   :  { %1718 = vrot.lane.b32.xlu1 %v3024_v58, %s2923_s11 }
 0xd80   :  { %1768 = vrot.lane.b32.xlu1 %v3029_v62, %s2923_s11 }
 0xd84   :  { %1766 = vrot.lane.b32.xlu1 %v3042_v5, %s2923_s11 }
 0xdf2   :  { %v1598_v23 = vpop.xlane.xlu0 %1597 }
 0xdf3   :  { %v1602_v24 = vsub.f32 %v1541_v11, %v1598_v23 }
 0xdf4   :  { %v1601_v25 = vpop.xlane.xlu1 %1600 }
 0xdf5   :  { %v1604_v26 = vmul.f32 1.442695, %v1602_v24  ;;  %v1603_v27 = vsub.f32 %v1591_v16, %v1601_v25 }
 0xdf7   :  { %2862 = vpow2.f32 %v1604_v26  ;;  %v1606_v28 = vmul.f32 1.442695, %v1603_v27 }
 0xdf8   :  { %v1669_v29 = vpop.permute.xlu1 %1668 }
 0xdf9   :  { %2864 = vpow2.f32 %v1606_v28  ;;  %v1674_v30 = vsel %vm520_vm4, %v1669_v29, 0 }
 0xdfa   :  { %2661 = vmatpush3.bf16.msra.mxu0 %v1674_v30 }
 0xdfb   :  { %2672 = vmatprep.subr.bf16.mxu0 %v2915_v0 }
 0xdfc   :  { %v1719_v46 = vpop.permute.xlu1 %1718 }
 0xdfd   :  { %v1724_v1 = vsel %vm399_vm3, %v1719_v46, 0 }
 0xe00   :  { %v1769_v61 = vpop.permute.xlu1 %1768 }
 0xe01   :  { %v2863_v31 = vpop.eup %2862  ;;  %v1774_v8 = vsel %vm399_vm3, %v1769_v61, 0 }
 0xe02   :  { %v1608_v32 = vsel %vm492_vm5, %v2863_v31, 0.0 }
 0xe03   :  { %v2865_v33 = vpop.eup %2864  ;;  %1609 = vadd.xlane.f32.xlu0 %v1608_v32 }
 0xe04   :  { %v1611_v34 = vsel %vm492_vm5, %v2865_v33, 0.0  ;;  %v1767_v10 = vpop.permute.xlu1 %1766 }
 0xe07   :  { %1612 = vadd.xlane.f32.xlu0 %v1611_v34 }
 0xe1d   :  { %1620 = vrot.lane.b32.xlu0 %v3040_v4, %s2922_s10 }
 0xe21   :  { %1716 = vrot.lane.b32.xlu0 %v3031_v63, %s2923_s11 }
 0xe90   :  { %v1610_v38 = vpop.xlane.xlu0 %1609 }
 0xe91   :  { %2866 = vrcp.f32 %v1610_v38 }
 0xe94   :  { %v1613_v39 = vpop.xlane.xlu0 %1612 }
 0xe95   :  { %2868 = vrcp.f32 %v1613_v39 }
 0xe98   :  { %v1621_v40 = vpop.permute.xlu0 %1620 }
 0xe99   :  { %v1626_v41 = vsel %vm520_vm4, %v1621_v40, 0 }
 0xe9a   :  { %2655 = vmatpush3.bf16.msra.mxu1 %v1626_v41 }
 0xe9b   :  { %v2867_v43 = vpop.eup %2866  ;;  %2666 = vmatprep.subr.bf16.mxu1 %v2915_v0 }
 0xe9c   :  { %v1616_v52 = vmul.f32 %v2867_v43, %v2863_v31  ;;  %v1717_v9 = vpop.permute.xlu0 %1716 }
 0xe9e   :  { %v1618_v53 = vpack.c.bf16 %v1616_v52, %v1616_v52 }
 0xe9f   :  { %v2869_v56 = vpop.eup %2868 }
 0xea0   :  { %v1617_v59 = vmul.f32 %v2869_v56, %v2865_v33  ;;  %2657 = vmatmul.mubr.msk.bf16.vlgmr.msra.gmra.mrb[40].mxu1 %vm492_vm5, %v1618_v53 }
 0xea1   :  { %2668 = vmatprep.mubr.msk.bf16.mxu1 %vm2916_vm0, %v2915_v0 }
 0xea2   :  { %v1619_v6 = vpack.c.bf16 %v1617_v59, %v1617_v59 }
 0xea3   :  { %2667 = vmatpush3.bf16.xpose.msra.mxu1 %v1724_v1 }
 0xea4   :  { %2663 = vmatmul.mubr.msk.bf16.vlgmr.msra.gmra.mrb[60].mxu0 %vm492_vm5, %v1619_v6  ;;  %2678 = vmatprep.subr.bf16.mxu1 %v2915_v0 }
 0xea5   :  { %2673 = vmatpush3.bf16.xpose.msra.mxu0 %v1774_v8  ;;  %2674 = vmatprep.mubr.msk.bf16.mxu0 %vm2916_vm0, %v2915_v0 }
 0xea6   :  { %2684 = vmatprep.subr.bf16.mxu0 %v2915_v0 }
 0xeaa   :  { %2669 = vmatmul.mubr.msk.bf16.vlgmr.msra.gmra.mrb[44].mxu1 %vm399_vm3, %v1717_v9 }
 0xeab   :  { %2680 = vmatprep.mubr.msk.bf16.mxu1 %vm2916_vm0, %v2915_v0 }
 0xeac   :  { %2675 = vmatmul.mubr.msk.bf16.vlgmr.msra.gmra.mrb[64].mxu0 %vm399_vm3, %v1767_v10 }
 0xead   :  { %2686 = vmatprep.mubr.msk.bf16.mxu0 %vm2916_vm0, %v2915_v0 }
 0xf73   :  { %v3316_v11 = vpop.f32.mrb[40].mxu1 }
 0xf74   :  { %v2658_v12 = vpop.f32.mrb[41].mxu1 }
 0xf75   :  { %v1665_v13 = vpop.f32.mrb[42].mxu1 }
 0xf76   :  { %v2659_v15 = vpop.f32.mrb[43].mxu1 }
 0xf77   :  { %v3318_v16 = vpop.f32.mrb[60].mxu0 }
 0xf78   :  { %v2767_v17 = vpack.i.bf16 %v3318_v16, %v3316_v11  ;;  %v2664_v18 = vpop.f32.mrb[61].mxu0  ;;  %v2814_v11 = vld [vmem:[%s3452_s6] sm:$0xff]   ;;  %v2815_v16 = vld [vmem:[%s3452_s6 + $0x8] sm:$0xff]  }
 0xf79   :  { %v1713_v19 = vpop.f32.mrb[62].mxu0 }
 0xf7a   :  { %v2665_v20 = vpop.f32.mrb[63].mxu0 }
 0xf7d   :  { %v1760_v21 = vpop.f32.mrb[44].mxu1 }
 0xf7e   :  { %v1761_v22 = vadd.f32 %v3054_v7, %v1760_v21  ;;  %v2670_v23 = vpop.f32.mrb[45].mxu1 }
 0xf7f   :  { %v1763_v24 = vpop.f32.mrb[46].mxu1  ;;  %v1810_v25 = vpop.f32.mrb[64].mxu0 }
 0xf80   :  { %v1811_v26 = vadd.f32 %v3061_v14, %v1810_v25  ;;  %v2671_v27 = vpop.f32.mrb[47].mxu1  ;;  %v2676_v28 = vpop.f32.mrb[65].mxu0  ;;  %v1816_v29 = vsel %vm492_vm5, %v1761_v22, -inf }
 0xf81   :  { %1817 = vmax.xlane.f32.xlu0 %v1816_v29  ;;  %v1813_v30 = vpop.f32.mrb[66].mxu0  ;;  %v2886_v29 = vld [vmem:[%s3447_s1] ss:$0 sm:$0xff] }
 0xf82   :  { %v2677_v31 = vpop.f32.mrb[67].mxu0  ;;  %v1819_v32 = vsel %vm492_vm5, %v1811_v26, -inf }
 0xf83   :  { %1820 = vmax.xlane.f32.xlu1 %v1819_v32 }
 0xf94   :  { %1888 = vrot.lane.b32.xlu1 %v3079_v37, %s2923_s11 }
 0xf98   :  { %1938 = vrot.lane.b32.xlu1 %v3024_v58, %s2924_s12 }
 0xf9c   :  { %1988 = vrot.lane.b32.xlu1 %v3029_v62, %s2924_s12 }
 0xfa0   :  { %1986 = vrot.lane.b32.xlu1 %v3042_v5, %s2924_s12 }
0x100e   :  { %v1818_v7 = vpop.xlane.xlu0 %1817 }
0x100f   :  { %v1822_v14 = vsub.f32 %v1761_v22, %v1818_v7 }
0x1010   :  { %v1821_v33 = vpop.xlane.xlu1 %1820 }
0x1011   :  { %v1824_v34 = vmul.f32 1.442695, %v1822_v14  ;;  %v1823_v38 = vsub.f32 %v1811_v26, %v1821_v33  ;;  %v2887_v14 = vld [vmem:[%s3447_s1 + $0x1] ss:$0 sm:$0xff] }
0x1013   :  { %2870 = vpow2.f32 %v1824_v34  ;;  %v1826_v39 = vmul.f32 1.442695, %v1823_v38 }
0x1014   :  { %v1889_v40 = vpop.permute.xlu1 %1888 }
0x1015   :  { %2872 = vpow2.f32 %v1826_v39  ;;  %v1894_v41 = vsel %vm520_vm4, %v1889_v40, 0 }
0x1016   :  { %2685 = vmatpush3.bf16.msra.mxu0 %v1894_v41 }
0x1017   :  { %2696 = vmatprep.subr.bf16.mxu0 %v2915_v0 }
0x1018   :  { %v1939_v61 = vpop.permute.xlu1 %1938 }
0x101c   :  { %v1989_v10 = vpop.permute.xlu1 %1988 }
0x101d   :  { %v2871_v58 = vpop.eup %2870  ;;  %v1994_v13 = vsel %vm399_vm3, %v1989_v10, 0 }
0x101e   :  { %v1828_v62 = vsel %vm492_vm5, %v2871_v58, 0.0 }
0x101f   :  { %v2873_v43 = vpop.eup %2872  ;;  %1829 = vadd.xlane.f32.xlu0 %v1828_v62 }
0x1020   :  { %v1831_v5 = vsel %vm492_vm5, %v2873_v43, 0.0  ;;  %v1987_v18 = vpop.permute.xlu1 %1986 }
0x1023   :  { %1832 = vadd.xlane.f32.xlu0 %v1831_v5 }
0x1039   :  { %1840 = vrot.lane.b32.xlu0 %v3040_v4, %s2923_s11 }
0x103d   :  { %1936 = vrot.lane.b32.xlu0 %v3031_v63, %s2924_s12  ;;  %v1944_v63 = vsel %vm399_vm3, %v1939_v61, 0  ;;  %v2817_v61 = vld [vmem:[%s3452_s6 + $0x18] sm:$0xff]  }
0x10ac   :  { %v1830_v46 = vpop.xlane.xlu0 %1829 }
0x10ad   :  { %2874 = vrcp.f32 %v1830_v46 }
0x10b0   :  { %v1833_v52 = vpop.xlane.xlu0 %1832 }
0x10b1   :  { %2876 = vrcp.f32 %v1833_v52 }
0x10b4   :  { %v1841_v53 = vpop.permute.xlu0 %1840 }
0x10b5   :  { %v1846_v56 = vsel %vm520_vm4, %v1841_v53, 0 }
0x10b6   :  { %2679 = vmatpush3.bf16.msra.mxu1 %v1846_v56 }
0x10b7   :  { %v2875_v59 = vpop.eup %2874  ;;  %2690 = vmatprep.subr.bf16.mxu1 %v2915_v0 }
0x10b8   :  { %v1836_v1 = vmul.f32 %v2875_v59, %v2871_v58  ;;  %v1937_v15 = vpop.permute.xlu0 %1936 }
0x10ba   :  { %v1838_v6 = vpack.c.bf16 %v1836_v1, %v1836_v1  ;;  %v2818_v1 = vld [vmem:[%s3452_s6 + $0x20] sm:$0xff]  }
0x10bb   :  { %v2877_v8 = vpop.eup %2876 }
0x10bc   :  { %v1837_v9 = vmul.f32 %v2877_v8, %v2873_v43  ;;  %2681 = vmatmul.mubr.msk.bf16.vlgmr.msra.gmra.mrb[48].mxu1 %vm492_vm5, %v1838_v6  ;;  %v2819_v6 = vld [vmem:[%s3452_s6 + $0x28] sm:$0xff]   ;;  %v2820_v8 = vld [vmem:[%s3452_s6 + $0x30] sm:$0xff]  }
0x10bd   :  { %2692 = vmatprep.mubr.msk.bf16.mxu1 %vm2916_vm0, %v2915_v0 }
0x10be   :  { %v1839_v12 = vpack.c.bf16 %v1837_v9, %v1837_v9  ;;  %v2821_v9 = vld [vmem:[%s3452_s6 + $0x38] sm:$0xff]  }
0x10bf   :  { %2691 = vmatpush3.bf16.xpose.msra.mxu1 %v1944_v63 }
0x10c0   :  { %2687 = vmatmul.mubr.msk.bf16.vlgmr.msra.gmra.mrb[68].mxu0 %vm492_vm5, %v1839_v12  ;;  %2702 = vmatprep.subr.bf16.mxu1 %v2915_v0 }
0x10c1   :  { %2697 = vmatpush3.bf16.xpose.msra.mxu0 %v1994_v13  ;;  %2698 = vmatprep.mubr.msk.bf16.mxu0 %vm2916_vm0, %v2915_v0 }
0x10c2   :  { %2708 = vmatprep.subr.bf16.mxu0 %v2915_v0 }
0x10c6   :  { %2693 = vmatmul.mubr.msk.bf16.vlgmr.msra.gmra.mrb[52].mxu1 %vm399_vm3, %v1937_v15 }
0x10c7   :  { %2704 = vmatprep.mubr.msk.bf16.mxu1 %vm2916_vm0, %v2915_v0 }
0x10c8   :  { %2699 = vmatmul.mubr.msk.bf16.vlgmr.msra.gmra.mrb[72].mxu0 %vm399_vm3, %v1987_v18 }
0x10c9   :  { %2710 = vmatprep.mubr.msk.bf16.mxu0 %vm2916_vm0, %v2915_v0 }
0x118f   :  { %v1882_v19 = vpop.f32.mrb[48].mxu1 }
0x1190   :  { %v2682_v20 = vpop.f32.mrb[49].mxu1 }
0x1191   :  { %v1885_v21 = vpop.f32.mrb[50].mxu1 }
0x1192   :  { %v2683_v22 = vpop.f32.mrb[51].mxu1 }
0x1193   :  { %v1930_v23 = vpop.f32.mrb[68].mxu0 }
0x1194   :  { %v2772_v24 = vpack.i.bf16 %v1930_v23, %v1882_v19  ;;  %v2688_v25 = vpop.f32.mrb[69].mxu0 }
0x1195   :  { %v1933_v26 = vpop.f32.mrb[70].mxu0 }
0x1196   :  { %v2689_v27 = vpop.f32.mrb[71].mxu0 }
0x1199   :  { %v1980_v28 = vpop.f32.mrb[52].mxu1 }
0x119a   :  { %v1981_v30 = vadd.f32 %v2886_v29, %v1980_v28  ;;  %v2694_v31 = vpop.f32.mrb[53].mxu1 }
0x119b   :  { %v1983_v32 = vpop.f32.mrb[54].mxu1  ;;  %v2030_v7 = vpop.f32.mrb[72].mxu0 }
0x119c   :  { %v2031_v33 = vadd.f32 %v2887_v14, %v2030_v7  ;;  %v2695_v34 = vpop.f32.mrb[55].mxu1  ;;  %v2700_v38 = vpop.f32.mrb[73].mxu0  ;;  %v2036_v39 = vsel %vm492_vm5, %v1981_v30, -inf }
0x119d   :  { %2037 = vmax.xlane.f32.xlu0 %v2036_v39  ;;  %v2033_v40 = vpop.f32.mrb[74].mxu0 }
0x119e   :  { %v2701_v41 = vpop.f32.mrb[75].mxu0  ;;  %v2039_v58 = vsel %vm492_vm5, %v2031_v33, -inf }
0x119f   :  { %2040 = vmax.xlane.f32.xlu1 %v2039_v58 }
0x11b0   :  { %2108 = vrot.lane.b32.xlu1 %v3079_v37, %s2924_s12 }
0x11b4   :  { %2748 = vrot.lane.b32.xlu1 %v2747_v50, %s2924_s12 }
0x11b8   :  { %2753 = vrot.lane.b32.xlu1 %v2752_v51, %s2923_s11 }
0x11bc   :  { %2763 = vrot.lane.b32.xlu1 %v2762_v3, %s2921_s9 }
0x11c0   :  { %2773 = vrot.lane.b32.xlu1 %v2772_v24, %s2919_s29 }
0x122a   :  { %v2038_v62 = vpop.xlane.xlu0 %2037 }
0x122b   :  { %v2042_v43 = vsub.f32 %v1981_v30, %v2038_v62 }
0x122c   :  { %v2041_v37 = vpop.xlane.xlu1 %2040 }
0x122d   :  { %v2044_v5 = vmul.f32 1.442695, %v2042_v43  ;;  %v2043_v46 = vsub.f32 %v2031_v33, %v2041_v37 }
0x122f   :  { %2878 = vpow2.f32 %v2044_v5  ;;  %v2046_v44 = vmul.f32 1.442695, %v2043_v46 }
0x1230   :  { %v2109_v48 = vpop.permute.xlu1 %2108 }
0x1231   :  { %2880 = vpow2.f32 %v2046_v44  ;;  %v2114_v50 = vsel %vm520_vm4, %v2109_v48, 0 }
0x1232   :  { %2709 = vmatpush3.bf16.msra.mxu0 %v2114_v50 }
0x1234   :  { %v2749_v22 = vpop.permute.xlu1 %2748 }
0x1235   :  { %v2750_v25 = vunpack.i.l.bf16 %v2749_v22 }
0x1237   :  { %v2212_v7 = vsel %vm399_vm3, %v3098_v49, %v2750_v25 }
0x1238   :  { %v2754_v23 = vpop.permute.xlu1 %2753 }
0x1239   :  { %v2879_v42 = vpop.eup %2878  ;;  %v2756_v26 = vunpack.i.h.bf16 %v2754_v23  ;;  %v2755_v27 = vunpack.i.l.bf16 %v2754_v23 }
0x123a   :  { %v2048_v47 = vsel %vm492_vm5, %v2879_v42, 0.0 }
0x123b   :  { %v2881_v51 = vpop.eup %2880  ;;  %2049 = vadd.xlane.f32.xlu0 %v2048_v47  ;;  %v2215_v14 = vsel %vm2214_vm6, %v2212_v7, %v2755_v27 }
0x123c   :  { %v2051_v57 = vsel %vm492_vm5, %v2881_v51, 0.0  ;;  %v2764_v28 = vpop.permute.xlu1 %2763 }
0x123d   :  { %v2766_v41 = vunpack.i.h.bf16 %v2764_v28  ;;  %v2765_v58 = vunpack.i.l.bf16 %v2764_v28 }
0x123f   :  { %2052 = vadd.xlane.f32.xlu0 %v2051_v57 }
0x1240   :  { %v2774_v62 = vpop.permute.xlu1 %2773 }
0x1241   :  { %v2775_v44 = vunpack.i.l.bf16 %v2774_v62 }
0x1255   :  { %2060 = vrot.lane.b32.xlu0 %v3040_v4, %s2924_s12 }
0x1259   :  { %2758 = vrot.lane.b32.xlu0 %v2757_v55, %s2922_s10 }
0x125d   :  { %2768 = vrot.lane.b32.xlu0 %v2767_v17, %s2920_s30  ;;  %v2816_v17 = vld [vmem:[%s3452_s6 + $0x10] sm:$0xff]  }
0x12c8   :  { %v2050_v2 = vpop.xlane.xlu0 %2049 }
0x12c9   :  { %2882 = vrcp.f32 %v2050_v2 }
0x12cc   :  { %v2053_v3 = vpop.xlane.xlu0 %2052 }
0x12cd   :  { %2884 = vrcp.f32 %v2053_v3  ;;  %v2398_v3 = vld [vmem:[%s3453_s7] ss:$0 sm:$0xff] }
0x12d0   :  { %v2061_v52 = vpop.permute.xlu0 %2060 }
0x12d1   :  { %v2066_v53 = vsel %vm520_vm4, %v2061_v52, 0 }
0x12d2   :  { %2703 = vmatpush3.bf16.msra.mxu1 %v2066_v53 }
0x12d3   :  { %v2883_v56 = vpop.eup %2882  ;;  %2714 = vmatprep.subr.bf16.mxu1 %v2915_v0 }
0x12d4   :  { %v2056_v4 = vmul.f32 %v2883_v56, %v2879_v42  ;;  %v2759_v24 = vpop.permute.xlu0 %2758 }
0x12d5   :  { %v2761_v29 = vunpack.i.h.bf16 %v2759_v24  ;;  %v2760_v30 = vunpack.i.l.bf16 %v2759_v24 }
0x12d6   :  { %v2058_v59 = vpack.c.bf16 %v2056_v4, %v2056_v4 }
0x12d7   :  { %v2885_v45 = vpop.eup %2884  ;;  %v2218_v34 = vsel %vm2217_vm7, %v2215_v14, %v2760_v30 }
0x12d8   :  { %v2057_v54 = vmul.f32 %v2885_v45, %v2881_v51  ;;  %2705 = vmatmul.mubr.msk.bf16.vlgmr.msra.gmra.mrb[56].mxu1 %vm492_vm5, %v2058_v59  ;;  %v2769_v31 = vpop.permute.xlu0 %2768  ;;  %v2221_v43 = vsel %vm2220_vm8, %v2218_v34, %v2765_v58 }
0x12d9   :  { %2730 = vmatprep.mubr.msk.bf16.mxu1 %vm2916_vm0, %v2915_v0  ;;  %2715 = vmatpush3.bf16.msra.mxu1 %v2814_v11  ;;  %v2771_v39 = vunpack.i.h.bf16 %v2769_v31  ;;  %v2770_v40 = vunpack.i.l.bf16 %v2769_v31 }
0x12da   :  { %v2059_v55 = vpack.c.bf16 %v2057_v54, %v2057_v54  ;;  %2716 = vmatprep.subr.bf16.mxu1 %v2915_v0 }
0x12db   :  { %v2224_v5 = vsel %vm2223_vm9, %v2221_v43, %v2770_v40 }
0x12dc   :  { %2711 = vmatmul.mubr.msk.bf16.vlgmr.msra.gmra.mrb[76].mxu0 %vm492_vm5, %v2059_v55  ;;  %v2227_v42 = vsel %vm2226_vm10, %v2224_v5, %v2775_v44 }
0x12dd   :  { %2717 = vmatpush3.bf16.msra.mxu1 %v2815_v16 }
0x12de   :  { %2718 = vmatprep.subr.bf16.mxu1 %v2915_v0 }
0x12e1   :  { %2719 = vmatpush3.bf16.msra.mxu1 %v2816_v17 }
0x12e2   :  { %2720 = vmatprep.subr.bf16.mxu1 %v2915_v0 }
0x12e5   :  { %2721 = vmatpush3.bf16.msra.mxu1 %v2817_v61 }
0x12e6   :  { %2722 = vmatprep.subr.bf16.mxu1 %v2915_v0 }
0x12e9   :  { %2723 = vmatpush3.bf16.msra.mxu1 %v2818_v1 }
0x12ea   :  { %2724 = vmatprep.subr.bf16.mxu1 %v2915_v0 }
0x12ed   :  { %2725 = vmatpush3.bf16.msra.mxu1 %v2819_v6 }
0x12ee   :  { %2726 = vmatprep.subr.bf16.mxu1 %v2915_v0 }
0x12f1   :  { %2727 = vmatpush3.bf16.msra.mxu1 %v2820_v8 }
0x12f2   :  { %2728 = vmatprep.subr.bf16.mxu1 %v2915_v0  ;;  %v2751_v0 = vunpack.i.h.bf16 %v2749_v22 }
0x12f4   :  { %v2213_v32 = vsel %vm399_vm3, %v3102_v60, %v2751_v0  ;;  %v2776_v60 = vunpack.i.h.bf16 %v2774_v62 }
0x12f5   :  { %2729 = vmatpush3.bf16.msra.mxu1 %v2821_v9  ;;  %v2216_v33 = vsel %vm2214_vm6, %v2213_v32, %v2756_v26 }
0x12f6   :  { %v2219_v38 = vsel %vm2217_vm7, %v2216_v33, %v2761_v29 }
0x12f7   :  { %v2222_v37 = vsel %vm2220_vm8, %v2219_v38, %v2766_v41 }
0x12f8   :  { %v2225_v46 = vsel %vm2223_vm9, %v2222_v37, %v2771_v39 }
0x12f9   :  { %v2228_v47 = vsel %vm2226_vm10, %v2225_v46, %v2776_v60 }
0x13ab   :  { %v2102_v10 = vpop.f32.mrb[56].mxu1 }
0x13ac   :  { %v2706_v63 = vpop.f32.mrb[57].mxu1 }
0x13ad   :  { %v2105_v12 = vpop.f32.mrb[58].mxu1 }
0x13ae   :  { %v2707_v13 = vpop.f32.mrb[59].mxu1 }
0x13af   :  { %v2150_v15 = vpop.f32.mrb[76].mxu0 }
0x13b0   :  { %v2777_v18 = vpack.i.bf16 %v2150_v15, %v2102_v10  ;;  %v2712_v19 = vpop.f32.mrb[77].mxu0 }
0x13b1   :  { %v2153_v20 = vpop.f32.mrb[78].mxu0 }
0x13b2   :  { %2778 = vrot.lane.b32.xlu0 %v2777_v18, %s2918_s28  ;;  %v2713_v21 = vpop.f32.mrb[79].mxu0 }
0x1424   :  { %v2779_v49 = vpop.permute.xlu0 %2778 }
0x1425   :  { %v2781_v48 = vunpack.i.h.bf16 %v2779_v49  ;;  %v2780_v50 = vunpack.i.l.bf16 %v2779_v49 }
0x1427   :  { %v2231_v51 = vsel %vm2229_vm11, %v2228_v47, %v2781_v48  ;;  %v2230_v57 = vsel %vm2229_vm11, %v2227_v42, %v2780_v50 }
0x1428   :  { %v2232_v2 = vpack.c.bf16 %v2231_v51, %v2230_v57 }
0x142a   :  { %2731 = vmatmul.mubr.bf16.vlgmr.msra.gmra.mrb[60].mxu1 %v2232_v2 }
0x14fd   :  { %v2321_v52 = vpop.f32.mrb[60].mxu1 }
0x14fe   :  { %v2322_v53 = vadd.f32 %v2398_v3, %v2321_v52  ;;  %v2732_v56 = vpop.f32.mrb[61].mxu1 }
0x14ff   :  { %v2324_v4 = vpop.f32.mrb[62].mxu1 }
0x1500   :  { %v2325_v59 = vadd.f32 %v2398_v3, %v2324_v4  ;;  %v2733_v45 = vpop.f32.mrb[63].mxu1  ;;  %v2328_v54 = vadd.f32 %v2322_v53, %v3009_v35 }
0x1502   :  { %v2329_v55 = vadd.f32 %v2325_v59, %v3011_v36 }
0x1504   :  { %v2410_v11 = vpack.c.bf16 %v2329_v55, %v2328_v54 }
0x1506   :  { %2411 = vst [vmem:[%s3454_s8] sm:$0xff] %v2410_v11  }
0x1507   :  { %2338 = vsyncpa [#allocation3], 1 }

// kernel: ts_transformer_encoder_forward.9
= control target key start
LH: loop header
LB: loop body
LE: loop exit
PB: predicated region body
PF: predicated region fallthrough
CT: control target
= control target key end

     0   :  { %v2833_v1 = vmov 0   ;;  %v2834_v2 = vmov 0.0   ;;  %vm2835_vm0 = vmmov 0   ;;  %v106_v36 = vlaneseq  ;;  %s2836_s15 = smov 112   ;;  %s2837_s16 = smov 96   ;;  %s3414_s4 = inlined_call_operand.vmem [shape: bf16[128,384], index: 4, kind: input, shape index: {}]   ;;  %s3415_s0 = inlined_call_operand.vmem [shape: bf16[2,8,128], index: 0, kind: input, shape index: {}]   ;;  %s3416_s2 = inlined_call_operand.vmem [shape: f32[1,128], index: 2, kind: input, shape index: {}]   ;;  %s3417_s3 = inlined_call_operand.vmem [shape: f32[1,128], index: 3, kind: input, shape index: {}]   ;;  %s3418_s5 = inlined_call_operand.vmem [shape: f32[1,384], index: 5, kind: input, shape index: {}]   ;;  %s3419_s1 = inlined_call_operand.vmem [shape: f32[2,1,8], index: 1, kind: input, shape index: {}]   ;;  %s3420_s6 = inlined_call_operand.vmem [shape: bf16[128,128], index: 6, kind: input, shape index: {}]   ;;  %s3421_s7 = inlined_call_operand.vmem [shape: f32[1,128], index: 7, kind: input, shape index: {}]   ;;  %s3422_s8 = inlined_call_operand.vmem [shape: bf16[2,8,128], index: 8, kind: output, shape index: {}]  }
   0x1   :  { %v2727_v0 = vld [vmem:[%s3414_s4 + $0x4] ss:$12 sps:$4 sm:$0xff]   ;;  %281 = vmatprep.mubr.bf16.mxu0 %v2833_v1  ;;  %2450 = vmatprep.subr.bf16.mxu1 %v2834_v2  ;;  %v2729_v3 = vld [vmem:[%s3414_s4] ss:$12 sps:$4 sm:$0xff]   ;;  %v2730_v4 = vld [vmem:[%s3414_s4 + $0x1c] ss:$12 sps:$4 sm:$0xff]  }
   0x2   :  { %249 = vmatprep.subr.bf16.mxu0 %v2727_v0  ;;  %v2732_v5 = vld [vmem:[%s3414_s4 + $0x18] ss:$12 sps:$4 sm:$0xff]   ;;  %v2733_v6 = vld [vmem:[%s3414_s4 + $0x34] ss:$12 sps:$4 sm:$0xff]   ;;  %v2735_v7 = vld [vmem:[%s3414_s4 + $0x30] ss:$12 sps:$4 sm:$0xff]   ;;  %2466 = vmatprep.mubr.msk.bf16.mxu1 %vm2835_vm0, %v2834_v2 }
   0x3   :  { %250 = vmatpush1.bf16.msra.mxu0 %v2729_v3  ;;  %v2736_v8 = vld [vmem:[%s3414_s4 + $0x4c] ss:$12 sps:$4 sm:$0xff]   ;;  %v2738_v9 = vld [vmem:[%s3414_s4 + $0x48] ss:$12 sps:$4 sm:$0xff]   ;;  %v2739_v10 = vld [vmem:[%s3414_s4 + $0x64] ss:$12 sps:$4 sm:$0xff]  }
   0x4   :  { %251 = vmatprep.subr.bf16.mxu0 %v2730_v4  ;;  %v2751_v11 = vld [vmem:[%s3414_s4 + $0x8] ss:$12 sps:$4 sm:$0xff]   ;;  %v2741_v12 = vld [vmem:[%s3414_s4 + $0x60] ss:$12 sps:$4 sm:$0xff]   ;;  %v2753_v18 = vld [vmem:[%s3414_s4 + $0x38] ss:$12 sps:$4 sm:$0xff]  }
   0x5   :  { %2451 = vmatpush3.bf16.msra.mxu1 %v2751_v11  ;;  %v2752_v13 = vld [vmem:[%s3414_s4 + $0x20] ss:$12 sps:$4 sm:$0xff]   ;;  %v2742_v15 = vld [vmem:[%s3414_s4 + $0x7c] ss:$12 sps:$4 sm:$0xff]   ;;  %v2744_v19 = vld [vmem:[%s3414_s4 + $0x78] ss:$12 sps:$4 sm:$0xff]  }
   0x6   :  { %v2360_v14 = vld [vmem:[%s3415_s0] sm:$0xff]   ;;  %2452 = vmatprep.subr.bf16.mxu1 %v2834_v2  ;;  %v2754_v24 = vld [vmem:[%s3414_s4 + $0x50] ss:$12 sps:$4 sm:$0xff]   ;;  %v2748_v27 = vld [vmem:[%s3414_s4 + $0xac] ss:$12 sps:$4 sm:$0xff]   ;;  %v107_v37 = vshrl.u32 %v106_v36, 7 }
   0x7   :  { %252 = vmatpush1.bf16.msra.mxu0 %v2732_v5  ;;  %v2361_v16 = vunpack.c.l.bf16 %v2360_v14  ;;  %v2362_v17 = vunpack.c.h.bf16 %v2360_v14  ;;  %v2290_v20 = vld [vmem:[%s3416_s2] ss:$0 sm:$0xff]  ;;  %v2747_v25 = vld [vmem:[%s3414_s4 + $0x90] ss:$12 sps:$4 sm:$0xff]   ;;  %v2755_v30 = vld [vmem:[%s3414_s4 + $0x68] ss:$12 sps:$4 sm:$0xff]  }
   0x8   :  { %253 = vmatprep.subr.bf16.mxu0 %v2733_v6  ;;  %v2745_v21 = vld [vmem:[%s3414_s4 + $0x94] ss:$12 sps:$4 sm:$0xff]   ;;  %v2757_v34 = vld [vmem:[%s3414_s4 + $0x98] ss:$12 sps:$4 sm:$0xff]   ;;  %v2758_v35 = vld [vmem:[%s3414_s4 + $0xb0] ss:$12 sps:$4 sm:$0xff]  }
   0x9   :  { %2453 = vmatpush3.bf16.msra.mxu1 %v2752_v13  ;;  %v41_v22 = vmul.f32 %v2361_v16, %v2290_v20  ;;  %v42_v23 = vmul.f32 %v2362_v17, %v2290_v20  ;;  %v2291_v26 = vld [vmem:[%s3417_s3] ss:$0 sm:$0xff]  ;;  %v2750_v31 = vld [vmem:[%s3414_s4 + $0xa8] ss:$12 sps:$4 sm:$0xff]   ;;  %v112_v38 = vsub.s32 1, %v107_v37  ;;  %v108_v41 = vsub.s32 0, %v107_v37 }
   0xa   :  { %2454 = vmatprep.subr.bf16.mxu1 %v2834_v2  ;;  %v2756_v33 = vld [vmem:[%s3414_s4 + $0x80] ss:$12 sps:$4 sm:$0xff]   ;;  %vm351_vm1 = vcmask 130048   ;;  %v116_v57 = vsub.s32 2, %v107_v37  ;;  %vm472_vm2 = vcmask 1043456   ;;  %vm444_vm3 = vcmask 64512  }
   0xb   :  { %254 = vmatpush1.bf16.msra.mxu0 %v2735_v7  ;;  %v2958_v28 = vadd.f32 %v2291_v26, %v41_v22  ;;  %v2960_v29 = vadd.f32 %v2291_v26, %v42_v23  ;;  %v86_v39 = vld [vmem:[%s3418_s5] sm:$0x7]  ;;  %s2838_s17 = smov 80   ;;  %s2839_s18 = smov 64   ;;  %vm2166_vm4 = vcmask 261120   ;;  %vm2169_vm5 = vcmask 392192  }
   0xc   :  { %255 = vmatprep.subr.bf16.mxu0 %v2736_v8  ;;  %v113_v40 = vrot.slane %v86_v39, %v112_v38  ;;  %v109_v47 = vrot.slane %v86_v39, %v108_v41  ;;  %v117_v58 = vrot.slane %v86_v39, %v116_v57  ;;  %v3024_v4 = vld [vmem:[%s3419_s1] ss:$0 sm:$0xff]  ;;  %v3031_v11 = vld [vmem:[%s3419_s1 + $0x1] ss:$0 sm:$0xff]  ;;  %s2840_s19 = smov 48   ;;  %s2841_s20 = smov 32  }
   0xd   :  { %2455 = vmatpush3.bf16.msra.mxu1 %v2753_v18  ;;  %v104_v32 = vpack.c.bf16 %v2960_v29, %v2958_v28  ;;  %s2842_s21 = smov 16   ;;  %vm2172_vm6 = vcmask 523264   ;;  %vm2175_vm7 = vcmask 654336   ;;  %vm2178_vm8 = vcmask 785408  }
   0xe   :  { %2456 = vmatprep.subr.bf16.mxu1 %v2834_v2  ;;  %vm2181_vm9 = vcmask 916480  }
   0xf   :  { %256 = vmatpush1.bf16.msra.mxu0 %v2738_v9 }
  0x10   :  { %257 = vmatprep.subr.bf16.mxu0 %v2739_v10 }
  0x11   :  { %2457 = vmatpush3.bf16.msra.mxu1 %v2754_v24 }
  0x12   :  { %2458 = vmatprep.subr.bf16.mxu1 %v2834_v2 }
  0x13   :  { %258 = vmatpush1.bf16.msra.mxu0 %v2741_v12 }
  0x14   :  { %259 = vmatprep.subr.bf16.mxu0 %v2742_v15 }
  0x15   :  { %2459 = vmatpush3.bf16.msra.mxu1 %v2755_v30 }
  0x16   :  { %2460 = vmatprep.subr.bf16.mxu1 %v2834_v2 }
  0x17   :  { %260 = vmatpush1.bf16.msra.mxu0 %v2744_v19 }
  0x18   :  { %261 = vmatprep.subr.bf16.mxu0 %v2745_v21 }
  0x19   :  { %2461 = vmatpush3.bf16.msra.mxu1 %v2756_v33 }
  0x1a   :  { %2462 = vmatprep.subr.bf16.mxu1 %v2834_v2 }
  0x1b   :  { %262 = vmatpush1.bf16.msra.mxu0 %v2747_v25 }
  0x1c   :  { %263 = vmatprep.subr.bf16.mxu0 %v2748_v27 }
  0x1d   :  { %2463 = vmatpush3.bf16.msra.mxu1 %v2757_v34 }
  0x1e   :  { %2464 = vmatprep.subr.bf16.mxu1 %v2834_v2 }
  0x1f   :  { %264 = vmatpush1.bf16.msra.mxu0 %v2750_v31 }
  0x20   :  { %2494 = vmatprep.subr.bf16.mxu0 %v2834_v2 }
  0x21   :  { %2465 = vmatpush3.bf16.msra.mxu1 %v2758_v35 }
  0x22   :  { %282 = vmatmul.mubr.bf16.vlgmr.msra.gmra.mrb[0].mxu0 %v104_v32  ;;  %2470 = vmatprep.subr.bf16.mxu1 %v2834_v2 }
  0x23   :  { %2496 = vmatprep.mubr.msk.bf16.mxu0 %vm2835_vm0, %v2834_v2 }
  0x24   :  { %2467 = vmatmul.mubr.bf16.vlgmr.msra.gmra.mrb[0].mxu1 %v104_v32 }
  0x25   :  { %2472 = vmatprep.mubr.msk.bf16.mxu1 %vm2835_vm0, %v2834_v2 }
  0xf5   :  { %v283_v42 = vpop.f32.mrb[0].mxu0 }
  0xf6   :  { %v285_v43 = vpop.f32.mrb[1].mxu0  ;;  %v284_v51 = vadd.f32 %v283_v42, %v109_v47 }
  0xf7   :  { %v286_v44 = vadd.f32 %v285_v43, %v113_v40  ;;  %v287_v45 = vpop.f32.mrb[2].mxu0  ;;  %v326_v59 = vpop.f32.mrb[0].mxu1 }
  0xf8   :  { %v289_v46 = vpop.f32.mrb[3].mxu0  ;;  %v3001_v53 = vpack.c.bf16 %v284_v51, %v284_v51  ;;  %v288_v55 = vadd.f32 %v287_v45, %v109_v47  ;;  %v327_v60 = vadd.f32 %v326_v59, %v117_v58  ;;  %v2468_v61 = vpop.f32.mrb[1].mxu1 }
  0xf9   :  { %v2994_v48 = vpack.c.bf16 %v286_v44, %v286_v44  ;;  %v290_v49 = vadd.f32 %v289_v46, %v113_v40  ;;  %v329_v62 = vpop.f32.mrb[2].mxu1 }
  0xfa   :  { %v3010_v56 = vpack.c.bf16 %v288_v55, %v288_v55  ;;  %v3016_v63 = vpack.c.bf16 %v327_v60, %v327_v60  ;;  %v330_v0 = vadd.f32 %v329_v62, %v117_v58  ;;  %v2469_v1 = vpop.f32.mrb[3].mxu1 }
  0xfb   :  { %v356_v50 = vsel %vm351_vm1, %v2994_v48, 0  ;;  %v2999_v52 = vpack.c.bf16 %v290_v49, %v290_v49 }
  0xfc   :  { %2471 = vmatpush3.bf16.xpose.msra.mxu1 %v356_v50  ;;  %v474_v3 = vsel %vm472_vm2, %v3016_v63, 0  ;;  %v3047_v34 = vpack.c.bf16 %v330_v0, %v330_v0 }
  0xfd   :  { %2476 = vmatprep.subr.bf16.mxu1 %v2834_v2  ;;  %v402_v54 = vsel %vm351_vm1, %v2999_v52, 0 }
  0xfe   :  { %v520_v37 = vsel %vm472_vm2, %v3047_v34, 0 }
 0x103   :  { %2473 = vmatmul.mubr.msk.bf16.vlgmr.msra.gmra.mrb[4].mxu1 %vm351_vm1, %v3001_v53 }
 0x104   :  { %2477 = vmatpush3.bf16.xpose.msra.mxu1 %v402_v54  ;;  %2478 = vmatprep.mubr.msk.bf16.mxu1 %vm2835_vm0, %v2834_v2 }
 0x105   :  { %2482 = vmatprep.subr.bf16.mxu1 %v2834_v2 }
 0x10b   :  { %2479 = vmatmul.mubr.msk.bf16.vlgmr.msra.gmra.mrb[8].mxu1 %vm351_vm1, %v3010_v56 }
 0x10c   :  { %2484 = vmatprep.mubr.msk.bf16.mxu1 %vm2835_vm0, %v2834_v2  ;;  %2483 = vmatpush3.bf16.msra.mxu1 %v474_v3 }
 0x10d   :  { %2488 = vmatprep.subr.bf16.mxu1 %v2834_v2 }
 0x1d6   :  { %v392_v5 = vpop.f32.mrb[4].mxu1 }
 0x1d7   :  { %v393_v6 = vadd.f32 %v3024_v4, %v392_v5  ;;  %v2474_v7 = vpop.f32.mrb[5].mxu1 }
 0x1d8   :  { %v395_v8 = vpop.f32.mrb[6].mxu1 }
 0x1d9   :  { %v2475_v9 = vpop.f32.mrb[7].mxu1  ;;  %v445_v10 = vsel %vm444_vm3, %v393_v6, -inf }
 0x1da   :  { %446 = vmax.xlane.f32.xlu0 %v445_v10 }
 0x1de   :  { %v438_v12 = vpop.f32.mrb[8].mxu1 }
 0x1df   :  { %v439_v13 = vadd.f32 %v3031_v11, %v438_v12  ;;  %v2480_v14 = vpop.f32.mrb[9].mxu1 }
 0x1e0   :  { %v441_v15 = vpop.f32.mrb[10].mxu1 }
 0x1e1   :  { %v2481_v16 = vpop.f32.mrb[11].mxu1  ;;  %v448_v17 = vsel %vm444_vm3, %v439_v13, -inf }
 0x1e2   :  { %449 = vmax.xlane.f32.xlu0 %v448_v17 }
 0x1f8   :  { %566 = vrot.lane.b32.xlu0 %v2994_v48, %s2836_s15 }
 0x267   :  { %v447_v18 = vpop.xlane.xlu0 %446 }
 0x268   :  { %v451_v19 = vsub.f32 %v393_v6, %v447_v18 }
 0x26a   :  { %v453_v20 = vmul.f32 1.442695, %v451_v19 }
 0x26c   :  { %2767 = vpow2.f32 %v453_v20 }
 0x26f   :  { %v450_v21 = vpop.xlane.xlu0 %449 }
 0x270   :  { %v452_v26 = vsub.f32 %v439_v13, %v450_v21 }
 0x272   :  { %v455_v27 = vmul.f32 1.442695, %v452_v26 }
 0x273   :  { %v567_v22 = vpop.permute.xlu0 %566 }
 0x274   :  { %v572_v23 = vsel %vm351_vm1, %v567_v22, 0  ;;  %2769 = vpow2.f32 %v455_v27 }
 0x275   :  { %2495 = vmatpush3.bf16.xpose.msra.mxu0 %v572_v23 }
 0x276   :  { %v2768_v24 = vpop.eup %2767  ;;  %2506 = vmatprep.subr.bf16.mxu0 %v2834_v2 }
 0x277   :  { %v457_v25 = vsel %vm444_vm3, %v2768_v24, 0.0 }
 0x278   :  { %458 = vadd.xlane.f32.xlu1 %v457_v25 }
 0x27e   :  { %v2770_v30 = vpop.eup %2769 }
 0x27f   :  { %v460_v31 = vsel %vm444_vm3, %v2770_v30, 0.0 }
 0x289   :  { %618 = vrot.lane.b32.xlu1 %v2999_v52, %s2836_s15 }
 0x2ad   :  { %461 = vadd.xlane.f32.xlu1 %v460_v31 }
 0x2be   :  { %563 = vrot.lane.b32.xlu1 %v3001_v53, %s2836_s15 }
 0x2c2   :  { %615 = vrot.lane.b32.xlu1 %v3010_v56, %s2836_s15 }
 0x305   :  { %v459_v32 = vpop.xlane.xlu1 %458 }
 0x306   :  { %2771 = vrcp.f32 %v459_v32 }
 0x309   :  { %v619_v38 = vpop.permute.xlu1 %618 }
 0x30a   :  { %v624_v44 = vsel %vm351_vm1, %v619_v38, 0 }
 0x310   :  { %v2772_v33 = vpop.eup %2771 }
 0x311   :  { %v465_v35 = vmul.f32 %v2772_v33, %v2768_v24 }
 0x313   :  { %v467_v36 = vpack.c.bf16 %v465_v35, %v465_v35 }
 0x315   :  { %2485 = vmatmul.mubr.msk.bf16.vlgmr.msra.gmra.mrb[12].mxu1 %vm444_vm3, %v467_v36 }
 0x316   :  { %2489 = vmatpush3.bf16.msra.mxu1 %v520_v37  ;;  %2490 = vmatprep.mubr.msk.bf16.mxu1 %vm2835_vm0, %v2834_v2 }
 0x317   :  { %2500 = vmatprep.subr.bf16.mxu1 %v2834_v2 }
 0x33a   :  { %v462_v39 = vpop.xlane.xlu1 %461 }
 0x33b   :  { %2773 = vrcp.f32 %v462_v39 }
 0x33e   :  { %v564_v40 = vpop.permute.xlu1 %563 }
 0x33f   :  { %2497 = vmatmul.mubr.msk.bf16.vlgmr.msra.gmra.mrb[4].mxu0 %vm351_vm1, %v564_v40 }
 0x340   :  { %2508 = vmatprep.mubr.msk.bf16.mxu0 %vm2835_vm0, %v2834_v2 }
 0x342   :  { %v616_v45 = vpop.permute.xlu1 %615 }
 0x345   :  { %v2774_v41 = vpop.eup %2773 }
 0x346   :  { %v466_v42 = vmul.f32 %v2774_v41, %v2770_v30 }
 0x348   :  { %v468_v43 = vpack.c.bf16 %v466_v42, %v466_v42 }
 0x34a   :  { %2491 = vmatmul.mubr.msk.bf16.vlgmr.msra.gmra.mrb[16].mxu1 %vm444_vm3, %v468_v43 }
 0x34b   :  { %2501 = vmatpush3.bf16.xpose.msra.mxu1 %v624_v44  ;;  %2502 = vmatprep.mubr.msk.bf16.mxu1 %vm2835_vm0, %v2834_v2 }
 0x34c   :  { %2512 = vmatprep.subr.bf16.mxu1 %v2834_v2 }
 0x352   :  { %2503 = vmatmul.mubr.msk.bf16.vlgmr.msra.gmra.mrb[20].mxu1 %vm351_vm1, %v616_v45 }
 0x353   :  { %2514 = vmatprep.mubr.msk.bf16.mxu1 %vm2835_vm0, %v2834_v2 }
 0x3e8   :  { %v3066_v46 = vpop.f32.mrb[12].mxu1 }
 0x3e9   :  { %v2486_v47 = vpop.f32.mrb[13].mxu1 }
 0x3ea   :  { %v513_v49 = vpop.f32.mrb[14].mxu1 }
 0x3eb   :  { %v2487_v50 = vpop.f32.mrb[15].mxu1 }
 0x412   :  { %v608_v51 = vpop.f32.mrb[4].mxu0 }
 0x413   :  { %v609_v54 = vadd.f32 %v3024_v4, %v608_v51  ;;  %v2498_v55 = vpop.f32.mrb[5].mxu0 }
 0x414   :  { %v611_v57 = vpop.f32.mrb[6].mxu0 }
 0x415   :  { %v2499_v58 = vpop.f32.mrb[7].mxu0  ;;  %v666_v59 = vsel %vm444_vm3, %v609_v54, -inf }
 0x416   :  { %667 = vmax.xlane.f32.xlu0 %v666_v59 }
 0x41d   :  { %v3070_v60 = vpop.f32.mrb[16].mxu1 }
 0x41e   :  { %v2492_v61 = vpop.f32.mrb[17].mxu1 }
 0x41f   :  { %v559_v62 = vpop.f32.mrb[18].mxu1 }
 0x420   :  { %v2493_v0 = vpop.f32.mrb[19].mxu1 }
 0x425   :  { %v660_v1 = vpop.f32.mrb[20].mxu1 }
 0x426   :  { %v661_v3 = vadd.f32 %v3031_v11, %v660_v1  ;;  %v2504_v5 = vpop.f32.mrb[21].mxu1 }
 0x427   :  { %v663_v6 = vpop.f32.mrb[22].mxu1 }
 0x428   :  { %v2505_v7 = vpop.f32.mrb[23].mxu1  ;;  %v669_v8 = vsel %vm444_vm3, %v661_v3, -inf }
 0x429   :  { %670 = vmax.xlane.f32.xlu1 %v669_v8 }
 0x43a   :  { %740 = vrot.lane.b32.xlu1 %v3047_v34, %s2836_s15 }
 0x43e   :  { %790 = vrot.lane.b32.xlu1 %v2994_v48, %s2837_s16 }
 0x442   :  { %840 = vrot.lane.b32.xlu1 %v2999_v52, %s2837_s16 }
 0x446   :  { %838 = vrot.lane.b32.xlu1 %v3010_v56, %s2837_s16 }
 0x4a3   :  { %v668_v9 = vpop.xlane.xlu0 %667 }
 0x4a4   :  { %v672_v10 = vsub.f32 %v609_v54, %v668_v9 }
 0x4a6   :  { %v674_v12 = vmul.f32 1.442695, %v672_v10 }
 0x4a8   :  { %2775 = vpow2.f32 %v674_v12 }
 0x4b2   :  { %v2776_v13 = vpop.eup %2775 }
 0x4b3   :  { %v678_v14 = vsel %vm444_vm3, %v2776_v13, 0.0 }
 0x4b4   :  { %679 = vadd.xlane.f32.xlu0 %v678_v14 }
 0x4b6   :  { %v671_v15 = vpop.xlane.xlu1 %670 }
 0x4b7   :  { %v673_v16 = vsub.f32 %v661_v3, %v671_v15 }
 0x4b9   :  { %v676_v17 = vmul.f32 1.442695, %v673_v16 }
 0x4ba   :  { %v741_v18 = vpop.permute.xlu1 %740 }
 0x4bb   :  { %2777 = vpow2.f32 %v676_v17  ;;  %v746_v19 = vsel %vm472_vm2, %v741_v18, 0 }
 0x4bc   :  { %2513 = vmatpush3.bf16.msra.mxu1 %v746_v19 }
 0x4bd   :  { %2524 = vmatprep.subr.bf16.mxu1 %v2834_v2 }
 0x4be   :  { %v791_v30 = vpop.permute.xlu1 %790 }
 0x4bf   :  { %v796_v36 = vsel %vm351_vm1, %v791_v30, 0 }
 0x4c2   :  { %v841_v35 = vpop.permute.xlu1 %840 }
 0x4c3   :  { %v846_v38 = vsel %vm351_vm1, %v841_v35, 0 }
 0x4c5   :  { %v2778_v20 = vpop.eup %2777 }
 0x4c6   :  { %v681_v21 = vsel %vm444_vm3, %v2778_v20, 0.0  ;;  %v839_v40 = vpop.permute.xlu1 %838 }
 0x4c7   :  { %682 = vadd.xlane.f32.xlu0 %v681_v21 }
 0x4dd   :  { %691 = vrot.lane.b32.xlu0 %v3016_v63, %s2836_s15 }
 0x4e1   :  { %788 = vrot.lane.b32.xlu0 %v3001_v53, %s2837_s16 }
 0x541   :  { %v680_v22 = vpop.xlane.xlu0 %679 }
 0x542   :  { %2779 = vrcp.f32 %v680_v22 }
 0x54c   :  { %v2780_v23 = vpop.eup %2779 }
 0x54d   :  { %v686_v25 = vmul.f32 %v2780_v23, %v2776_v13 }
 0x54f   :  { %v688_v31 = vpack.c.bf16 %v686_v25, %v686_v25 }
 0x554   :  { %v683_v24 = vpop.xlane.xlu0 %682 }
 0x555   :  { %2781 = vrcp.f32 %v683_v24 }
 0x558   :  { %v692_v26 = vpop.permute.xlu0 %691 }
 0x559   :  { %v697_v27 = vsel %vm472_vm2, %v692_v26, 0 }
 0x55a   :  { %2507 = vmatpush3.bf16.msra.mxu0 %v697_v27 }
 0x55b   :  { %2518 = vmatprep.subr.bf16.mxu0 %v2834_v2 }
 0x55c   :  { %v789_v39 = vpop.permute.xlu0 %788 }
 0x55d   :  { %2509 = vmatmul.mubr.msk.bf16.vlgmr.msra.gmra.mrb[8].mxu0 %vm444_vm3, %v688_v31 }
 0x55e   :  { %2520 = vmatprep.mubr.msk.bf16.mxu0 %vm2835_vm0, %v2834_v2 }
 0x55f   :  { %v2782_v32 = vpop.eup %2781 }
 0x560   :  { %v687_v33 = vmul.f32 %v2782_v32, %v2778_v20 }
 0x562   :  { %v689_v37 = vpack.c.bf16 %v687_v33, %v687_v33 }
 0x563   :  { %2519 = vmatpush3.bf16.xpose.msra.mxu0 %v796_v36 }
 0x564   :  { %2515 = vmatmul.mubr.msk.bf16.vlgmr.msra.gmra.mrb[24].mxu1 %vm444_vm3, %v689_v37  ;;  %2530 = vmatprep.subr.bf16.mxu0 %v2834_v2 }
 0x565   :  { %2525 = vmatpush3.bf16.xpose.msra.mxu1 %v846_v38  ;;  %2526 = vmatprep.mubr.msk.bf16.mxu1 %vm2835_vm0, %v2834_v2 }
 0x566   :  { %2536 = vmatprep.subr.bf16.mxu1 %v2834_v2 }
 0x56a   :  { %2521 = vmatmul.mubr.msk.bf16.vlgmr.msra.gmra.mrb[12].mxu0 %vm351_vm1, %v789_v39 }
 0x56b   :  { %2532 = vmatprep.mubr.msk.bf16.mxu0 %vm2835_vm0, %v2834_v2 }
 0x56c   :  { %2527 = vmatmul.mubr.msk.bf16.vlgmr.msra.gmra.mrb[28].mxu1 %vm351_vm1, %v839_v40 }
 0x56d   :  { %2538 = vmatprep.mubr.msk.bf16.mxu1 %vm2835_vm0, %v2834_v2 }
 0x630   :  { %v3108_v41 = vpop.f32.mrb[8].mxu0 }
 0x631   :  { %v2510_v42 = vpop.f32.mrb[9].mxu0 }
 0x632   :  { %v736_v43 = vpop.f32.mrb[10].mxu0 }
 0x633   :  { %v2511_v44 = vpop.f32.mrb[11].mxu0 }
 0x637   :  { %v3110_v45 = vpop.f32.mrb[24].mxu1 }
 0x638   :  { %v2692_v47 = vpack.i.bf16 %v3110_v45, %v3108_v41  ;;  %v2516_v49 = vpop.f32.mrb[25].mxu1 }
 0x639   :  { %v785_v50 = vpop.f32.mrb[26].mxu1 }
 0x63a   :  { %v2517_v51 = vpop.f32.mrb[27].mxu1 }
 0x63d   :  { %v832_v54 = vpop.f32.mrb[12].mxu0 }
 0x63e   :  { %v833_v55 = vadd.f32 %v3024_v4, %v832_v54  ;;  %v2522_v57 = vpop.f32.mrb[13].mxu0 }
 0x63f   :  { %v835_v58 = vpop.f32.mrb[14].mxu0  ;;  %v882_v59 = vpop.f32.mrb[28].mxu1 }
 0x640   :  { %v883_v61 = vadd.f32 %v3031_v11, %v882_v59  ;;  %v2523_v62 = vpop.f32.mrb[15].mxu0  ;;  %v2528_v0 = vpop.f32.mrb[29].mxu1  ;;  %v888_v1 = vsel %vm444_vm3, %v833_v55, -inf }
 0x641   :  { %889 = vmax.xlane.f32.xlu0 %v888_v1  ;;  %v885_v3 = vpop.f32.mrb[30].mxu1 }
 0x642   :  { %v2529_v5 = vpop.f32.mrb[31].mxu1  ;;  %v891_v6 = vsel %vm444_vm3, %v883_v61, -inf }
 0x643   :  { %892 = vmax.xlane.f32.xlu1 %v891_v6 }
 0x654   :  { %960 = vrot.lane.b32.xlu1 %v3047_v34, %s2837_s16 }
 0x658   :  { %1010 = vrot.lane.b32.xlu1 %v2994_v48, %s2838_s17 }
 0x65c   :  { %1060 = vrot.lane.b32.xlu1 %v2999_v52, %s2838_s17 }
 0x660   :  { %1058 = vrot.lane.b32.xlu1 %v3010_v56, %s2838_s17 }
 0x6ce   :  { %v890_v7 = vpop.xlane.xlu0 %889 }
 0x6cf   :  { %v894_v8 = vsub.f32 %v833_v55, %v890_v7 }
 0x6d0   :  { %v893_v9 = vpop.xlane.xlu1 %892 }
 0x6d1   :  { %v896_v10 = vmul.f32 1.442695, %v894_v8  ;;  %v895_v12 = vsub.f32 %v883_v61, %v893_v9 }
 0x6d3   :  { %2783 = vpow2.f32 %v896_v10  ;;  %v898_v13 = vmul.f32 1.442695, %v895_v12 }
 0x6d4   :  { %v961_v14 = vpop.permute.xlu1 %960 }
 0x6d5   :  { %2785 = vpow2.f32 %v898_v13  ;;  %v966_v15 = vsel %vm472_vm2, %v961_v14, 0 }
 0x6d6   :  { %2537 = vmatpush3.bf16.msra.mxu1 %v966_v15 }
 0x6d7   :  { %2548 = vmatprep.subr.bf16.mxu1 %v2834_v2 }
 0x6d8   :  { %v1011_v25 = vpop.permute.xlu1 %1010 }
 0x6d9   :  { %v1016_v33 = vsel %vm351_vm1, %v1011_v25, 0 }
 0x6dc   :  { %v1061_v32 = vpop.permute.xlu1 %1060 }
 0x6dd   :  { %v2784_v16 = vpop.eup %2783  ;;  %v1066_v36 = vsel %vm351_vm1, %v1061_v32, 0 }
 0x6de   :  { %v900_v17 = vsel %vm444_vm3, %v2784_v16, 0.0 }
 0x6df   :  { %v2786_v18 = vpop.eup %2785  ;;  %901 = vadd.xlane.f32.xlu0 %v900_v17 }
 0x6e0   :  { %v903_v19 = vsel %vm444_vm3, %v2786_v18, 0.0  ;;  %v1059_v38 = vpop.permute.xlu1 %1058 }
 0x6e3   :  { %904 = vadd.xlane.f32.xlu0 %v903_v19 }
 0x6f9   :  { %912 = vrot.lane.b32.xlu0 %v3016_v63, %s2837_s16 }
 0x6fd   :  { %1008 = vrot.lane.b32.xlu0 %v3001_v53, %s2838_s17 }
 0x76c   :  { %v902_v20 = vpop.xlane.xlu0 %901 }
 0x76d   :  { %2787 = vrcp.f32 %v902_v20 }
 0x770   :  { %v905_v21 = vpop.xlane.xlu0 %904 }
 0x771   :  { %2789 = vrcp.f32 %v905_v21 }
 0x774   :  { %v913_v22 = vpop.permute.xlu0 %912 }
 0x775   :  { %v918_v23 = vsel %vm472_vm2, %v913_v22, 0 }
 0x776   :  { %2531 = vmatpush3.bf16.msra.mxu0 %v918_v23 }
 0x777   :  { %v2788_v24 = vpop.eup %2787  ;;  %2542 = vmatprep.subr.bf16.mxu0 %v2834_v2 }
 0x778   :  { %v908_v26 = vmul.f32 %v2788_v24, %v2784_v16  ;;  %v1009_v37 = vpop.permute.xlu0 %1008 }
 0x77a   :  { %v910_v27 = vpack.c.bf16 %v908_v26, %v908_v26 }
 0x77b   :  { %v2790_v30 = vpop.eup %2789 }
 0x77c   :  { %v909_v31 = vmul.f32 %v2790_v30, %v2786_v18  ;;  %2533 = vmatmul.mubr.msk.bf16.vlgmr.msra.gmra.mrb[16].mxu0 %vm444_vm3, %v910_v27 }
 0x77d   :  { %2544 = vmatprep.mubr.msk.bf16.mxu0 %vm2835_vm0, %v2834_v2 }
 0x77e   :  { %v911_v35 = vpack.c.bf16 %v909_v31, %v909_v31 }
 0x77f   :  { %2543 = vmatpush3.bf16.xpose.msra.mxu0 %v1016_v33 }
 0x780   :  { %2539 = vmatmul.mubr.msk.bf16.vlgmr.msra.gmra.mrb[32].mxu1 %vm444_vm3, %v911_v35  ;;  %2554 = vmatprep.subr.bf16.mxu0 %v2834_v2 }
 0x781   :  { %2549 = vmatpush3.bf16.xpose.msra.mxu1 %v1066_v36  ;;  %2550 = vmatprep.mubr.msk.bf16.mxu1 %vm2835_vm0, %v2834_v2 }
 0x782   :  { %2560 = vmatprep.subr.bf16.mxu1 %v2834_v2 }
 0x786   :  { %2545 = vmatmul.mubr.msk.bf16.vlgmr.msra.gmra.mrb[20].mxu0 %vm351_vm1, %v1009_v37 }
 0x787   :  { %2556 = vmatprep.mubr.msk.bf16.mxu0 %vm2835_vm0, %v2834_v2 }
 0x788   :  { %2551 = vmatmul.mubr.msk.bf16.vlgmr.msra.gmra.mrb[36].mxu1 %vm351_vm1, %v1059_v38 }
 0x789   :  { %2562 = vmatprep.mubr.msk.bf16.mxu1 %vm2835_vm0, %v2834_v2 }
 0x84f   :  { %v3152_v39 = vpop.f32.mrb[16].mxu0 }
 0x850   :  { %v2534_v40 = vpop.f32.mrb[17].mxu0 }
 0x851   :  { %v957_v42 = vpop.f32.mrb[18].mxu0 }
 0x852   :  { %v2535_v43 = vpop.f32.mrb[19].mxu0 }
 0x853   :  { %v3154_v44 = vpop.f32.mrb[32].mxu1 }
 0x854   :  { %v2697_v49 = vpack.i.bf16 %v3154_v44, %v3152_v39  ;;  %v2540_v50 = vpop.f32.mrb[33].mxu1 }
 0x855   :  { %v1005_v51 = vpop.f32.mrb[34].mxu1 }
 0x856   :  { %v2541_v54 = vpop.f32.mrb[35].mxu1 }
 0x859   :  { %v1052_v55 = vpop.f32.mrb[20].mxu0 }
 0x85a   :  { %v1053_v57 = vadd.f32 %v3024_v4, %v1052_v55  ;;  %v2546_v58 = vpop.f32.mrb[21].mxu0 }
 0x85b   :  { %v1055_v59 = vpop.f32.mrb[22].mxu0  ;;  %v1102_v61 = vpop.f32.mrb[36].mxu1 }
 0x85c   :  { %v1103_v62 = vadd.f32 %v3031_v11, %v1102_v61  ;;  %v2547_v0 = vpop.f32.mrb[23].mxu0  ;;  %v2552_v1 = vpop.f32.mrb[37].mxu1  ;;  %v1108_v3 = vsel %vm444_vm3, %v1053_v57, -inf }
 0x85d   :  { %1109 = vmax.xlane.f32.xlu0 %v1108_v3  ;;  %v1105_v5 = vpop.f32.mrb[38].mxu1 }
 0x85e   :  { %v2553_v6 = vpop.f32.mrb[39].mxu1  ;;  %v1111_v7 = vsel %vm444_vm3, %v1103_v62, -inf }
 0x85f   :  { %1112 = vmax.xlane.f32.xlu1 %v1111_v7 }
 0x870   :  { %1180 = vrot.lane.b32.xlu1 %v3047_v34, %s2838_s17 }
 0x874   :  { %1230 = vrot.lane.b32.xlu1 %v2994_v48, %s2839_s18 }
 0x878   :  { %1280 = vrot.lane.b32.xlu1 %v2999_v52, %s2839_s18 }
 0x87c   :  { %1278 = vrot.lane.b32.xlu1 %v3010_v56, %s2839_s18 }
 0x8ea   :  { %v1110_v8 = vpop.xlane.xlu0 %1109 }
 0x8eb   :  { %v1114_v9 = vsub.f32 %v1053_v57, %v1110_v8 }
 0x8ec   :  { %v1113_v10 = vpop.xlane.xlu1 %1112 }
 0x8ed   :  { %v1116_v12 = vmul.f32 1.442695, %v1114_v9  ;;  %v1115_v13 = vsub.f32 %v1103_v62, %v1113_v10 }
 0x8ef   :  { %2791 = vpow2.f32 %v1116_v12  ;;  %v1118_v14 = vmul.f32 1.442695, %v1115_v13 }
 0x8f0   :  { %v1181_v15 = vpop.permute.xlu1 %1180 }
 0x8f1   :  { %2793 = vpow2.f32 %v1118_v14  ;;  %v1186_v16 = vsel %vm472_vm2, %v1181_v15, 0 }
 0x8f2   :  { %2561 = vmatpush3.bf16.msra.mxu1 %v1186_v16 }
 0x8f3   :  { %2572 = vmatprep.subr.bf16.mxu1 %v2834_v2 }
 0x8f4   :  { %v1231_v26 = vpop.permute.xlu1 %1230 }
 0x8f5   :  { %v1236_v35 = vsel %vm351_vm1, %v1231_v26, 0 }
 0x8f8   :  { %v1281_v33 = vpop.permute.xlu1 %1280 }
 0x8f9   :  { %v2792_v17 = vpop.eup %2791  ;;  %v1286_v37 = vsel %vm351_vm1, %v1281_v33, 0 }
 0x8fa   :  { %v1120_v18 = vsel %vm444_vm3, %v2792_v17, 0.0 }
 0x8fb   :  { %v2794_v19 = vpop.eup %2793  ;;  %1121 = vadd.xlane.f32.xlu0 %v1120_v18 }
 0x8fc   :  { %v1123_v20 = vsel %vm444_vm3, %v2794_v19, 0.0  ;;  %v1279_v40 = vpop.permute.xlu1 %1278 }
 0x8ff   :  { %1124 = vadd.xlane.f32.xlu0 %v1123_v20 }
 0x915   :  { %1132 = vrot.lane.b32.xlu0 %v3016_v63, %s2838_s17 }
 0x919   :  { %1228 = vrot.lane.b32.xlu0 %v3001_v53, %s2839_s18 }
 0x988   :  { %v1122_v21 = vpop.xlane.xlu0 %1121 }
 0x989   :  { %2795 = vrcp.f32 %v1122_v21 }
 0x98c   :  { %v1125_v22 = vpop.xlane.xlu0 %1124 }
 0x98d   :  { %2797 = vrcp.f32 %v1125_v22 }
 0x990   :  { %v1133_v23 = vpop.permute.xlu0 %1132 }
 0x991   :  { %v1138_v24 = vsel %vm472_vm2, %v1133_v23, 0 }
 0x992   :  { %2555 = vmatpush3.bf16.msra.mxu0 %v1138_v24 }
 0x993   :  { %v2796_v25 = vpop.eup %2795  ;;  %2566 = vmatprep.subr.bf16.mxu0 %v2834_v2 }
 0x994   :  { %v1128_v27 = vmul.f32 %v2796_v25, %v2792_v17  ;;  %v1229_v38 = vpop.permute.xlu0 %1228 }
 0x996   :  { %v1130_v30 = vpack.c.bf16 %v1128_v27, %v1128_v27 }
 0x997   :  { %v2798_v31 = vpop.eup %2797 }
 0x998   :  { %v1129_v32 = vmul.f32 %v2798_v31, %v2794_v19  ;;  %2557 = vmatmul.mubr.msk.bf16.vlgmr.msra.gmra.mrb[24].mxu0 %vm444_vm3, %v1130_v30 }
 0x999   :  { %2568 = vmatprep.mubr.msk.bf16.mxu0 %vm2835_vm0, %v2834_v2 }
 0x99a   :  { %v1131_v36 = vpack.c.bf16 %v1129_v32, %v1129_v32 }
 0x99b   :  { %2567 = vmatpush3.bf16.xpose.msra.mxu0 %v1236_v35 }
 0x99c   :  { %2563 = vmatmul.mubr.msk.bf16.vlgmr.msra.gmra.mrb[40].mxu1 %vm444_vm3, %v1131_v36  ;;  %2578 = vmatprep.subr.bf16.mxu0 %v2834_v2 }
 0x99d   :  { %2573 = vmatpush3.bf16.xpose.msra.mxu1 %v1286_v37  ;;  %2574 = vmatprep.mubr.msk.bf16.mxu1 %vm2835_vm0, %v2834_v2 }
 0x99e   :  { %2584 = vmatprep.subr.bf16.mxu1 %v2834_v2 }
 0x9a2   :  { %2569 = vmatmul.mubr.msk.bf16.vlgmr.msra.gmra.mrb[28].mxu0 %vm351_vm1, %v1229_v38 }
 0x9a3   :  { %2580 = vmatprep.mubr.msk.bf16.mxu0 %vm2835_vm0, %v2834_v2 }
 0x9a4   :  { %2575 = vmatmul.mubr.msk.bf16.vlgmr.msra.gmra.mrb[44].mxu1 %vm351_vm1, %v1279_v40 }
 0x9a5   :  { %2586 = vmatprep.mubr.msk.bf16.mxu1 %vm2835_vm0, %v2834_v2 }
 0xa6b   :  { %v3196_v42 = vpop.f32.mrb[24].mxu0 }
 0xa6c   :  { %v2558_v43 = vpop.f32.mrb[25].mxu0 }
 0xa6d   :  { %v1177_v50 = vpop.f32.mrb[26].mxu0 }
 0xa6e   :  { %v2559_v51 = vpop.f32.mrb[27].mxu0 }
 0xa6f   :  { %v3198_v54 = vpop.f32.mrb[40].mxu1 }
 0xa70   :  { %v2702_v55 = vpack.i.bf16 %v3198_v54, %v3196_v42  ;;  %v2564_v57 = vpop.f32.mrb[41].mxu1 }
 0xa71   :  { %v1225_v58 = vpop.f32.mrb[42].mxu1 }
 0xa72   :  { %v2565_v59 = vpop.f32.mrb[43].mxu1 }
 0xa75   :  { %v1272_v61 = vpop.f32.mrb[28].mxu0 }
 0xa76   :  { %v1273_v62 = vadd.f32 %v3024_v4, %v1272_v61  ;;  %v2570_v0 = vpop.f32.mrb[29].mxu0 }
 0xa77   :  { %v1275_v1 = vpop.f32.mrb[30].mxu0  ;;  %v1322_v3 = vpop.f32.mrb[44].mxu1 }
 0xa78   :  { %v1323_v5 = vadd.f32 %v3031_v11, %v1322_v3  ;;  %v2571_v6 = vpop.f32.mrb[31].mxu0  ;;  %v2576_v7 = vpop.f32.mrb[45].mxu1  ;;  %v1328_v8 = vsel %vm444_vm3, %v1273_v62, -inf }
 0xa79   :  { %1329 = vmax.xlane.f32.xlu0 %v1328_v8  ;;  %v1325_v9 = vpop.f32.mrb[46].mxu1 }
 0xa7a   :  { %v2577_v10 = vpop.f32.mrb[47].mxu1  ;;  %v1331_v12 = vsel %vm444_vm3, %v1323_v5, -inf }
 0xa7b   :  { %1332 = vmax.xlane.f32.xlu1 %v1331_v12 }
 0xa8c   :  { %1400 = vrot.lane.b32.xlu1 %v3047_v34, %s2839_s18 }
 0xa90   :  { %1450 = vrot.lane.b32.xlu1 %v2994_v48, %s2840_s19 }
 0xa94   :  { %1500 = vrot.lane.b32.xlu1 %v2999_v52, %s2840_s19 }
 0xa98   :  { %1498 = vrot.lane.b32.xlu1 %v3010_v56, %s2840_s19 }
 0xb06   :  { %v1330_v13 = vpop.xlane.xlu0 %1329 }
 0xb07   :  { %v1334_v14 = vsub.f32 %v1273_v62, %v1330_v13 }
 0xb08   :  { %v1333_v15 = vpop.xlane.xlu1 %1332 }
 0xb09   :  { %v1336_v16 = vmul.f32 1.442695, %v1334_v14  ;;  %v1335_v17 = vsub.f32 %v1323_v5, %v1333_v15 }
 0xb0b   :  { %2799 = vpow2.f32 %v1336_v16  ;;  %v1338_v18 = vmul.f32 1.442695, %v1335_v17 }
 0xb0c   :  { %v1401_v19 = vpop.permute.xlu1 %1400 }
 0xb0d   :  { %2801 = vpow2.f32 %v1338_v18  ;;  %v1406_v20 = vsel %vm472_vm2, %v1401_v19, 0 }
 0xb0e   :  { %2585 = vmatpush3.bf16.msra.mxu1 %v1406_v20 }
 0xb0f   :  { %2596 = vmatprep.subr.bf16.mxu1 %v2834_v2 }
 0xb10   :  { %v1451_v32 = vpop.permute.xlu1 %1450 }
 0xb11   :  { %v1456_v40 = vsel %vm351_vm1, %v1451_v32, 0 }
 0xb14   :  { %v1501_v38 = vpop.permute.xlu1 %1500 }
 0xb15   :  { %v2800_v21 = vpop.eup %2799  ;;  %v1506_v50 = vsel %vm351_vm1, %v1501_v38, 0 }
 0xb16   :  { %v1340_v22 = vsel %vm444_vm3, %v2800_v21, 0.0 }
 0xb17   :  { %v2802_v23 = vpop.eup %2801  ;;  %1341 = vadd.xlane.f32.xlu0 %v1340_v22 }
 0xb18   :  { %v1343_v24 = vsel %vm444_vm3, %v2802_v23, 0.0  ;;  %v1499_v57 = vpop.permute.xlu1 %1498 }
 0xb1b   :  { %1344 = vadd.xlane.f32.xlu0 %v1343_v24 }
 0xb31   :  { %1352 = vrot.lane.b32.xlu0 %v3016_v63, %s2839_s18 }
 0xb35   :  { %1448 = vrot.lane.b32.xlu0 %v3001_v53, %s2840_s19 }
 0xba4   :  { %v1342_v25 = vpop.xlane.xlu0 %1341 }
 0xba5   :  { %2803 = vrcp.f32 %v1342_v25 }
 0xba8   :  { %v1345_v26 = vpop.xlane.xlu0 %1344 }
 0xba9   :  { %2805 = vrcp.f32 %v1345_v26 }
 0xbac   :  { %v1353_v27 = vpop.permute.xlu0 %1352 }
 0xbad   :  { %v1358_v30 = vsel %vm472_vm2, %v1353_v27, 0 }
 0xbae   :  { %2579 = vmatpush3.bf16.msra.mxu0 %v1358_v30 }
 0xbaf   :  { %v2804_v31 = vpop.eup %2803  ;;  %2590 = vmatprep.subr.bf16.mxu0 %v2834_v2 }
 0xbb0   :  { %v1348_v33 = vmul.f32 %v2804_v31, %v2800_v21  ;;  %v1449_v51 = vpop.permute.xlu0 %1448 }
 0xbb2   :  { %v1350_v35 = vpack.c.bf16 %v1348_v33, %v1348_v33 }
 0xbb3   :  { %v2806_v36 = vpop.eup %2805 }
 0xbb4   :  { %v1349_v37 = vmul.f32 %v2806_v36, %v2802_v23  ;;  %2581 = vmatmul.mubr.msk.bf16.vlgmr.msra.gmra.mrb[32].mxu0 %vm444_vm3, %v1350_v35 }
 0xbb5   :  { %2592 = vmatprep.mubr.msk.bf16.mxu0 %vm2835_vm0, %v2834_v2 }
 0xbb6   :  { %v1351_v43 = vpack.c.bf16 %v1349_v37, %v1349_v37 }
 0xbb7   :  { %2591 = vmatpush3.bf16.xpose.msra.mxu0 %v1456_v40 }
 0xbb8   :  { %2587 = vmatmul.mubr.msk.bf16.vlgmr.msra.gmra.mrb[48].mxu1 %vm444_vm3, %v1351_v43  ;;  %2602 = vmatprep.subr.bf16.mxu0 %v2834_v2 }
 0xbb9   :  { %2597 = vmatpush3.bf16.xpose.msra.mxu1 %v1506_v50  ;;  %2598 = vmatprep.mubr.msk.bf16.mxu1 %vm2835_vm0, %v2834_v2 }
 0xbba   :  { %2608 = vmatprep.subr.bf16.mxu1 %v2834_v2 }
 0xbbe   :  { %2593 = vmatmul.mubr.msk.bf16.vlgmr.msra.gmra.mrb[36].mxu0 %vm351_vm1, %v1449_v51 }
 0xbbf   :  { %2604 = vmatprep.mubr.msk.bf16.mxu0 %vm2835_vm0, %v2834_v2 }
 0xbc0   :  { %2599 = vmatmul.mubr.msk.bf16.vlgmr.msra.gmra.mrb[52].mxu1 %vm351_vm1, %v1499_v57 }
 0xbc1   :  { %2610 = vmatprep.mubr.msk.bf16.mxu1 %vm2835_vm0, %v2834_v2 }
 0xc87   :  { %v3240_v58 = vpop.f32.mrb[32].mxu0 }
 0xc88   :  { %v2582_v59 = vpop.f32.mrb[33].mxu0 }
 0xc89   :  { %v1397_v61 = vpop.f32.mrb[34].mxu0 }
 0xc8a   :  { %v2583_v62 = vpop.f32.mrb[35].mxu0 }
 0xc8b   :  { %v3242_v0 = vpop.f32.mrb[48].mxu1 }
 0xc8c   :  { %v2707_v1 = vpack.i.bf16 %v3242_v0, %v3240_v58  ;;  %v2588_v3 = vpop.f32.mrb[49].mxu1 }
 0xc8d   :  { %v1445_v5 = vpop.f32.mrb[50].mxu1 }
 0xc8e   :  { %v2589_v6 = vpop.f32.mrb[51].mxu1 }
 0xc91   :  { %v1492_v7 = vpop.f32.mrb[36].mxu0 }
 0xc92   :  { %v1493_v8 = vadd.f32 %v3024_v4, %v1492_v7  ;;  %v2594_v9 = vpop.f32.mrb[37].mxu0 }
 0xc93   :  { %v1495_v10 = vpop.f32.mrb[38].mxu0  ;;  %v1542_v12 = vpop.f32.mrb[52].mxu1 }
 0xc94   :  { %v1543_v13 = vadd.f32 %v3031_v11, %v1542_v12  ;;  %v2595_v14 = vpop.f32.mrb[39].mxu0  ;;  %v2600_v15 = vpop.f32.mrb[53].mxu1  ;;  %v1548_v16 = vsel %vm444_vm3, %v1493_v8, -inf }
 0xc95   :  { %1549 = vmax.xlane.f32.xlu0 %v1548_v16  ;;  %v1545_v17 = vpop.f32.mrb[54].mxu1 }
 0xc96   :  { %v2601_v18 = vpop.f32.mrb[55].mxu1  ;;  %v1551_v19 = vsel %vm444_vm3, %v1543_v13, -inf }
 0xc97   :  { %1552 = vmax.xlane.f32.xlu1 %v1551_v19 }
 0xca8   :  { %1620 = vrot.lane.b32.xlu1 %v3047_v34, %s2840_s19 }
 0xcac   :  { %1670 = vrot.lane.b32.xlu1 %v2994_v48, %s2841_s20 }
 0xcb0   :  { %1720 = vrot.lane.b32.xlu1 %v2999_v52, %s2841_s20 }
 0xcb4   :  { %1718 = vrot.lane.b32.xlu1 %v3010_v56, %s2841_s20 }
 0xd22   :  { %v1550_v20 = vpop.xlane.xlu0 %1549 }
 0xd23   :  { %v1554_v21 = vsub.f32 %v1493_v8, %v1550_v20 }
 0xd24   :  { %v1553_v22 = vpop.xlane.xlu1 %1552 }
 0xd25   :  { %v1556_v23 = vmul.f32 1.442695, %v1554_v21  ;;  %v1555_v24 = vsub.f32 %v1543_v13, %v1553_v22 }
 0xd27   :  { %2807 = vpow2.f32 %v1556_v23  ;;  %v1558_v25 = vmul.f32 1.442695, %v1555_v24 }
 0xd28   :  { %v1621_v26 = vpop.permute.xlu1 %1620 }
 0xd29   :  { %2809 = vpow2.f32 %v1558_v25  ;;  %v1626_v27 = vsel %vm472_vm2, %v1621_v26, 0 }
 0xd2a   :  { %2609 = vmatpush3.bf16.msra.mxu1 %v1626_v27 }
 0xd2b   :  { %2620 = vmatprep.subr.bf16.mxu1 %v2834_v2 }
 0xd2c   :  { %v1671_v43 = vpop.permute.xlu1 %1670 }
 0xd2d   :  { %v1676_v62 = vsel %vm351_vm1, %v1671_v43, 0 }
 0xd30   :  { %v1721_v61 = vpop.permute.xlu1 %1720 }
 0xd31   :  { %v2808_v30 = vpop.eup %2807  ;;  %v1726_v5 = vsel %vm351_vm1, %v1721_v61, 0 }
 0xd32   :  { %v1560_v31 = vsel %vm444_vm3, %v2808_v30, 0.0 }
 0xd33   :  { %v2810_v32 = vpop.eup %2809  ;;  %1561 = vadd.xlane.f32.xlu0 %v1560_v31 }
 0xd34   :  { %v1563_v33 = vsel %vm444_vm3, %v2810_v32, 0.0  ;;  %v1719_v7 = vpop.permute.xlu1 %1718 }
 0xd37   :  { %1564 = vadd.xlane.f32.xlu0 %v1563_v33 }
 0xd4d   :  { %1572 = vrot.lane.b32.xlu0 %v3016_v63, %s2840_s19 }
 0xd51   :  { %1668 = vrot.lane.b32.xlu0 %v3001_v53, %s2841_s20 }
 0xdc0   :  { %v1562_v35 = vpop.xlane.xlu0 %1561 }
 0xdc1   :  { %2811 = vrcp.f32 %v1562_v35 }
 0xdc4   :  { %v1565_v36 = vpop.xlane.xlu0 %1564 }
 0xdc5   :  { %2813 = vrcp.f32 %v1565_v36 }
 0xdc8   :  { %v1573_v37 = vpop.permute.xlu0 %1572 }
 0xdc9   :  { %v1578_v38 = vsel %vm472_vm2, %v1573_v37, 0 }
 0xdca   :  { %2603 = vmatpush3.bf16.msra.mxu0 %v1578_v38 }
 0xdcb   :  { %v2812_v40 = vpop.eup %2811  ;;  %2614 = vmatprep.subr.bf16.mxu0 %v2834_v2 }
 0xdcc   :  { %v1568_v50 = vmul.f32 %v2812_v40, %v2808_v30  ;;  %v1669_v6 = vpop.permute.xlu0 %1668 }
 0xdce   :  { %v1570_v51 = vpack.c.bf16 %v1568_v50, %v1568_v50 }
 0xdcf   :  { %v2814_v57 = vpop.eup %2813 }
 0xdd0   :  { %v1569_v59 = vmul.f32 %v2814_v57, %v2810_v32  ;;  %2605 = vmatmul.mubr.msk.bf16.vlgmr.msra.gmra.mrb[40].mxu0 %vm444_vm3, %v1570_v51 }
 0xdd1   :  { %2616 = vmatprep.mubr.msk.bf16.mxu0 %vm2835_vm0, %v2834_v2 }
 0xdd2   :  { %v1571_v3 = vpack.c.bf16 %v1569_v59, %v1569_v59 }
 0xdd3   :  { %2615 = vmatpush3.bf16.xpose.msra.mxu0 %v1676_v62 }
 0xdd4   :  { %2611 = vmatmul.mubr.msk.bf16.vlgmr.msra.gmra.mrb[56].mxu1 %vm444_vm3, %v1571_v3  ;;  %2626 = vmatprep.subr.bf16.mxu0 %v2834_v2 }
 0xdd5   :  { %2621 = vmatpush3.bf16.xpose.msra.mxu1 %v1726_v5  ;;  %2622 = vmatprep.mubr.msk.bf16.mxu1 %vm2835_vm0, %v2834_v2 }
 0xdd6   :  { %2632 = vmatprep.subr.bf16.mxu1 %v2834_v2 }
 0xdda   :  { %2617 = vmatmul.mubr.msk.bf16.vlgmr.msra.gmra.mrb[44].mxu0 %vm351_vm1, %v1669_v6 }
 0xddb   :  { %2628 = vmatprep.mubr.msk.bf16.mxu0 %vm2835_vm0, %v2834_v2 }
 0xddc   :  { %2623 = vmatmul.mubr.msk.bf16.vlgmr.msra.gmra.mrb[60].mxu1 %vm351_vm1, %v1719_v7 }
 0xddd   :  { %2634 = vmatprep.mubr.msk.bf16.mxu1 %vm2835_vm0, %v2834_v2 }
 0xea3   :  { %v3284_v8 = vpop.f32.mrb[40].mxu0 }
 0xea4   :  { %v2606_v9 = vpop.f32.mrb[41].mxu0 }
 0xea5   :  { %v1617_v10 = vpop.f32.mrb[42].mxu0 }
 0xea6   :  { %v2607_v12 = vpop.f32.mrb[43].mxu0 }
 0xea7   :  { %v3286_v13 = vpop.f32.mrb[56].mxu1 }
 0xea8   :  { %v2712_v14 = vpack.i.bf16 %v3286_v13, %v3284_v8  ;;  %v2612_v15 = vpop.f32.mrb[57].mxu1  ;;  %v2759_v8 = vld [vmem:[%s3420_s6] sm:$0xff]   ;;  %v2760_v13 = vld [vmem:[%s3420_s6 + $0x8] sm:$0xff]  }
 0xea9   :  { %v1665_v16 = vpop.f32.mrb[58].mxu1 }
 0xeaa   :  { %v2613_v17 = vpop.f32.mrb[59].mxu1 }
 0xead   :  { %v1712_v18 = vpop.f32.mrb[44].mxu0 }
 0xeae   :  { %v1713_v19 = vadd.f32 %v3024_v4, %v1712_v18  ;;  %v2618_v20 = vpop.f32.mrb[45].mxu0 }
 0xeaf   :  { %v1715_v21 = vpop.f32.mrb[46].mxu0  ;;  %v1762_v22 = vpop.f32.mrb[60].mxu1 }
 0xeb0   :  { %v1763_v23 = vadd.f32 %v3031_v11, %v1762_v22  ;;  %v2619_v24 = vpop.f32.mrb[47].mxu0  ;;  %v2624_v25 = vpop.f32.mrb[61].mxu1  ;;  %v1768_v26 = vsel %vm444_vm3, %v1713_v19, -inf }
 0xeb1   :  { %1769 = vmax.xlane.f32.xlu0 %v1768_v26  ;;  %v1765_v27 = vpop.f32.mrb[62].mxu1  ;;  %v2831_v26 = vld [vmem:[%s3419_s1] ss:$0 sm:$0xff] }
 0xeb2   :  { %v2625_v30 = vpop.f32.mrb[63].mxu1  ;;  %v1771_v31 = vsel %vm444_vm3, %v1763_v23, -inf }
 0xeb3   :  { %1772 = vmax.xlane.f32.xlu1 %v1771_v31 }
 0xec4   :  { %1840 = vrot.lane.b32.xlu1 %v3047_v34, %s2841_s20 }
 0xec8   :  { %1890 = vrot.lane.b32.xlu1 %v2994_v48, %s2842_s21 }
 0xecc   :  { %1940 = vrot.lane.b32.xlu1 %v2999_v52, %s2842_s21 }
 0xed0   :  { %1938 = vrot.lane.b32.xlu1 %v3010_v56, %s2842_s21 }
 0xf3e   :  { %v1770_v4 = vpop.xlane.xlu0 %1769 }
 0xf3f   :  { %v1774_v11 = vsub.f32 %v1713_v19, %v1770_v4 }
 0xf40   :  { %v1773_v32 = vpop.xlane.xlu1 %1772 }
 0xf41   :  { %v1776_v33 = vmul.f32 1.442695, %v1774_v11  ;;  %v1775_v35 = vsub.f32 %v1763_v23, %v1773_v32  ;;  %v2832_v11 = vld [vmem:[%s3419_s1 + $0x1] ss:$0 sm:$0xff] }
 0xf43   :  { %2815 = vpow2.f32 %v1776_v33  ;;  %v1778_v36 = vmul.f32 1.442695, %v1775_v35 }
 0xf44   :  { %v1841_v37 = vpop.permute.xlu1 %1840 }
 0xf45   :  { %2817 = vpow2.f32 %v1778_v36  ;;  %v1846_v38 = vsel %vm472_vm2, %v1841_v37, 0 }
 0xf46   :  { %2633 = vmatpush3.bf16.msra.mxu1 %v1846_v38 }
 0xf47   :  { %2644 = vmatprep.subr.bf16.mxu1 %v2834_v2 }
 0xf48   :  { %v1891_v61 = vpop.permute.xlu1 %1890 }
 0xf4c   :  { %v1941_v7 = vpop.permute.xlu1 %1940 }
 0xf4d   :  { %v2816_v48 = vpop.eup %2815  ;;  %v1946_v10 = vsel %vm351_vm1, %v1941_v7, 0 }
 0xf4e   :  { %v1780_v52 = vsel %vm444_vm3, %v2816_v48, 0.0 }
 0xf4f   :  { %v2818_v40 = vpop.eup %2817  ;;  %1781 = vadd.xlane.f32.xlu0 %v1780_v52 }
 0xf50   :  { %v1783_v56 = vsel %vm444_vm3, %v2818_v40, 0.0  ;;  %v1939_v15 = vpop.permute.xlu1 %1938 }
 0xf53   :  { %1784 = vadd.xlane.f32.xlu0 %v1783_v56 }
 0xf69   :  { %1792 = vrot.lane.b32.xlu0 %v3016_v63, %s2841_s20 }
 0xf6d   :  { %1888 = vrot.lane.b32.xlu0 %v3001_v53, %s2842_s21  ;;  %v1896_v53 = vsel %vm351_vm1, %v1891_v61, 0  ;;  %v2762_v61 = vld [vmem:[%s3420_s6 + $0x18] sm:$0xff]  }
 0xfdc   :  { %v1782_v43 = vpop.xlane.xlu0 %1781 }
 0xfdd   :  { %2819 = vrcp.f32 %v1782_v43 }
 0xfe0   :  { %v1785_v50 = vpop.xlane.xlu0 %1784 }
 0xfe1   :  { %2821 = vrcp.f32 %v1785_v50 }
 0xfe4   :  { %v1793_v51 = vpop.permute.xlu0 %1792 }
 0xfe5   :  { %v1798_v57 = vsel %vm472_vm2, %v1793_v51, 0 }
 0xfe6   :  { %2627 = vmatpush3.bf16.msra.mxu0 %v1798_v57 }
 0xfe7   :  { %v2820_v59 = vpop.eup %2819  ;;  %2638 = vmatprep.subr.bf16.mxu0 %v2834_v2 }
 0xfe8   :  { %v1788_v62 = vmul.f32 %v2820_v59, %v2816_v48  ;;  %v1889_v12 = vpop.permute.xlu0 %1888 }
 0xfea   :  { %v1790_v3 = vpack.c.bf16 %v1788_v62, %v1788_v62  ;;  %v2763_v62 = vld [vmem:[%s3420_s6 + $0x20] sm:$0xff]  }
 0xfeb   :  { %v2822_v5 = vpop.eup %2821 }
 0xfec   :  { %v1789_v6 = vmul.f32 %v2822_v5, %v2818_v40  ;;  %2629 = vmatmul.mubr.msk.bf16.vlgmr.msra.gmra.mrb[48].mxu0 %vm444_vm3, %v1790_v3  ;;  %v2764_v3 = vld [vmem:[%s3420_s6 + $0x28] sm:$0xff]   ;;  %v2765_v5 = vld [vmem:[%s3420_s6 + $0x30] sm:$0xff]  }
 0xfed   :  { %2640 = vmatprep.mubr.msk.bf16.mxu0 %vm2835_vm0, %v2834_v2 }
 0xfee   :  { %v1791_v9 = vpack.c.bf16 %v1789_v6, %v1789_v6  ;;  %v2766_v6 = vld [vmem:[%s3420_s6 + $0x38] sm:$0xff]  }
 0xfef   :  { %2639 = vmatpush3.bf16.xpose.msra.mxu0 %v1896_v53 }
 0xff0   :  { %2635 = vmatmul.mubr.msk.bf16.vlgmr.msra.gmra.mrb[64].mxu1 %vm444_vm3, %v1791_v9  ;;  %2650 = vmatprep.subr.bf16.mxu0 %v2834_v2 }
 0xff1   :  { %2645 = vmatpush3.bf16.xpose.msra.mxu1 %v1946_v10  ;;  %2646 = vmatprep.mubr.msk.bf16.mxu1 %vm2835_vm0, %v2834_v2 }
 0xff2   :  { %2656 = vmatprep.subr.bf16.mxu1 %v2834_v2 }
 0xff6   :  { %2641 = vmatmul.mubr.msk.bf16.vlgmr.msra.gmra.mrb[52].mxu0 %vm351_vm1, %v1889_v12 }
 0xff7   :  { %2652 = vmatprep.mubr.msk.bf16.mxu0 %vm2835_vm0, %v2834_v2 }
 0xff8   :  { %2647 = vmatmul.mubr.msk.bf16.vlgmr.msra.gmra.mrb[68].mxu1 %vm351_vm1, %v1939_v15 }
 0xff9   :  { %2658 = vmatprep.mubr.msk.bf16.mxu1 %vm2835_vm0, %v2834_v2 }
0x10bf   :  { %v1834_v16 = vpop.f32.mrb[48].mxu0 }
0x10c0   :  { %v2630_v17 = vpop.f32.mrb[49].mxu0 }
0x10c1   :  { %v1837_v18 = vpop.f32.mrb[50].mxu0 }
0x10c2   :  { %v2631_v19 = vpop.f32.mrb[51].mxu0 }
0x10c3   :  { %v1882_v20 = vpop.f32.mrb[64].mxu1 }
0x10c4   :  { %v2717_v21 = vpack.i.bf16 %v1882_v20, %v1834_v16  ;;  %v2636_v22 = vpop.f32.mrb[65].mxu1 }
0x10c5   :  { %v1885_v23 = vpop.f32.mrb[66].mxu1 }
0x10c6   :  { %v2637_v24 = vpop.f32.mrb[67].mxu1 }
0x10c9   :  { %v1932_v25 = vpop.f32.mrb[52].mxu0 }
0x10ca   :  { %v1933_v27 = vadd.f32 %v2831_v26, %v1932_v25  ;;  %v2642_v30 = vpop.f32.mrb[53].mxu0 }
0x10cb   :  { %v1935_v31 = vpop.f32.mrb[54].mxu0  ;;  %v1982_v4 = vpop.f32.mrb[68].mxu1 }
0x10cc   :  { %v1983_v32 = vadd.f32 %v2832_v11, %v1982_v4  ;;  %v2643_v33 = vpop.f32.mrb[55].mxu0  ;;  %v2648_v35 = vpop.f32.mrb[69].mxu1  ;;  %v1988_v36 = vsel %vm444_vm3, %v1933_v27, -inf }
0x10cd   :  { %1989 = vmax.xlane.f32.xlu0 %v1988_v36  ;;  %v1985_v37 = vpop.f32.mrb[70].mxu1 }
0x10ce   :  { %v2649_v38 = vpop.f32.mrb[71].mxu1  ;;  %v1991_v48 = vsel %vm444_vm3, %v1983_v32, -inf }
0x10cf   :  { %1992 = vmax.xlane.f32.xlu1 %v1991_v48 }
0x10e0   :  { %2060 = vrot.lane.b32.xlu1 %v3047_v34, %s2842_s21 }
0x10e4   :  { %2693 = vrot.lane.b32.xlu1 %v2692_v47, %s2842_s21 }
0x10e8   :  { %2698 = vrot.lane.b32.xlu1 %v2697_v49, %s2841_s20 }
0x10ec   :  { %2708 = vrot.lane.b32.xlu1 %v2707_v1, %s2839_s18 }
0x10f0   :  { %2718 = vrot.lane.b32.xlu1 %v2717_v21, %s2837_s16 }
0x115a   :  { %v1990_v52 = vpop.xlane.xlu0 %1989 }
0x115b   :  { %v1994_v40 = vsub.f32 %v1933_v27, %v1990_v52 }
0x115c   :  { %v1993_v34 = vpop.xlane.xlu1 %1992 }
0x115d   :  { %v1996_v56 = vmul.f32 1.442695, %v1994_v40  ;;  %v1995_v43 = vsub.f32 %v1983_v32, %v1993_v34 }
0x115f   :  { %2823 = vpow2.f32 %v1996_v56  ;;  %v1998_v41 = vmul.f32 1.442695, %v1995_v43 }
0x1160   :  { %v2061_v45 = vpop.permute.xlu1 %2060 }
0x1161   :  { %2825 = vpow2.f32 %v1998_v41  ;;  %v2066_v47 = vsel %vm472_vm2, %v2061_v45, 0 }
0x1162   :  { %2657 = vmatpush3.bf16.msra.mxu1 %v2066_v47 }
0x1164   :  { %v2694_v19 = vpop.permute.xlu1 %2693 }
0x1165   :  { %v2695_v22 = vunpack.i.l.bf16 %v2694_v19 }
0x1167   :  { %v2164_v4 = vsel %vm351_vm1, %v3066_v46, %v2695_v22 }
0x1168   :  { %v2699_v20 = vpop.permute.xlu1 %2698 }
0x1169   :  { %v2824_v39 = vpop.eup %2823  ;;  %v2701_v23 = vunpack.i.h.bf16 %v2699_v20  ;;  %v2700_v24 = vunpack.i.l.bf16 %v2699_v20 }
0x116a   :  { %v2000_v44 = vsel %vm444_vm3, %v2824_v39, 0.0 }
0x116b   :  { %v2826_v49 = vpop.eup %2825  ;;  %2001 = vadd.xlane.f32.xlu0 %v2000_v44  ;;  %v2167_v11 = vsel %vm2166_vm4, %v2164_v4, %v2700_v24 }
0x116c   :  { %v2003_v58 = vsel %vm444_vm3, %v2826_v49, 0.0  ;;  %v2709_v25 = vpop.permute.xlu1 %2708 }
0x116d   :  { %v2711_v38 = vunpack.i.h.bf16 %v2709_v25  ;;  %v2710_v48 = vunpack.i.l.bf16 %v2709_v25 }
0x116f   :  { %2004 = vadd.xlane.f32.xlu0 %v2003_v58 }
0x1170   :  { %v2719_v52 = vpop.permute.xlu1 %2718 }
0x1171   :  { %v2720_v41 = vunpack.i.l.bf16 %v2719_v52 }
0x1185   :  { %2012 = vrot.lane.b32.xlu0 %v3016_v63, %s2842_s21 }
0x1189   :  { %2703 = vrot.lane.b32.xlu0 %v2702_v55, %s2840_s19 }
0x118d   :  { %2713 = vrot.lane.b32.xlu0 %v2712_v14, %s2838_s17  ;;  %v2761_v14 = vld [vmem:[%s3420_s6 + $0x10] sm:$0xff]  }
0x11f8   :  { %v2002_v0 = vpop.xlane.xlu0 %2001 }
0x11f9   :  { %2827 = vrcp.f32 %v2002_v0 }
0x11fc   :  { %v2005_v1 = vpop.xlane.xlu0 %2004 }
0x11fd   :  { %2829 = vrcp.f32 %v2005_v1  ;;  %v2350_v1 = vld [vmem:[%s3421_s7] ss:$0 sm:$0xff] }
0x1200   :  { %v2013_v50 = vpop.permute.xlu0 %2012 }
0x1201   :  { %v2018_v51 = vsel %vm472_vm2, %v2013_v50, 0 }
0x1202   :  { %2651 = vmatpush3.bf16.msra.mxu0 %v2018_v51 }
0x1203   :  { %v2828_v57 = vpop.eup %2827  ;;  %2662 = vmatprep.subr.bf16.mxu0 %v2834_v2 }
0x1204   :  { %v2008_v63 = vmul.f32 %v2828_v57, %v2824_v39  ;;  %v2704_v21 = vpop.permute.xlu0 %2703 }
0x1205   :  { %v2706_v26 = vunpack.i.h.bf16 %v2704_v21  ;;  %v2705_v27 = vunpack.i.l.bf16 %v2704_v21 }
0x1206   :  { %v2010_v59 = vpack.c.bf16 %v2008_v63, %v2008_v63 }
0x1207   :  { %v2830_v42 = vpop.eup %2829  ;;  %v2170_v33 = vsel %vm2169_vm5, %v2167_v11, %v2705_v27 }
0x1208   :  { %v2009_v54 = vmul.f32 %v2830_v42, %v2826_v49  ;;  %2653 = vmatmul.mubr.msk.bf16.vlgmr.msra.gmra.mrb[56].mxu0 %vm444_vm3, %v2010_v59  ;;  %v2714_v30 = vpop.permute.xlu0 %2713  ;;  %v2173_v40 = vsel %vm2172_vm6, %v2170_v33, %v2710_v48 }
0x1209   :  { %2678 = vmatprep.mubr.msk.bf16.mxu0 %vm2835_vm0, %v2834_v2  ;;  %2663 = vmatpush3.bf16.msra.mxu0 %v2759_v8  ;;  %v2716_v36 = vunpack.i.h.bf16 %v2714_v30  ;;  %v2715_v37 = vunpack.i.l.bf16 %v2714_v30 }
0x120a   :  { %v2011_v55 = vpack.c.bf16 %v2009_v54, %v2009_v54  ;;  %2664 = vmatprep.subr.bf16.mxu0 %v2834_v2 }
0x120b   :  { %v2176_v56 = vsel %vm2175_vm7, %v2173_v40, %v2715_v37 }
0x120c   :  { %2659 = vmatmul.mubr.msk.bf16.vlgmr.msra.gmra.mrb[72].mxu1 %vm444_vm3, %v2011_v55  ;;  %v2179_v39 = vsel %vm2178_vm8, %v2176_v56, %v2720_v41 }
0x120d   :  { %2665 = vmatpush3.bf16.msra.mxu0 %v2760_v13 }
0x120e   :  { %2666 = vmatprep.subr.bf16.mxu0 %v2834_v2 }
0x1211   :  { %2667 = vmatpush3.bf16.msra.mxu0 %v2761_v14 }
0x1212   :  { %2668 = vmatprep.subr.bf16.mxu0 %v2834_v2 }
0x1215   :  { %2669 = vmatpush3.bf16.msra.mxu0 %v2762_v61 }
0x1216   :  { %2670 = vmatprep.subr.bf16.mxu0 %v2834_v2 }
0x1219   :  { %2671 = vmatpush3.bf16.msra.mxu0 %v2763_v62 }
0x121a   :  { %2672 = vmatprep.subr.bf16.mxu0 %v2834_v2 }
0x121d   :  { %2673 = vmatpush3.bf16.msra.mxu0 %v2764_v3 }
0x121e   :  { %2674 = vmatprep.subr.bf16.mxu0 %v2834_v2 }
0x1221   :  { %2675 = vmatpush3.bf16.msra.mxu0 %v2765_v5 }
0x1222   :  { %2676 = vmatprep.subr.bf16.mxu0 %v2834_v2  ;;  %v2696_v2 = vunpack.i.h.bf16 %v2694_v19 }
0x1224   :  { %v2165_v31 = vsel %vm351_vm1, %v3070_v60, %v2696_v2  ;;  %v2721_v60 = vunpack.i.h.bf16 %v2719_v52 }
0x1225   :  { %2677 = vmatpush3.bf16.msra.mxu0 %v2766_v6  ;;  %v2168_v32 = vsel %vm2166_vm4, %v2165_v31, %v2701_v23 }
0x1226   :  { %v2171_v35 = vsel %vm2169_vm5, %v2168_v32, %v2706_v26 }
0x1227   :  { %v2174_v34 = vsel %vm2172_vm6, %v2171_v35, %v2711_v38 }
0x1228   :  { %v2177_v43 = vsel %vm2175_vm7, %v2174_v34, %v2716_v36 }
0x1229   :  { %v2180_v44 = vsel %vm2178_vm8, %v2177_v43, %v2721_v60 }
0x12db   :  { %v2054_v7 = vpop.f32.mrb[56].mxu0 }
0x12dc   :  { %v2654_v53 = vpop.f32.mrb[57].mxu0 }
0x12dd   :  { %v2057_v9 = vpop.f32.mrb[58].mxu0 }
0x12de   :  { %v2655_v10 = vpop.f32.mrb[59].mxu0 }
0x12df   :  { %v2102_v12 = vpop.f32.mrb[72].mxu1 }
0x12e0   :  { %v2722_v15 = vpack.i.bf16 %v2102_v12, %v2054_v7  ;;  %v2660_v16 = vpop.f32.mrb[73].mxu1 }
0x12e1   :  { %v2105_v17 = vpop.f32.mrb[74].mxu1 }
0x12e2   :  { %2723 = vrot.lane.b32.xlu0 %v2722_v15, %s2836_s15  ;;  %v2661_v18 = vpop.f32.mrb[75].mxu1 }
0x1354   :  { %v2724_v46 = vpop.permute.xlu0 %2723 }
0x1355   :  { %v2726_v45 = vunpack.i.h.bf16 %v2724_v46  ;;  %v2725_v47 = vunpack.i.l.bf16 %v2724_v46 }
0x1357   :  { %v2183_v49 = vsel %vm2181_vm9, %v2180_v44, %v2726_v45  ;;  %v2182_v58 = vsel %vm2181_vm9, %v2179_v39, %v2725_v47 }
0x1358   :  { %v2184_v0 = vpack.c.bf16 %v2183_v49, %v2182_v58 }
0x135a   :  { %2679 = vmatmul.mubr.bf16.vlgmr.msra.gmra.mrb[60].mxu0 %v2184_v0 }
0x142d   :  { %v2273_v50 = vpop.f32.mrb[60].mxu0 }
0x142e   :  { %v2274_v51 = vadd.f32 %v2350_v1, %v2273_v50  ;;  %v2680_v57 = vpop.f32.mrb[61].mxu0 }
0x142f   :  { %v2276_v63 = vpop.f32.mrb[62].mxu0 }
0x1430   :  { %v2277_v59 = vadd.f32 %v2350_v1, %v2276_v63  ;;  %v2681_v42 = vpop.f32.mrb[63].mxu0  ;;  %v2280_v54 = vadd.f32 %v2274_v51, %v2958_v28 }
0x1432   :  { %v2281_v55 = vadd.f32 %v2277_v59, %v2960_v29 }
0x1434   :  { %v2366_v8 = vpack.c.bf16 %v2281_v55, %v2280_v54 }
0x1436   :  { %2367 = vst [vmem:[%s3422_s8] sm:$0xff] %v2366_v8  }

</bundles_post_ra>
